<compile_context>
chip_gen: v7x
topology: tpu7x:2x2x1
jax: 0.10.0
libtpu: 0.0.40
codegen_flags: <defaults>
</compile_context>

<pallas_src>
import functools

import jax
import jax.numpy as jnp
from jax.experimental import pallas as pl
from jax.experimental.pallas import tpu as pltpu


# Padded hidden sizes (500 -> 512, 500 -> 512, 2000 -> 2048).
_H1, _H2, _H3 = 512, 512, 2048
_STEP_OVERHEAD_S = 0.35e-6            # measured per-grid-step overhead (~600 cyc)


def _round_up(n, m):
    return ((n + m - 1) // m) * m


@functools.lru_cache(maxsize=None)
def _tpu_config():
    """Per-generation (max_block, vmem_limit_bytes, min_tiles, peak_flops)."""
    try:
        kind = jax.devices()[0].device_kind.lower()
    except Exception:
        kind = ""
    if "v7" in kind:
        # 2 TensorCores/chip, 64 MiB VMEM per TC: cap tiles at 512, keep the
        # grid >= 2 steps so both cores get sharded work, stay under ~52 MiB.
        return 512, 52 * 1024 * 1024, 2, 996e12
    if "v6" in kind or "trillium" in kind:
        # 128 MiB VMEM, 918 TF/s: big tiles amortize grid-step overhead.
        return 1024, 96 * 1024 * 1024, 1, 918e12
    if "v5" in kind:
        # v5e: 256-row tiles already make step overhead <10%; bigger only adds
        # VMEM pressure from the 2048-wide intermediates.
        return 256, 48 * 1024 * 1024, 1, 197e12
    # Unknown generation: conservative defaults.
    return 256, 48 * 1024 * 1024, 1, 197e12


def _pick_batch_tile(batch, max_block, min_tiles, overhead_rows):
    """Pick a batch tile (multiple of 16 for bf16 sublane packing, <= max_block)
    minimizing total work = n_tiles * (tile_rows + step-overhead-in-rows), i.e.
    it trades padding waste against per-grid-step overhead.  When the batch is
    large enough, at least `min_tiles` grid steps are enforced (keeps both v7x
    TensorCores busy under dimension_semantics=("parallel",))."""
    max_block = max(16, _round_up(max_block, 16))
    best_blk, best_key = 16, None
    for blk in range(16, max_block + 1, 16):
        n = -(-batch // blk)                       # grid steps
        if batch >= min_tiles * 16 and n < min_tiles:
            continue
        cost = n * (blk + overhead_rows)           # rows of MXU work incl. overhead
        key = (cost, n, -blk)
        if best_key is None or key < best_key:
            best_key, best_blk = key, blk
    return best_blk


def _mlp_kernel(x_ref, w1_ref, b1_ref, w2_ref, b2_ref, w3_ref, b3_ref,
                w4_ref, b4_ref, o_ref):
    """Fused 4-layer MLP over one batch tile.

    Matmul operands are bf16 (MXU fast path) with f32 accumulation; bias add /
    ReLU are f32 on the VPU.  The ReLU is fused with the bf16 downcast so each
    f32 accumulator dies before the next matmul starts.
    """
    h = jnp.dot(x_ref[...], w1_ref[...],
                preferred_element_type=jnp.float32) + b1_ref[...]
    h = jnp.maximum(h, 0.0).astype(jnp.bfloat16)

    h = jnp.dot(h, w2_ref[...],
                preferred_element_type=jnp.float32) + b2_ref[...]
    h = jnp.maximum(h, 0.0).astype(jnp.bfloat16)

    h = jnp.dot(h, w3_ref[...],
                preferred_element_type=jnp.float32) + b3_ref[...]
    h = jnp.maximum(h, 0.0).astype(jnp.bfloat16)

    out = jnp.dot(h, w4_ref[...],
                  preferred_element_type=jnp.float32) + b4_ref[...]
    o_ref[...] = out.astype(o_ref.dtype)


def prepare_encoder_params(params):
    """One-time preprocessing (hoisted out of the per-call path): pad every dim
    to a 128-multiple and cast weights to bf16.  Biases stay f32 (added after
    f32 accumulation).  Returns (prepared_params, feature_dim)."""
    input_dim = params["w1"].shape[0]
    feature_dim = params["w4"].shape[1]
    k1 = _round_up(input_dim, 128)
    fpad = _round_up(feature_dim, 128)

    def pad2(a, rows, cols, dtype):
        return jnp.pad(a, ((0, rows - a.shape[0]),
                           (0, cols - a.shape[1]))).astype(dtype)

    prepared = dict(
        w1=pad2(params["w1"], k1, _H1, jnp.bfloat16),
        b1=pad2(params["b1"], 1, _H1, jnp.float32),
        w2=pad2(params["w2"], _H1, _H2, jnp.bfloat16),
        b2=pad2(params["b2"], 1, _H2, jnp.float32),
        w3=pad2(params["w3"], _H2, _H3, jnp.bfloat16),
        b3=pad2(params["b3"], 1, _H3, jnp.float32),
        w4=pad2(params["w4"], _H3, fpad, jnp.bfloat16),
        b4=pad2(params["b4"], 1, fpad, jnp.float32),
    )
    return prepared, feature_dim


@functools.partial(jax.jit, static_argnames=("feature_dim",))
def encoder_forward(x, prepared, *, feature_dim):
    """x: (B, input_dim) float32.  prepared: output of prepare_encoder_params."""
    B, input_dim = x.shape
    k1 = prepared["w1"].shape[0]
    fpad = prepared["w4"].shape[1]
    assert input_dim <= k1, "x feature dim does not match prepared weights"

    weights = (prepared["w1"], prepared["b1"], prepared["w2"], prepared["b2"],
               prepared["w3"], prepared["b3"], prepared["w4"], prepared["b4"])
    weight_bytes = sum(int(w.size) * w.dtype.itemsize for w in weights)

    max_block, vmem_limit, min_tiles, peak_flops = _tpu_config()

    per_row_flops = 2 * (k1 * _H1 + _H1 * _H2 + _H2 * _H3 + _H3 * fpad)
    overhead_rows = max(16, int(_STEP_OVERHEAD_S * peak_flops / per_row_flops))

    # Fully-VMEM-resident weights (double-buffered by the auto-pipeline) are
    # the whole point of this fused kernel; fail loudly if they can't fit.
    # TODO(synk): add a K-grid (layer-1) / N-grid (layer-4) tiled fallback with
    # an accumulator for very large input_dim / feature_dim.
    if 2 * weight_bytes > 0.8 * vmem_limit:
        raise ValueError("Encoder weights do not fit in VMEM for the fused "
                         "kernel; input_dim/feature_dim too large.")

    def vmem_estimate(blk):
        io = 2 * blk * k1 * 2 + 2 * blk * fpad * 4        # dbl-buffered x (bf16) + out (f32)
        acts = blk * (_H1 + _H2 + _H3) * (4 + 2)          # f32 accums + bf16 copies (rough)
        return 2 * weight_bytes + io + acts

    blk_cap = max_block
    while True:
        block_b = _pick_batch_tile(B, blk_cap, min_tiles, overhead_rows)
        if vmem_estimate(block_b) <= 0.85 * vmem_limit or blk_cap <= 16:
            break
        blk_cap = max(16, blk_cap // 2)

    n_tiles = -(-B // block_b)
    b_pad = n_tiles * block_b

    # Pad + pre-cast x to bf16 once in the wrapper: halves input DMA bytes and
    # x-tile VMEM, removes the per-tile VPU cast (MXU operands were bf16 anyway).
    x_p = jnp.pad(x, ((0, b_pad - B), (0, k1 - input_dim))).astype(jnp.bfloat16)

    batch_map = lambda i: (i, 0)
    const_map = lambda i: (0, 0)
    weight_specs = [pl.BlockSpec(w.shape, const_map) for w in weights]
    # NOTE: pipeline_mode=pl.Buffered(1) on these constant-index blocks would
    # halve their VMEM footprint, but single-buffered pipeline_mode is not
    # reliably supported by the auto-pipeliner across jax releases, so it is
    # intentionally omitted; the VMEM budget above already accounts for 2x.

    flops = 2 * b_pad * (k1 * _H1 + _H1 * _H2 + _H2 * _H3 + _H3 * fpad)
    bytes_accessed = (x_p.size * x_p.dtype.itemsize + weight_bytes
                      + b_pad * fpad * x.dtype.itemsize)
    cost = pl.CostEstimate(flops=flops, transcendentals=0,
                           bytes_accessed=bytes_accessed)

    out_padded = pl.pallas_call(
        _mlp_kernel,
        out_shape=jax.ShapeDtypeStruct((b_pad, fpad), x.dtype),
        grid_spec=pltpu.PrefetchScalarGridSpec(
            num_scalar_prefetch=0,
            grid=(n_tiles,),
            in_specs=[pl.BlockSpec((block_b, k1), batch_map)] + weight_specs,
            out_specs=pl.BlockSpec((block_b, fpad), batch_map),
        ),
        compiler_params=pltpu.CompilerParams(
            dimension_semantics=("parallel",),
            vmem_limit_bytes=int(vmem_limit),
        ),
        cost_estimate=cost,
    )(x_p, *weights)

    return out_padded[:B, :feature_dim]


def init_encoder_params(key, input_dim, feature_dim, dtype=jnp.float32):
    """Deterministic init mimicking nn.Linear's U(-1/sqrt(fan_in), 1/sqrt(fan_in))."""
    dims = [(input_dim, 500), (500, 500), (500, 2000), (2000, feature_dim)]
    params = {}
    for idx, (fan_in, fan_out) in enumerate(dims, start=1):
        key, kw, kb = jax.random.split(key, 3)
        bound = 1.0 / jnp.sqrt(jnp.array(fan_in, dtype=jnp.float32))
        # stored as (in, out) so the kernel computes x @ W
        params[f"w{idx}"] = jax.random.uniform(
            kw, (fan_in, fan_out), dtype=dtype, minval=-bound, maxval=bound)
        params[f"b{idx}"] = jax.random.uniform(
            kb, (1, fan_out), dtype=dtype, minval=-bound, maxval=bound)
    return params


def encoder_reference_f32(x, params):
    """Pure-JAX f32 reference (PyTorch module semantics)."""
    h = jnp.maximum(x @ params["w1"] + params["b1"], 0.0)
    h = jnp.maximum(h @ params["w2"] + params["b2"], 0.0)
    h = jnp.maximum(h @ params["w3"] + params["b3"], 0.0)
    return h @ params["w4"] + params["b4"]


def encoder_reference_bf16(x, params):
    """Pure-JAX reference emulating the kernel numerics (bf16 MXU inputs, f32 acc)."""
    def lin(h, w, b):
        return jnp.dot(h.astype(jnp.bfloat16), w.astype(jnp.bfloat16),
                       preferred_element_type=jnp.float32) + b
    h = jnp.maximum(lin(x, params["w1"], params["b1"]), 0.0)
    h = jnp.maximum(lin(h, params["w2"], params["b2"]), 0.0)
    h = jnp.maximum(lin(h, params["w3"], params["b3"]), 0.0)
    return lin(h, params["w4"], params["b4"])


if __name__ == "__main__":
    key = jax.random.PRNGKey(0)
    kp, kx = jax.random.split(key)

    batch, input_dim, feature_dim = 8, 32, 16
    params = init_encoder_params(kp, input_dim, feature_dim)
    prepared, feat = prepare_encoder_params(params)   # one-time pad + bf16 cast

    x = jax.random.normal(kx, (batch, input_dim), dtype=jnp.float32)

    out = encoder_forward(x, prepared, feature_dim=feat)
    out = jax.block_until_ready(out)

    assert out.shape == (batch, feature_dim), out.shape

    # Tight check vs a reference using the same bf16-operand / f32-accumulate math.
    ref_bf16 = encoder_reference_bf16(x, params)
    assert jnp.allclose(out, ref_bf16, atol=1e-3, rtol=1e-3), (
        float(jnp.max(jnp.abs(out - ref_bf16))))

    # Loose check vs the pure-f32 module semantics (tolerance is dim-dependent;
    # fine at these small test dims).
    ref_f32 = encoder_reference_f32(x, params)
    assert jnp.allclose(out, ref_f32, atol=5e-2, rtol=5e-2), (
        float(jnp.max(jnp.abs(out - ref_f32))))

    print("KERNEL_OK")
</pallas_src>

<mosaic_0001>
module attributes {stable_mosaic.version = 11 : i64} {
  func.func @_mlp_kernel(%arg0: i32, %arg1: memref<16x128xbf16, #tpu.memory_space<vmem>>, %arg2: memref<128x512xbf16, #tpu.memory_space<vmem>>, %arg3: memref<1x512xf32, #tpu.memory_space<vmem>>, %arg4: memref<512x512xbf16, #tpu.memory_space<vmem>>, %arg5: memref<1x512xf32, #tpu.memory_space<vmem>>, %arg6: memref<512x2048xbf16, #tpu.memory_space<vmem>>, %arg7: memref<1x2048xf32, #tpu.memory_space<vmem>>, %arg8: memref<2048x128xbf16, #tpu.memory_space<vmem>>, %arg9: memref<1x128xf32, #tpu.memory_space<vmem>>, %arg10: memref<16x128xf32, #tpu.memory_space<vmem>>) attributes {dimension_semantics = [#tpu.dimension_semantics<parallel>], iteration_bounds = array<i64: 1>, scalar_prefetch = 0 : i64, scratch_operands = 0 : i64, tpu.core_type = #tpu.core_type<tc>, window_params = [{transform_indices = @transform_0, window_bounds = array<i64: 16, 128>}, {pipeline_mode = #tpu.pipeline_mode<synchronous>, transform_indices = @transform_1, window_bounds = array<i64: 128, 512>}, {pipeline_mode = #tpu.pipeline_mode<synchronous>, transform_indices = @transform_2, window_bounds = array<i64: 1, 512>}, {pipeline_mode = #tpu.pipeline_mode<synchronous>, transform_indices = @transform_3, window_bounds = array<i64: 512, 512>}, {pipeline_mode = #tpu.pipeline_mode<synchronous>, transform_indices = @transform_4, window_bounds = array<i64: 1, 512>}, {pipeline_mode = #tpu.pipeline_mode<synchronous>, transform_indices = @transform_5, window_bounds = array<i64: 512, 2048>}, {pipeline_mode = #tpu.pipeline_mode<synchronous>, transform_indices = @transform_6, window_bounds = array<i64: 1, 2048>}, {pipeline_mode = #tpu.pipeline_mode<synchronous>, transform_indices = @transform_7, window_bounds = array<i64: 2048, 128>}, {pipeline_mode = #tpu.pipeline_mode<synchronous>, transform_indices = @transform_8, window_bounds = array<i64: 1, 128>}, {transform_indices = @transform_9, window_bounds = array<i64: 16, 128>}]} {
    %c0 = arith.constant 0 : index
    %c0_0 = arith.constant 0 : index
    %0 = vector.load %arg1[%c0, %c0_0] : memref<16x128xbf16, #tpu.memory_space<vmem>>, vector<16x128xbf16>
    %c0_1 = arith.constant 0 : index
    %c0_2 = arith.constant 0 : index
    %1 = vector.load %arg2[%c0_1, %c0_2] : memref<128x512xbf16, #tpu.memory_space<vmem>>, vector<128x512xbf16>
    %cst = arith.constant dense<0.000000e+00> : vector<16x512xf32>
    %2 = tpu.matmul %0, %1, %cst {dimension_numbers = #tpu.dot_dimension_numbers<[1], [0], [0], [1], [0, 0, 1, 1], [], []>} : vector<16x128xbf16>, vector<128x512xbf16>, vector<16x512xf32> -> vector<16x512xf32>
    %c0_3 = arith.constant 0 : index
    %c0_4 = arith.constant 0 : index
    %3 = vector.load %arg3[%c0_3, %c0_4] : memref<1x512xf32, #tpu.memory_space<vmem>>, vector<1x512xf32>
    %4 = vector.broadcast %3 : vector<1x512xf32> to vector<16x512xf32>
    %5 = arith.addf %2, %4 : vector<16x512xf32>
    %cst_5 = arith.constant 0.000000e+00 : f32
    %6 = vector.broadcast %cst_5 : f32 to vector<16x512xf32>
    %7 = arith.maximumf %5, %6 : vector<16x512xf32>
    %8 = arith.truncf %7 : vector<16x512xf32> to vector<16x512xbf16>
    %c0_6 = arith.constant 0 : index
    %c0_7 = arith.constant 0 : index
    %9 = vector.load %arg4[%c0_6, %c0_7] : memref<512x512xbf16, #tpu.memory_space<vmem>>, vector<512x512xbf16>
    %cst_8 = arith.constant dense<0.000000e+00> : vector<16x512xf32>
    %10 = tpu.matmul %8, %9, %cst_8 {dimension_numbers = #tpu.dot_dimension_numbers<[1], [0], [0], [1], [0, 0, 1, 1], [], []>} : vector<16x512xbf16>, vector<512x512xbf16>, vector<16x512xf32> -> vector<16x512xf32>
    %c0_9 = arith.constant 0 : index
    %c0_10 = arith.constant 0 : index
    %11 = vector.load %arg5[%c0_9, %c0_10] : memref<1x512xf32, #tpu.memory_space<vmem>>, vector<1x512xf32>
    %12 = vector.broadcast %11 : vector<1x512xf32> to vector<16x512xf32>
    %13 = arith.addf %10, %12 : vector<16x512xf32>
    %cst_11 = arith.constant 0.000000e+00 : f32
    %14 = vector.broadcast %cst_11 : f32 to vector<16x512xf32>
    %15 = arith.maximumf %13, %14 : vector<16x512xf32>
    %16 = arith.truncf %15 : vector<16x512xf32> to vector<16x512xbf16>
    %c0_12 = arith.constant 0 : index
    %c0_13 = arith.constant 0 : index
    %17 = vector.load %arg6[%c0_12, %c0_13] : memref<512x2048xbf16, #tpu.memory_space<vmem>>, vector<512x2048xbf16>
    %cst_14 = arith.constant dense<0.000000e+00> : vector<16x2048xf32>
    %18 = tpu.matmul %16, %17, %cst_14 {dimension_numbers = #tpu.dot_dimension_numbers<[1], [0], [0], [1], [0, 0, 1, 1], [], []>} : vector<16x512xbf16>, vector<512x2048xbf16>, vector<16x2048xf32> -> vector<16x2048xf32>
    %c0_15 = arith.constant 0 : index
    %c0_16 = arith.constant 0 : index
    %19 = vector.load %arg7[%c0_15, %c0_16] : memref<1x2048xf32, #tpu.memory_space<vmem>>, vector<1x2048xf32>
    %20 = vector.broadcast %19 : vector<1x2048xf32> to vector<16x2048xf32>
    %21 = arith.addf %18, %20 : vector<16x2048xf32>
    %cst_17 = arith.constant 0.000000e+00 : f32
    %22 = vector.broadcast %cst_17 : f32 to vector<16x2048xf32>
    %23 = arith.maximumf %21, %22 : vector<16x2048xf32>
    %24 = arith.truncf %23 : vector<16x2048xf32> to vector<16x2048xbf16>
    %c0_18 = arith.constant 0 : index
    %c0_19 = arith.constant 0 : index
    %25 = vector.load %arg8[%c0_18, %c0_19] : memref<2048x128xbf16, #tpu.memory_space<vmem>>, vector<2048x128xbf16>
    %cst_20 = arith.constant dense<0.000000e+00> : vector<16x128xf32>
    %26 = tpu.matmul %24, %25, %cst_20 {dimension_numbers = #tpu.dot_dimension_numbers<[1], [0], [0], [1], [0, 0, 1, 1], [], []>} : vector<16x2048xbf16>, vector<2048x128xbf16>, vector<16x128xf32> -> vector<16x128xf32>
    %c0_21 = arith.constant 0 : index
    %c0_22 = arith.constant 0 : index
    %27 = vector.load %arg9[%c0_21, %c0_22] : memref<1x128xf32, #tpu.memory_space<vmem>>, vector<1x128xf32>
    %28 = vector.broadcast %27 : vector<1x128xf32> to vector<16x128xf32>
    %29 = arith.addf %26, %28 : vector<16x128xf32>
    %c0_23 = arith.constant 0 : index
    %c0_24 = arith.constant 0 : index
    %30 = vector.load %arg10[%c0_23, %c0_24] : memref<16x128xf32, #tpu.memory_space<vmem>>, vector<16x128xf32>
    tpu.vector_store %arg10[%c0_23, %c0_24], %29 {strides = array<i32>} : memref<16x128xf32, #tpu.memory_space<vmem>>, vector<16x128xf32>,
    return
  }
  func.func @transform_0(%arg0: i32) -> (i32, i32) {
    %c0_i32 = arith.constant 0 : i32
    %c0_i32_0 = arith.constant 0 : i32
    return %arg0, %c0_i32 : i32, i32
  }
  func.func @transform_1(%arg0: i32) -> (i32, i32) {
    %c0_i32 = arith.constant 0 : i32
    %c0_i32_0 = arith.constant 0 : i32
    %c0_i32_1 = arith.constant 0 : i32
    return %c0_i32, %c0_i32_0 : i32, i32
  }
  func.func @transform_2(%arg0: i32) -> (i32, i32) {
    %c0_i32 = arith.constant 0 : i32
    %c0_i32_0 = arith.constant 0 : i32
    %c0_i32_1 = arith.constant 0 : i32
    return %c0_i32, %c0_i32_0 : i32, i32
  }
  func.func @transform_3(%arg0: i32) -> (i32, i32) {
    %c0_i32 = arith.constant 0 : i32
    %c0_i32_0 = arith.constant 0 : i32
    %c0_i32_1 = arith.constant 0 : i32
    return %c0_i32, %c0_i32_0 : i32, i32
  }
  func.func @transform_4(%arg0: i32) -> (i32, i32) {
    %c0_i32 = arith.constant 0 : i32
    %c0_i32_0 = arith.constant 0 : i32
    %c0_i32_1 = arith.constant 0 : i32
    return %c0_i32, %c0_i32_0 : i32, i32
  }
  func.func @transform_5(%arg0: i32) -> (i32, i32) {
    %c0_i32 = arith.constant 0 : i32
    %c0_i32_0 = arith.constant 0 : i32
    %c0_i32_1 = arith.constant 0 : i32
    return %c0_i32, %c0_i32_0 : i32, i32
  }
  func.func @transform_6(%arg0: i32) -> (i32, i32) {
    %c0_i32 = arith.constant 0 : i32
    %c0_i32_0 = arith.constant 0 : i32
    %c0_i32_1 = arith.constant 0 : i32
    return %c0_i32, %c0_i32_0 : i32, i32
  }
  func.func @transform_7(%arg0: i32) -> (i32, i32) {
    %c0_i32 = arith.constant 0 : i32
    %c0_i32_0 = arith.constant 0 : i32
    %c0_i32_1 = arith.constant 0 : i32
    return %c0_i32, %c0_i32_0 : i32, i32
  }
  func.func @transform_8(%arg0: i32) -> (i32, i32) {
    %c0_i32 = arith.constant 0 : i32
    %c0_i32_0 = arith.constant 0 : i32
    %c0_i32_1 = arith.constant 0 : i32
    return %c0_i32, %c0_i32_0 : i32, i32
  }
  func.func @transform_9(%arg0: i32) -> (i32, i32) {
    %c0_i32 = arith.constant 0 : i32
    %c0_i32_0 = arith.constant 0 : i32
    return %arg0, %c0_i32 : i32, i32
  }
}

</mosaic_0001>

<bundles_post_ra>
// kernel: encoder_forward.1
= control target key start
LH: loop header
LB: loop body
LE: loop exit
PB: predicated region body
PF: predicated region fallthrough
CT: control target
= control target key end

     0   :  { %14 = vsyncpa [#allocation3], 0  ;;  %s8638_s0 = inlined_call_operand.vmem [shape: bf16[16,128], index: 0, kind: input, shape index: {}]   ;;  %s8639_s1 = inlined_call_operand.hbm [shape: bf16[128,512], index: 1, kind: input, shape index: {}]   ;;  %s8640_s2 = inlined_call_operand.hbm [shape: f32[1,512], index: 2, kind: input, shape index: {}]   ;;  %s8641_s3 = inlined_call_operand.hbm [shape: bf16[512,512], index: 3, kind: input, shape index: {}]   ;;  %s8642_s4 = inlined_call_operand.hbm [shape: f32[1,512], index: 4, kind: input, shape index: {}]   ;;  %s8643_s5 = inlined_call_operand.hbm [shape: bf16[512,2048], index: 5, kind: input, shape index: {}]   ;;  %s8644_s6 = inlined_call_operand.hbm [shape: f32[1,2048], index: 6, kind: input, shape index: {}]   ;;  %s8645_s7 = inlined_call_operand.hbm [shape: bf16[2048,128], index: 7, kind: input, shape index: {}]   ;;  %s8646_s8 = inlined_call_operand.hbm [shape: f32[1,128], index: 8, kind: input, shape index: {}]   ;;  %s8647_s9 = inlined_call_operand.vmem [shape: f32[16,128], index: 9, kind: output, shape index: {}]  }
   0x1   :  { %15 = vsyncpa [#allocation5], 0 }
   0x2   :  { %16 = vsyncpa [#allocation8], 0 }
   0x3   :  { %17 = vsyncpa [#allocation11], 0 }
   0x4   :  { %18 = vsyncpa [#allocation14], 0  ;;  %s8317_s30 = smov [#allocation4]   ;;  %s8318_s11 = smov [#allocation7]  }
   0x5   :  { %s39_s10 = sshll.u32 %s8317_s30, 4  ;;  %s61_s12 = sshll.u32 %s8318_s11, 4  ;;  %s40_s10 = int_to_ptr.vmem [resolvable:$true] %s39_s10  ;;  %s62_s12 = int_to_ptr.vmem [resolvable:$true] %s61_s12 }
   0x6   :  { %s8131_s15 = scalar_lea.hbm %s8640_s2, 64 }
   0x7   :  { %p8132_p0 = scmp.ne.s32.totalorder %s8640_s2, %s8131_s15  ;;  %p8135_p1 = scmp.lt.u32.totalorder %s8131_s15, %s8640_s2 }
   0x9   :  { %p8137_p2 = pnand %p8135_p1, %p8132_p0 }
   0xb   :  { %8140 = shalt.err (!%p8137_p2)
}
   0xc   :  { %s8141_s20 = scalar_lea.vmem %s40_s10, 64  ;;  %p8146_p4 = scmp.lt.s32.totalorder %s40_s10, %s40_s10 }
   0xd   :  { %p8142_p3 = scmp.ne.s32.totalorder %s40_s10, %s8141_s20  ;;  %p8147_p5 = scmp.lt.s32.totalorder %s8141_s20, %s8141_s20 }
   0xf   :  { %p8148_p6 = por %p8147_p5, %p8146_p4 }
  0x11   :  { %p8149_p7 = pnand %p8148_p6, %p8142_p3 }
  0x13   :  { %8152 = shalt.err (!%p8149_p7)
}
  0x14   :  { %42 = dma.hbm_to_vmem [thread:$0]  %s8640_s2, 64, %s40_s10, [#allocation5]  }
  0x15   :  { %s8153_s25 = scalar_lea.hbm %s8642_s4, 64 }
  0x16   :  { %p8154_p8 = scmp.ne.s32.totalorder %s8642_s4, %s8153_s25  ;;  %p8157_p9 = scmp.lt.u32.totalorder %s8153_s25, %s8642_s4 }
  0x18   :  { %p8159_p10 = pnand %p8157_p9, %p8154_p8 }
  0x1a   :  { %8162 = shalt.err (!%p8159_p10)
}
  0x1b   :  { %s8163_s30 = scalar_lea.vmem %s62_s12, 64  ;;  %p8168_p12 = scmp.lt.s32.totalorder %s62_s12, %s62_s12 }
  0x1c   :  { %p8164_p11 = scmp.ne.s32.totalorder %s62_s12, %s8163_s30  ;;  %p8169_p13 = scmp.lt.s32.totalorder %s8163_s30, %s8163_s30 }
  0x1e   :  { %p8170_p0 = por %p8169_p13, %p8168_p12 }
  0x20   :  { %p8171_p1 = pnand %p8170_p0, %p8164_p11 }
  0x22   :  { %8174 = shalt.err (!%p8171_p1)
}
  0x23   :  { %64 = dma.hbm_to_vmem [thread:$0]  %s8642_s4, 64, %s62_s12, [#allocation8]  }
  0x24   :  { %s8319_s11 = smov [#allocation10]   ;;  %s8320_s14 = smov [#allocation2]  }
  0x25   :  { %s83_s13 = sshll.u32 %s8319_s11, 4  ;;  %s26_s15 = sshll.u32 %s8320_s14, 4  ;;  %s84_s13 = int_to_ptr.vmem [resolvable:$true] %s83_s13  ;;  %s8405_s15 = int_to_ptr.vmem [resolvable:$true] %s26_s15 }
  0x26   :  { %s8175_s18 = scalar_lea.hbm %s8644_s6, 256 }
  0x27   :  { %p8176_p2 = scmp.ne.s32.totalorder %s8644_s6, %s8175_s18  ;;  %p8179_p3 = scmp.lt.u32.totalorder %s8175_s18, %s8644_s6 }
  0x29   :  { %p8181_p4 = pnand %p8179_p3, %p8176_p2 }
  0x2b   :  { %8184 = shalt.err (!%p8181_p4)
}
  0x2c   :  { %s8185_s4 = scalar_lea.vmem %s84_s13, 256  ;;  %p8190_p6 = scmp.lt.s32.totalorder %s84_s13, %s84_s13 }
  0x2d   :  { %p8186_p5 = scmp.ne.s32.totalorder %s84_s13, %s8185_s4  ;;  %p8191_p7 = scmp.lt.s32.totalorder %s8185_s4, %s8185_s4 }
  0x2f   :  { %p8192_p8 = por %p8191_p7, %p8190_p6 }
  0x31   :  { %p8193_p9 = pnand %p8192_p8, %p8186_p5 }
  0x33   :  { %8196 = shalt.err (!%p8193_p9)
}
  0x34   :  { %86 = dma.hbm_to_vmem [thread:$0]  %s8644_s6, 256, %s84_s13, [#allocation11]  }
  0x35   :  { %s8197_s26 = scalar_lea.hbm %s8639_s1, 4096 }
  0x36   :  { %p8198_p10 = scmp.ne.s32.totalorder %s8639_s1, %s8197_s26  ;;  %p8201_p11 = scmp.lt.u32.totalorder %s8197_s26, %s8639_s1 }
  0x38   :  { %p8203_p12 = pnand %p8201_p11, %p8198_p10 }
  0x3a   :  { %8206 = shalt.err (!%p8203_p12)
}
  0x3b   :  { %s8207_s2 = scalar_lea.vmem %s8405_s15, 4096  ;;  %p8212_p0 = scmp.lt.s32.totalorder %s8405_s15, %s8405_s15 }
  0x3c   :  { %p8208_p13 = scmp.ne.s32.totalorder %s8405_s15, %s8207_s2  ;;  %p8213_p1 = scmp.lt.s32.totalorder %s8207_s2, %s8207_s2 }
  0x3e   :  { %p8214_p2 = por %p8213_p1, %p8212_p0 }
  0x40   :  { %p8215_p3 = pnand %p8214_p2, %p8208_p13 }
  0x42   :  { %8218 = shalt.err (!%p8215_p3)
}
  0x43   :  { %s8321_s6 = smov 256   ;;  %s8322_s10 = smov 16  }
  0x44   :  { %32 = dma.hbm_to_vmem [thread:$0]  %s8639_s1, 4096, %s8405_s15, [#allocation3], %s8321_s6, %s8321_s6, %s8322_s10  }
  0x45   :  { %s8323_s14 = smov [#allocation6]   ;;  %s8324_s17 = smov [#allocation9]  }
  0x46   :  { %s48_s16 = sshll.u32 %s8323_s14, 4  ;;  %s70_s18 = sshll.u32 %s8324_s17, 4  ;;  %s49_s16 = int_to_ptr.vmem [resolvable:$true] %s48_s16  ;;  %s8436_s18 = int_to_ptr.vmem [resolvable:$true] %s70_s18 }
  0x47   :  { %s8219_s21 = scalar_lea.hbm %s8641_s3, 16384 }
  0x48   :  { %p8220_p4 = scmp.ne.s32.totalorder %s8641_s3, %s8219_s21  ;;  %p8223_p5 = scmp.lt.u32.totalorder %s8219_s21, %s8641_s3 }
  0x4a   :  { %p8225_p6 = pnand %p8223_p5, %p8220_p4 }
  0x4c   :  { %8228 = shalt.err (!%p8225_p6)
}
  0x4d   :  { %s8229_s1 = scalar_lea.vmem %s49_s16, 16384  ;;  %p8234_p8 = scmp.lt.s32.totalorder %s49_s16, %s49_s16 }
  0x4e   :  { %p8230_p7 = scmp.ne.s32.totalorder %s49_s16, %s8229_s1  ;;  %p8235_p9 = scmp.lt.s32.totalorder %s8229_s1, %s8229_s1 }
  0x50   :  { %p8236_p10 = por %p8235_p9, %p8234_p8 }
  0x52   :  { %p8237_p11 = pnand %p8236_p10, %p8230_p7 }
  0x54   :  { %8240 = shalt.err (!%p8237_p11)
}
  0x55   :  { %54 = dma.hbm_to_vmem [thread:$0]  %s8641_s3, 16384, %s49_s16, [#allocation5], %s8321_s6, %s8321_s6, %s8322_s10  }
  0x56   :  { %s8241_s27 = scalar_lea.hbm %s8643_s5, 65536 }
  0x57   :  { %p8242_p12 = scmp.ne.s32.totalorder %s8643_s5, %s8241_s27  ;;  %p8245_p13 = scmp.lt.u32.totalorder %s8241_s27, %s8643_s5 }
  0x59   :  { %p8247_p0 = pnand %p8245_p13, %p8242_p12 }
  0x5b   :  { %8250 = shalt.err (!%p8247_p0)
}
  0x5c   :  { %s8251_s11 = scalar_lea.vmem %s8436_s18, 65536  ;;  %p8256_p2 = scmp.lt.s32.totalorder %s8436_s18, %s8436_s18 }
  0x5d   :  { %p8252_p1 = scmp.ne.s32.totalorder %s8436_s18, %s8251_s11  ;;  %p8257_p3 = scmp.lt.s32.totalorder %s8251_s11, %s8251_s11 }
  0x5f   :  { %p8258_p4 = por %p8257_p3, %p8256_p2 }
  0x61   :  { %p8259_p5 = pnand %p8258_p4, %p8252_p1 }
  0x63   :  { %8262 = shalt.err (!%p8259_p5)
}
  0x64   :  { %s8325_s3 = smov 1024   ;;  %s8326_s6 = smov 64  }
  0x65   :  { %76 = dma.hbm_to_vmem [thread:$0]  %s8643_s5, 65536, %s8436_s18, [#allocation8], %s8325_s3, %s8325_s3, %s8326_s6  }
  0x66   :  { %s8327_s14 = smov [#allocation12]   ;;  %s8328_s17 = smov [#allocation13]  }
  0x67   :  { %s92_s16 = sshll.u32 %s8327_s14, 4  ;;  %s105_s19 = sshll.u32 %s8328_s17, 4  ;;  %s93_s16 = int_to_ptr.vmem [resolvable:$true] %s92_s16  ;;  %s106_s19 = int_to_ptr.vmem [resolvable:$true] %s105_s19 }
  0x68   :  { %s8263_s22 = scalar_lea.hbm %s8645_s7, 16384 }
  0x69   :  { %p8264_p6 = scmp.ne.s32.totalorder %s8645_s7, %s8263_s22  ;;  %p8267_p7 = scmp.lt.u32.totalorder %s8263_s22, %s8645_s7 }
  0x6b   :  { %p8269_p8 = pnand %p8267_p7, %p8264_p6 }
  0x6d   :  { %8272 = shalt.err (!%p8269_p8)
}
  0x6e   :  { %s8273_s5 = scalar_lea.vmem %s93_s16, 16384  ;;  %p8278_p10 = scmp.lt.s32.totalorder %s93_s16, %s93_s16 }
  0x6f   :  { %p8274_p9 = scmp.ne.s32.totalorder %s93_s16, %s8273_s5  ;;  %p8279_p11 = scmp.lt.s32.totalorder %s8273_s5, %s8273_s5 }
  0x71   :  { %p8280_p12 = por %p8279_p11, %p8278_p10 }
  0x73   :  { %p8281_p13 = pnand %p8280_p12, %p8274_p9 }
  0x75   :  { %8284 = shalt.err (!%p8281_p13)
}
  0x76   :  { %s8329_s18 = smov 4   ;;  %s8285_s27 = scalar_lea.hbm %s8646_s8, 16 }
  0x77   :  { %98 = dma.hbm_to_vmem [thread:$0]  %s8645_s7, 16384, %s93_s16, [#allocation11], %s8326_s6, %s8326_s6, %s8329_s18  }
  0x78   :  { %p8286_p0 = scmp.ne.s32.totalorder %s8646_s8, %s8285_s27  ;;  %p8289_p1 = scmp.lt.u32.totalorder %s8285_s27, %s8646_s8 }
  0x7a   :  { %p8291_p2 = pnand %p8289_p1, %p8286_p0 }
  0x7c   :  { %8294 = shalt.err (!%p8291_p2)
}
  0x7d   :  { %s8295_s11 = scalar_lea.vmem %s106_s19, 16  ;;  %s8299_s3 = scalar_lea.vmem %s106_s19, 32 }
  0x7e   :  { %p8296_p3 = scmp.ne.s32.totalorder %s106_s19, %s8295_s11  ;;  %p8300_p4 = scmp.lt.s32.totalorder %s106_s19, %s106_s19 }
  0x7f   :  { %p8301_p5 = scmp.lt.s32.totalorder %s8299_s3, %s8295_s11 }
  0x81   :  { %p8302_p6 = por %p8301_p5, %p8300_p4 }
  0x83   :  { %p8303_p7 = pnand %p8302_p6, %p8296_p3 }
  0x85   :  { %8306 = shalt.err (!%p8303_p7)
}
  0x86   :  { %108 = dma.hbm_to_vmem [thread:$0]  %s8646_s8, 16, %s106_s19, [#allocation14]  }
  0x87   :  { %8307 = dma.done.wait [#allocation3], 4096  }
  0x88   :  { %8308 = vsyncadd [#allocation3], 4294963200 }
  0x89   :  { %8309 = dma.done.wait [#allocation5], 16448  }
  0x8a   :  { %8310 = vsyncadd [#allocation5], 4294950848 }
  0x8b   :  { %8311 = dma.done.wait [#allocation8], 65600  }
  0x8c   :  { %8312 = vsyncadd [#allocation8], 4294901696 }
  0x8d   :  { %8313 = dma.done.wait [#allocation11], 16640  }
  0x8e   :  { %8314 = vsyncadd [#allocation11], 4294950656 }
  0x8f   :  { %8315 = dma.done.wait [#allocation14], 16  }
  0x90   :  { %8316 = vsyncadd [#allocation14], 4294967280  ;;  %v8330_v0 = vmov 0   ;;  %v7762_v1 = vld [vmem:[#allocation2 + $0x4] ss:$16 sps:$4 sm:$0xff]  }
  0x91   :  { %388 = vmatprep.mubr.bf16.mxu0 %v8330_v0  ;;  %431 = vmatprep.mubr.bf16.mxu1 %v8330_v0  ;;  %v7764_v2 = vld [vmem:[#allocation2] ss:$16 sps:$4 sm:$0xff]   ;;  %v7765_v3 = vld [vmem:[#allocation2 + $0x24] ss:$16 sps:$4 sm:$0xff]   ;;  %v7787_v10 = vld [vmem:[#allocation2 + $0xc] ss:$16 sps:$4 sm:$0xff]  }
  0x92   :  { %356 = vmatprep.subr.bf16.mxu0 %v7762_v1  ;;  %v7767_v4 = vld [vmem:[#allocation2 + $0x20] ss:$16 sps:$4 sm:$0xff]   ;;  %v7768_v5 = vld [vmem:[#allocation2 + $0x44] ss:$16 sps:$4 sm:$0xff]   ;;  %v7789_v11 = vld [vmem:[#allocation2 + $0x8] ss:$16 sps:$4 sm:$0xff]   ;;  %399 = vmatprep.subr.bf16.mxu1 %v7787_v10 }
  0x93   :  { %357 = vmatpush1.bf16.msra.mxu0 %v7764_v2  ;;  %v7770_v6 = vld [vmem:[#allocation2 + $0x40] ss:$16 sps:$4 sm:$0xff]   ;;  %v7771_v7 = vld [vmem:[#allocation2 + $0x64] ss:$16 sps:$4 sm:$0xff]   ;;  %v7790_v12 = vld [vmem:[#allocation2 + $0x2c] ss:$16 sps:$4 sm:$0xff]   ;;  %400 = vmatpush1.bf16.msra.mxu1 %v7789_v11 }
  0x94   :  { %358 = vmatprep.subr.bf16.mxu0 %v7765_v3  ;;  %v7773_v8 = vld [vmem:[#allocation2 + $0x60] ss:$16 sps:$4 sm:$0xff]   ;;  %v7774_v9 = vld [vmem:[#allocation2 + $0x84] ss:$16 sps:$4 sm:$0xff]   ;;  %v7792_v14 = vld [vmem:[#allocation2 + $0x28] ss:$16 sps:$4 sm:$0xff]   ;;  %401 = vmatprep.subr.bf16.mxu1 %v7790_v12 }
  0x95   :  { %v7776_v13 = vld [vmem:[#allocation2 + $0x80] ss:$16 sps:$4 sm:$0xff]   ;;  %v7777_v15 = vld [vmem:[#allocation2 + $0xa4] ss:$16 sps:$4 sm:$0xff]   ;;  %v7793_v16 = vld [vmem:[#allocation2 + $0x4c] ss:$16 sps:$4 sm:$0xff]  }
  0x96   :  { %v7779_v17 = vld [vmem:[#allocation2 + $0xa0] ss:$16 sps:$4 sm:$0xff]   ;;  %v7795_v18 = vld [vmem:[#allocation2 + $0x48] ss:$16 sps:$4 sm:$0xff]   ;;  %v7780_v19 = vld [vmem:[#allocation2 + $0xc4] ss:$16 sps:$4 sm:$0xff]  }
  0x97   :  { %359 = vmatpush1.bf16.msra.mxu0 %v7767_v4  ;;  %402 = vmatpush1.bf16.msra.mxu1 %v7792_v14  ;;  %v7796_v20 = vld [vmem:[#allocation2 + $0x6c] ss:$16 sps:$4 sm:$0xff]   ;;  %v7782_v21 = vld [vmem:[#allocation2 + $0xc0] ss:$16 sps:$4 sm:$0xff]   ;;  %v7798_v22 = vld [vmem:[#allocation2 + $0x68] ss:$16 sps:$4 sm:$0xff]  }
  0x98   :  { %360 = vmatprep.subr.bf16.mxu0 %v7768_v5  ;;  %403 = vmatprep.subr.bf16.mxu1 %v7793_v16  ;;  %v7783_v23 = vld [vmem:[#allocation2 + $0xe4] ss:$16 sps:$4 sm:$0xff]   ;;  %v7799_v24 = vld [vmem:[#allocation2 + $0x8c] ss:$16 sps:$4 sm:$0xff]   ;;  %v7785_v25 = vld [vmem:[#allocation2 + $0xe0] ss:$16 sps:$4 sm:$0xff]  }
  0x99   :  { %v7801_v26 = vld [vmem:[#allocation2 + $0x88] ss:$16 sps:$4 sm:$0xff]   ;;  %v7802_v27 = vld [vmem:[#allocation2 + $0xac] ss:$16 sps:$4 sm:$0xff]   ;;  %v7786_v29 = vld [vmem:[%s8638_s0] sm:$0xff]  }
  0x9a   :  { %v7813_v28 = vld [vmem:[#allocation6 + $0x4] ss:$16 sps:$4 sm:$0xff]   ;;  %v7811_v31 = vld [vmem:[#allocation6] ss:$16 sps:$4 sm:$0xff]   ;;  %v7805_v32 = vld [vmem:[#allocation2 + $0xcc] ss:$16 sps:$4 sm:$0xff]  }
  0x9b   :  { %361 = vmatpush1.bf16.msra.mxu0 %v7770_v6  ;;  %404 = vmatpush1.bf16.msra.mxu1 %v7795_v18  ;;  %v7804_v30 = vld [vmem:[#allocation2 + $0xa8] ss:$16 sps:$4 sm:$0xff]   ;;  %v7817_v35 = vld [vmem:[#allocation6 + $0x20] ss:$16 sps:$4 sm:$0xff]   ;;  %v7808_v36 = vld [vmem:[#allocation2 + $0xec] ss:$16 sps:$4 sm:$0xff]  }
  0x9c   :  { %362 = vmatprep.subr.bf16.mxu0 %v7771_v7  ;;  %405 = vmatprep.subr.bf16.mxu1 %v7796_v20  ;;  %v7819_v33 = vld [vmem:[#allocation6 + $0x24] ss:$16 sps:$4 sm:$0xff]   ;;  %v7823_v39 = vld [vmem:[#allocation6 + $0x40] ss:$16 sps:$4 sm:$0xff]   ;;  %v7816_v40 = vld [vmem:[#allocation6 + $0xc] ss:$16 sps:$4 sm:$0xff]  }
  0x9d   :  { %v7807_v34 = vld [vmem:[#allocation2 + $0xc8] ss:$16 sps:$4 sm:$0xff]   ;;  %v7814_v42 = vld [vmem:[#allocation6 + $0x8] ss:$16 sps:$4 sm:$0xff]   ;;  %v7829_v43 = vld [vmem:[#allocation6 + $0x60] ss:$16 sps:$4 sm:$0xff]  }
  0x9e   :  { %v7825_v37 = vld [vmem:[#allocation6 + $0x44] ss:$16 sps:$4 sm:$0xff]   ;;  %v7822_v44 = vld [vmem:[#allocation6 + $0x2c] ss:$16 sps:$4 sm:$0xff]   ;;  %v7820_v46 = vld [vmem:[#allocation6 + $0x28] ss:$16 sps:$4 sm:$0xff]  }
  0x9f   :  { %363 = vmatpush1.bf16.msra.mxu0 %v7773_v8  ;;  %406 = vmatpush1.bf16.msra.mxu1 %v7798_v22  ;;  %v7810_v38 = vld [vmem:[#allocation2 + $0xe8] ss:$16 sps:$4 sm:$0xff]   ;;  %v7835_v47 = vld [vmem:[#allocation6 + $0x80] ss:$16 sps:$4 sm:$0xff]   ;;  %v7828_v48 = vld [vmem:[#allocation6 + $0x4c] ss:$16 sps:$4 sm:$0xff]  }
  0xa0   :  { %364 = vmatprep.subr.bf16.mxu0 %v7774_v9  ;;  %407 = vmatprep.subr.bf16.mxu1 %v7799_v24  ;;  %v7831_v41 = vld [vmem:[#allocation6 + $0x64] ss:$16 sps:$4 sm:$0xff]   ;;  %v7826_v50 = vld [vmem:[#allocation6 + $0x48] ss:$16 sps:$4 sm:$0xff]   ;;  %v7841_v51 = vld [vmem:[#allocation6 + $0xa0] ss:$16 sps:$4 sm:$0xff]  }
  0xa1   :  { %v7837_v45 = vld [vmem:[#allocation6 + $0x84] ss:$16 sps:$4 sm:$0xff]   ;;  %v7834_v52 = vld [vmem:[#allocation6 + $0x6c] ss:$16 sps:$4 sm:$0xff]   ;;  %v7832_v54 = vld [vmem:[#allocation6 + $0x68] ss:$16 sps:$4 sm:$0xff]  }
  0xa2   :  { %v7843_v49 = vld [vmem:[#allocation6 + $0xa4] ss:$16 sps:$4 sm:$0xff]   ;;  %v7847_v55 = vld [vmem:[#allocation6 + $0xc0] ss:$16 sps:$4 sm:$0xff]   ;;  %v7840_v56 = vld [vmem:[#allocation6 + $0x8c] ss:$16 sps:$4 sm:$0xff]  }
  0xa3   :  { %365 = vmatpush1.bf16.msra.mxu0 %v7776_v13  ;;  %408 = vmatpush1.bf16.msra.mxu1 %v7801_v26  ;;  %v7849_v53 = vld [vmem:[#allocation6 + $0xc4] ss:$16 sps:$4 sm:$0xff]   ;;  %v7838_v58 = vld [vmem:[#allocation6 + $0x88] ss:$16 sps:$4 sm:$0xff]   ;;  %v7846_v59 = vld [vmem:[#allocation6 + $0xac] ss:$16 sps:$4 sm:$0xff]  }
  0xa4   :  { %366 = vmatprep.subr.bf16.mxu0 %v7777_v15  ;;  %409 = vmatprep.subr.bf16.mxu1 %v7802_v27  ;;  %v7855_v57 = vld [vmem:[#allocation6 + $0xe4] ss:$16 sps:$4 sm:$0xff]   ;;  %v7853_v60 = vld [vmem:[#allocation6 + $0xe0] ss:$16 sps:$4 sm:$0xff]   ;;  %v7844_v62 = vld [vmem:[#allocation6 + $0xa8] ss:$16 sps:$4 sm:$0xff]  }
  0xa5   :  { %v7861_v61 = vld [vmem:[#allocation6 + $0x104] ss:$16 sps:$4 sm:$0xff]   ;;  %v7859_v63 = vld [vmem:[#allocation6 + $0x100] ss:$16 sps:$4 sm:$0xff]   ;;  %v7852_v0 = vld [vmem:[#allocation6 + $0xcc] ss:$16 sps:$4 sm:$0xff]  }
  0xa6   :  { %v7867_v1 = vld [vmem:[#allocation6 + $0x124] ss:$16 sps:$4 sm:$0xff]   ;;  %v7850_v2 = vld [vmem:[#allocation6 + $0xc8] ss:$16 sps:$4 sm:$0xff]   ;;  %v7865_v3 = vld [vmem:[#allocation6 + $0x120] ss:$16 sps:$4 sm:$0xff]  }
  0xa7   :  { %367 = vmatpush1.bf16.msra.mxu0 %v7779_v17  ;;  %410 = vmatpush1.bf16.msra.mxu1 %v7804_v30  ;;  %v7858_v4 = vld [vmem:[#allocation6 + $0xec] ss:$16 sps:$4 sm:$0xff]   ;;  %v7873_v5 = vld [vmem:[#allocation6 + $0x144] ss:$16 sps:$4 sm:$0xff]   ;;  %v7856_v6 = vld [vmem:[#allocation6 + $0xe8] ss:$16 sps:$4 sm:$0xff]  }
  0xa8   :  { %368 = vmatprep.subr.bf16.mxu0 %v7780_v19  ;;  %411 = vmatprep.subr.bf16.mxu1 %v7805_v32  ;;  %v7871_v7 = vld [vmem:[#allocation6 + $0x140] ss:$16 sps:$4 sm:$0xff]   ;;  %v7864_v8 = vld [vmem:[#allocation6 + $0x10c] ss:$16 sps:$4 sm:$0xff]   ;;  %v7879_v9 = vld [vmem:[#allocation6 + $0x164] ss:$16 sps:$4 sm:$0xff]  }
  0xa9   :  { %v7862_v10 = vld [vmem:[#allocation6 + $0x108] ss:$16 sps:$4 sm:$0xff]   ;;  %v7877_v11 = vld [vmem:[#allocation6 + $0x160] ss:$16 sps:$4 sm:$0xff]   ;;  %v7870_v12 = vld [vmem:[#allocation6 + $0x12c] ss:$16 sps:$4 sm:$0xff]  }
  0xaa   :  { %v7885_v13 = vld [vmem:[#allocation6 + $0x184] ss:$16 sps:$4 sm:$0xff]   ;;  %v7868_v14 = vld [vmem:[#allocation6 + $0x128] ss:$16 sps:$4 sm:$0xff]   ;;  %v7883_v15 = vld [vmem:[#allocation6 + $0x180] ss:$16 sps:$4 sm:$0xff]  }
  0xab   :  { %369 = vmatpush1.bf16.msra.mxu0 %v7782_v21  ;;  %412 = vmatpush1.bf16.msra.mxu1 %v7807_v34  ;;  %v7876_v16 = vld [vmem:[#allocation6 + $0x14c] ss:$16 sps:$4 sm:$0xff]   ;;  %v7891_v17 = vld [vmem:[#allocation6 + $0x1a4] ss:$16 sps:$4 sm:$0xff]   ;;  %v7874_v18 = vld [vmem:[#allocation6 + $0x148] ss:$16 sps:$4 sm:$0xff]  }
  0xac   :  { %370 = vmatprep.subr.bf16.mxu0 %v7783_v23  ;;  %413 = vmatprep.subr.bf16.mxu1 %v7808_v36  ;;  %v7889_v19 = vld [vmem:[#allocation6 + $0x1a0] ss:$16 sps:$4 sm:$0xff]   ;;  %v7882_v20 = vld [vmem:[#allocation6 + $0x16c] ss:$16 sps:$4 sm:$0xff]   ;;  %v7880_v21 = vld [vmem:[#allocation6 + $0x168] ss:$16 sps:$4 sm:$0xff]   ;;  %v170_v36 = vlaneseq }
  0xad   :  { %v7888_v22 = vld [vmem:[#allocation6 + $0x18c] ss:$16 sps:$4 sm:$0xff]   ;;  %v7886_v23 = vld [vmem:[#allocation6 + $0x188] ss:$16 sps:$4 sm:$0xff]   ;;  %v7897_v26 = vld [vmem:[#allocation6 + $0x1c4] ss:$16 sps:$4 sm:$0xff]  }
  0xae   :  { %v7894_v24 = vld [vmem:[#allocation6 + $0x1ac] ss:$16 sps:$4 sm:$0xff]   ;;  %v7903_v30 = vld [vmem:[#allocation6 + $0x1e4] ss:$16 sps:$4 sm:$0xff]   ;;  %v7901_v32 = vld [vmem:[#allocation6 + $0x1e0] ss:$16 sps:$4 sm:$0xff]  }
  0xaf   :  { %371 = vmatpush1.bf16.msra.mxu0 %v7785_v25  ;;  %414 = vmatpush1.bf16.msra.mxu1 %v7810_v38  ;;  %v7892_v25 = vld [vmem:[#allocation6 + $0x1a8] ss:$16 sps:$4 sm:$0xff]   ;;  %v7900_v27 = vld [vmem:[#allocation6 + $0x1cc] ss:$16 sps:$4 sm:$0xff]   ;;  %v7909_v34 = vld [vmem:[#allocation6 + $0x204] ss:$16 sps:$4 sm:$0xff]  }
  0xb0   :  { %1244 = vmatprep.subr.bf16.mxu0 %v7813_v28  ;;  %1330 = vmatprep.subr.bf16.mxu1 %v7816_v40  ;;  %v7895_v28 = vld [vmem:[#allocation6 + $0x1c0] ss:$16 sps:$4 sm:$0xff]  }
  0xb2   :  { %389 = vmatmul.mubr.bf16.vlgmr.msra.gmra.mrb[0].mxu0 %v7786_v29  ;;  %432 = vmatmul.mubr.bf16.vlgmr.msra.gmra.mrb[0].mxu1 %v7786_v29  ;;  %v7898_v29 = vld [vmem:[#allocation6 + $0x1c8] ss:$16 sps:$4 sm:$0xff]  }
  0xb3   :  { %1245 = vmatpush1.bf16.msra.mxu0 %v7811_v31  ;;  %1331 = vmatpush1.bf16.msra.mxu1 %v7814_v42  ;;  %v7906_v31 = vld [vmem:[#allocation6 + $0x1ec] ss:$16 sps:$4 sm:$0xff]  }
  0xb4   :  { %1246 = vmatprep.subr.bf16.mxu0 %v7819_v33  ;;  %1332 = vmatprep.subr.bf16.mxu1 %v7822_v44  ;;  %v7904_v33 = vld [vmem:[#allocation6 + $0x1e8] ss:$16 sps:$4 sm:$0xff]  }
  0xb7   :  { %1247 = vmatpush1.bf16.msra.mxu0 %v7817_v35  ;;  %1333 = vmatpush1.bf16.msra.mxu1 %v7820_v46  ;;  %v7912_v35 = vld [vmem:[#allocation6 + $0x20c] ss:$16 sps:$4 sm:$0xff]  }
  0xb8   :  { %1248 = vmatprep.subr.bf16.mxu0 %v7825_v37  ;;  %1334 = vmatprep.subr.bf16.mxu1 %v7828_v48  ;;  %v8494_v37 = vshrl.u32 %v170_v36, 7  ;;  %v7946_v36 = vld [vmem:[#allocation6 + $0x2c8] ss:$16 sps:$4 sm:$0xff]  }
  0xba   :  { %v8497_v38 = vsub.s32 0, %v8494_v37  ;;  %v8500_v40 = vsub.s32 1, %v8494_v37 }
  0xbb   :  { %1249 = vmatpush1.bf16.msra.mxu0 %v7823_v39  ;;  %1335 = vmatpush1.bf16.msra.mxu1 %v7826_v50  ;;  %v168_v39 = vld [vmem:[#allocation4] sm:$0xf] }
  0xbc   :  { %1250 = vmatprep.subr.bf16.mxu0 %v7831_v41  ;;  %1336 = vmatprep.subr.bf16.mxu1 %v7834_v52  ;;  %v173_v41 = vrot.slane %v168_v39, %v8497_v38  ;;  %v177_v42 = vrot.slane %v168_v39, %v8500_v40 }
  0xbf   :  { %1251 = vmatpush1.bf16.msra.mxu0 %v7829_v43  ;;  %1337 = vmatpush1.bf16.msra.mxu1 %v7832_v54 }
  0xc0   :  { %1252 = vmatprep.subr.bf16.mxu0 %v7837_v45  ;;  %1338 = vmatprep.subr.bf16.mxu1 %v7840_v56  ;;  %v8508_v56 = vsub.s32 3, %v8494_v37 }
  0xc3   :  { %1253 = vmatpush1.bf16.msra.mxu0 %v7835_v47  ;;  %1339 = vmatpush1.bf16.msra.mxu1 %v7838_v58 }
  0xc4   :  { %1254 = vmatprep.subr.bf16.mxu0 %v7843_v49  ;;  %1340 = vmatprep.subr.bf16.mxu1 %v7846_v59  ;;  %v7907_v59 = vld [vmem:[#allocation6 + $0x200] ss:$16 sps:$4 sm:$0xff]  }
  0xc7   :  { %1255 = vmatpush1.bf16.msra.mxu0 %v7841_v51  ;;  %1341 = vmatpush1.bf16.msra.mxu1 %v7844_v62  ;;  %v7918_v62 = vld [vmem:[#allocation6 + $0x22c] ss:$16 sps:$4 sm:$0xff]  }
  0xc8   :  { %1256 = vmatprep.subr.bf16.mxu0 %v7849_v53  ;;  %1342 = vmatprep.subr.bf16.mxu1 %v7852_v0  ;;  %v8505_v53 = vsub.s32 2, %v8494_v37  ;;  %v185_v0 = vrot.slane %v168_v39, %v8508_v56 }
  0xcb   :  { %1257 = vmatpush1.bf16.msra.mxu0 %v7847_v55  ;;  %1343 = vmatpush1.bf16.msra.mxu1 %v7850_v2  ;;  %v7916_v2 = vld [vmem:[#allocation6 + $0x228] ss:$16 sps:$4 sm:$0xff]  }
  0xcc   :  { %1258 = vmatprep.subr.bf16.mxu0 %v7855_v57  ;;  %1344 = vmatprep.subr.bf16.mxu1 %v7858_v4  ;;  %v7921_v4 = vld [vmem:[#allocation6 + $0x244] ss:$16 sps:$4 sm:$0xff]  }
  0xcf   :  { %1259 = vmatpush1.bf16.msra.mxu0 %v7853_v60  ;;  %1345 = vmatpush1.bf16.msra.mxu1 %v7856_v6  ;;  %v7910_v60 = vld [vmem:[#allocation6 + $0x208] ss:$16 sps:$4 sm:$0xff]  }
  0xd0   :  { %1260 = vmatprep.subr.bf16.mxu0 %v7861_v61  ;;  %1346 = vmatprep.subr.bf16.mxu1 %v7864_v8  ;;  %v7915_v61 = vld [vmem:[#allocation6 + $0x224] ss:$16 sps:$4 sm:$0xff]  }
  0xd3   :  { %1261 = vmatpush1.bf16.msra.mxu0 %v7859_v63  ;;  %1347 = vmatpush1.bf16.msra.mxu1 %v7862_v10  ;;  %v181_v63 = vrot.slane %v168_v39, %v8505_v53  ;;  %v7951_v39 = vld [vmem:[#allocation6 + $0x2e4] ss:$16 sps:$4 sm:$0xff]  }
  0xd4   :  { %1262 = vmatprep.subr.bf16.mxu0 %v7867_v1  ;;  %1348 = vmatprep.subr.bf16.mxu1 %v7870_v12  ;;  %v7913_v1 = vld [vmem:[#allocation6 + $0x220] ss:$16 sps:$4 sm:$0xff]  }
  0xd7   :  { %1263 = vmatpush1.bf16.msra.mxu0 %v7865_v3  ;;  %1349 = vmatpush1.bf16.msra.mxu1 %v7868_v14  ;;  %v7922_v14 = vld [vmem:[#allocation6 + $0x248] ss:$16 sps:$4 sm:$0xff]  }
  0xd8   :  { %1264 = vmatprep.subr.bf16.mxu0 %v7873_v5  ;;  %1350 = vmatprep.subr.bf16.mxu1 %v7876_v16  ;;  %v7924_v5 = vld [vmem:[#allocation6 + $0x24c] ss:$16 sps:$4 sm:$0xff]  }
  0xdb   :  { %1265 = vmatpush1.bf16.msra.mxu0 %v7871_v7  ;;  %1351 = vmatpush1.bf16.msra.mxu1 %v7874_v18  ;;  %v7930_v18 = vld [vmem:[#allocation6 + $0x26c] ss:$16 sps:$4 sm:$0xff]  }
  0xdc   :  { %1266 = vmatprep.subr.bf16.mxu0 %v7879_v9  ;;  %1352 = vmatprep.subr.bf16.mxu1 %v7882_v20 }
  0xdf   :  { %1267 = vmatpush1.bf16.msra.mxu0 %v7877_v11  ;;  %1353 = vmatpush1.bf16.msra.mxu1 %v7880_v21 }
  0xe0   :  { %1268 = vmatprep.subr.bf16.mxu0 %v7885_v13  ;;  %1354 = vmatprep.subr.bf16.mxu1 %v7888_v22  ;;  %v7919_v13 = vld [vmem:[#allocation6 + $0x240] ss:$16 sps:$4 sm:$0xff]  }
  0xe1   :  { %v7925_v22 = vld [vmem:[#allocation6 + $0x260] ss:$16 sps:$4 sm:$0xff]  }
  0xe3   :  { %1269 = vmatpush1.bf16.msra.mxu0 %v7883_v15  ;;  %1355 = vmatpush1.bf16.msra.mxu1 %v7886_v23  ;;  %v7928_v23 = vld [vmem:[#allocation6 + $0x268] ss:$16 sps:$4 sm:$0xff]  }
  0xe4   :  { %1270 = vmatprep.subr.bf16.mxu0 %v7891_v17  ;;  %1356 = vmatprep.subr.bf16.mxu1 %v7894_v24  ;;  %v7927_v17 = vld [vmem:[#allocation6 + $0x264] ss:$16 sps:$4 sm:$0xff]  }
  0xe7   :  { %1271 = vmatpush1.bf16.msra.mxu0 %v7889_v19  ;;  %1357 = vmatpush1.bf16.msra.mxu1 %v7892_v25  ;;  %v7933_v25 = vld [vmem:[#allocation6 + $0x284] ss:$16 sps:$4 sm:$0xff]  }
  0xe8   :  { %1272 = vmatprep.subr.bf16.mxu0 %v7897_v26  ;;  %1358 = vmatprep.subr.bf16.mxu1 %v7900_v27  ;;  %v7936_v26 = vld [vmem:[#allocation6 + $0x28c] ss:$16 sps:$4 sm:$0xff]   ;;  %v7931_v27 = vld [vmem:[#allocation6 + $0x280] ss:$16 sps:$4 sm:$0xff]  }
  0xeb   :  { %1273 = vmatpush1.bf16.msra.mxu0 %v7895_v28  ;;  %1359 = vmatpush1.bf16.msra.mxu1 %v7898_v29  ;;  %v7934_v28 = vld [vmem:[#allocation6 + $0x288] ss:$16 sps:$4 sm:$0xff]   ;;  %v7939_v29 = vld [vmem:[#allocation6 + $0x2a4] ss:$16 sps:$4 sm:$0xff]  }
  0xec   :  { %1274 = vmatprep.subr.bf16.mxu0 %v7903_v30  ;;  %1360 = vmatprep.subr.bf16.mxu1 %v7906_v31  ;;  %v7942_v30 = vld [vmem:[#allocation6 + $0x2ac] ss:$16 sps:$4 sm:$0xff]   ;;  %v7937_v31 = vld [vmem:[#allocation6 + $0x2a0] ss:$16 sps:$4 sm:$0xff]  }
  0xef   :  { %1275 = vmatpush1.bf16.msra.mxu0 %v7901_v32  ;;  %1361 = vmatpush1.bf16.msra.mxu1 %v7904_v33  ;;  %v7940_v32 = vld [vmem:[#allocation6 + $0x2a8] ss:$16 sps:$4 sm:$0xff]   ;;  %v7945_v33 = vld [vmem:[#allocation6 + $0x2c4] ss:$16 sps:$4 sm:$0xff]  }
  0xf0   :  { %1287 = vmatprep.subr.bf16.mxu0 %v7909_v34  ;;  %1373 = vmatprep.subr.bf16.mxu1 %v7912_v35  ;;  %v7948_v34 = vld [vmem:[#allocation6 + $0x2cc] ss:$16 sps:$4 sm:$0xff]   ;;  %v7943_v35 = vld [vmem:[#allocation6 + $0x2c0] ss:$16 sps:$4 sm:$0xff]  }
 0x185   :  { %v390_v43 = vpop.f32.mrb[0].mxu0  ;;  %v433_v3 = vpop.f32.mrb[0].mxu1 }
 0x186   :  { %v391_v44 = vadd.f32 %v390_v43, %v173_v41  ;;  %v392_v45 = vpop.f32.mrb[1].mxu0  ;;  %v434_v6 = vadd.f32 %v433_v3, %v181_v63  ;;  %v435_v7 = vpop.f32.mrb[1].mxu1  ;;  %v7952_v43 = vld [vmem:[#allocation6 + $0x2e8] ss:$16 sps:$4 sm:$0xff]   ;;  %v7990_v3 = vld [vmem:[#allocation6 + $0x3ac] ss:$16 sps:$4 sm:$0xff]  }
 0x187   :  { %v393_v46 = vadd.f32 %v392_v45, %v177_v42  ;;  %v394_v47 = vpop.f32.mrb[2].mxu0  ;;  %v436_v8 = vadd.f32 %v435_v7, %v185_v0  ;;  %v437_v9 = vpop.f32.mrb[2].mxu1  ;;  %v7960_v45 = vld [vmem:[#allocation6 + $0x30c] ss:$16 sps:$4 sm:$0xff]  }
 0x188   :  { %v395_v48 = vadd.f32 %v394_v47, %v173_v41  ;;  %v396_v49 = vpop.f32.mrb[3].mxu0  ;;  %v442_v51 = vmax.f32 %v391_v44, 0.0  ;;  %v444_v10 = vmax.f32 %v434_v6, 0.0  ;;  %v438_v11 = vadd.f32 %v437_v9, %v181_v63  ;;  %v439_v12 = vpop.f32.mrb[3].mxu1  ;;  %v7954_v41 = vld [vmem:[#allocation6 + $0x2ec] ss:$16 sps:$4 sm:$0xff]  }
 0x189   :  { %v397_v50 = vadd.f32 %v396_v49, %v177_v42  ;;  %v443_v54 = vmax.f32 %v393_v46, 0.0  ;;  %v445_v15 = vmax.f32 %v436_v8, 0.0  ;;  %v440_v16 = vadd.f32 %v439_v12, %v185_v0  ;;  %v7949_v42 = vld [vmem:[#allocation6 + $0x2e0] ss:$16 sps:$4 sm:$0xff]   ;;  %v7957_v44 = vld [vmem:[#allocation6 + $0x304] ss:$16 sps:$4 sm:$0xff]  }
 0x18a   :  { %v446_v52 = vmax.f32 %v395_v48, 0.0  ;;  %v448_v19 = vmax.f32 %v438_v11, 0.0  ;;  %v7955_v46 = vld [vmem:[#allocation6 + $0x300] ss:$16 sps:$4 sm:$0xff]   ;;  %v7958_v47 = vld [vmem:[#allocation6 + $0x308] ss:$16 sps:$4 sm:$0xff]  }
 0x18b   :  { %v447_v55 = vmax.f32 %v397_v50, 0.0  ;;  %v449_v20 = vmax.f32 %v440_v16, 0.0  ;;  %v7963_v48 = vld [vmem:[#allocation6 + $0x324] ss:$16 sps:$4 sm:$0xff]   ;;  %v7966_v49 = vld [vmem:[#allocation6 + $0x32c] ss:$16 sps:$4 sm:$0xff]  }
 0x18c   :  { %v450_v57 = vpack.c.bf16 %v446_v52, %v442_v51  ;;  %v8512_v21 = vpack.c.bf16 %v448_v19, %v444_v10  ;;  %v7961_v50 = vld [vmem:[#allocation6 + $0x320] ss:$16 sps:$4 sm:$0xff]   ;;  %v7964_v51 = vld [vmem:[#allocation6 + $0x328] ss:$16 sps:$4 sm:$0xff]   ;;  %v7969_v52 = vld [vmem:[#allocation6 + $0x344] ss:$16 sps:$4 sm:$0xff]  }
 0x18d   :  { %v451_v58 = vpack.c.bf16 %v447_v55, %v443_v54  ;;  %v453_v24 = vpack.c.bf16 %v449_v20, %v445_v15  ;;  %v7972_v54 = vld [vmem:[#allocation6 + $0x34c] ss:$16 sps:$4 sm:$0xff]   ;;  %v7967_v55 = vld [vmem:[#allocation6 + $0x340] ss:$16 sps:$4 sm:$0xff]   ;;  %v7993_v6 = vld [vmem:[#allocation6 + $0x3c4] ss:$16 sps:$4 sm:$0xff]  }
 0x18e   :  { %v7984_v63 = vld [vmem:[#allocation6 + $0x38c] ss:$16 sps:$4 sm:$0xff]   ;;  %v7979_v0 = vld [vmem:[#allocation6 + $0x380] ss:$16 sps:$4 sm:$0xff]   ;;  %v7994_v9 = vld [vmem:[#allocation6 + $0x3c8] ss:$16 sps:$4 sm:$0xff]  }
 0x18f   :  { %1276 = vmatprep.mubr.bf16.mxu0 %v451_v58  ;;  %1362 = vmatprep.mubr.bf16.mxu1 %v451_v58  ;;  %v7975_v58 = vld [vmem:[#allocation6 + $0x364] ss:$16 sps:$4 sm:$0xff]   ;;  %v7996_v7 = vld [vmem:[#allocation6 + $0x3cc] ss:$16 sps:$4 sm:$0xff]   ;;  %v7991_v8 = vld [vmem:[#allocation6 + $0x3c0] ss:$16 sps:$4 sm:$0xff]  }
 0x190   :  { %1277 = vmatmul.mubr.bf16.vlgmr.msra.gmra.mrb[4].mxu0 %v450_v57  ;;  %1363 = vmatmul.mubr.bf16.vlgmr.msra.gmra.mrb[4].mxu1 %v450_v57  ;;  %v7970_v57 = vld [vmem:[#allocation6 + $0x348] ss:$16 sps:$4 sm:$0xff]   ;;  %v7999_v10 = vld [vmem:[#allocation6 + $0x3e4] ss:$16 sps:$4 sm:$0xff]   ;;  %v8002_v11 = vld [vmem:[#allocation6 + $0x3ec] ss:$16 sps:$4 sm:$0xff]  }
 0x191   :  { %1288 = vmatpush1.bf16.msra.mxu0 %v7907_v59  ;;  %1374 = vmatpush1.bf16.msra.mxu1 %v7910_v60  ;;  %v7978_v59 = vld [vmem:[#allocation6 + $0x36c] ss:$16 sps:$4 sm:$0xff]   ;;  %v7973_v60 = vld [vmem:[#allocation6 + $0x360] ss:$16 sps:$4 sm:$0xff]   ;;  %v1428_v12 = vld [vmem:[#allocation9] sm:$0xff] }
 0x192   :  { %1289 = vmatprep.subr.bf16.mxu0 %v7915_v61  ;;  %1375 = vmatprep.subr.bf16.mxu1 %v7918_v62  ;;  %v7976_v61 = vld [vmem:[#allocation6 + $0x368] ss:$16 sps:$4 sm:$0xff]   ;;  %v7981_v62 = vld [vmem:[#allocation6 + $0x384] ss:$16 sps:$4 sm:$0xff]   ;;  %v1437_v15 = vld [vmem:[#allocation9 + $0x48] sm:$0xff] }
 0x193   :  { %1319 = vmatprep.mubr.bf16.mxu0 %v453_v24  ;;  %1405 = vmatprep.mubr.bf16.mxu1 %v453_v24  ;;  %v7997_v16 = vld [vmem:[#allocation6 + $0x3e0] ss:$16 sps:$4 sm:$0xff]   ;;  %v1444_v20 = vld [vmem:[#allocation9 + $0x80] sm:$0xff] }
 0x194   :  { %v1453_v24 = vld [vmem:[#allocation9 + $0xc8] sm:$0xff] }
 0x195   :  { %1290 = vmatpush1.bf16.msra.mxu0 %v7913_v1  ;;  %1376 = vmatpush1.bf16.msra.mxu1 %v7916_v2  ;;  %v7982_v1 = vld [vmem:[#allocation6 + $0x388] ss:$16 sps:$4 sm:$0xff]   ;;  %v7987_v2 = vld [vmem:[#allocation6 + $0x3a4] ss:$16 sps:$4 sm:$0xff]  }
 0x196   :  { %1291 = vmatprep.subr.bf16.mxu0 %v7921_v4  ;;  %1377 = vmatprep.subr.bf16.mxu1 %v7924_v5  ;;  %v7985_v4 = vld [vmem:[#allocation6 + $0x3a0] ss:$16 sps:$4 sm:$0xff]   ;;  %v7988_v5 = vld [vmem:[#allocation6 + $0x3a8] ss:$16 sps:$4 sm:$0xff]  }
 0x199   :  { %1292 = vmatpush1.bf16.msra.mxu0 %v7919_v13  ;;  %1378 = vmatpush1.bf16.msra.mxu1 %v7922_v14  ;;  %v1436_v13 = vld [vmem:[#allocation9 + $0x40] sm:$0xff]  ;;  %v1429_v14 = vld [vmem:[#allocation9 + $0x8] sm:$0xff] }
 0x19a   :  { %1293 = vmatprep.subr.bf16.mxu0 %v7927_v17  ;;  %1379 = vmatprep.subr.bf16.mxu1 %v7930_v18  ;;  %v8000_v17 = vld [vmem:[#allocation6 + $0x3e8] ss:$16 sps:$4 sm:$0xff]   ;;  %v6852_v18 = vcombine.high %v1428_v12, %v1436_v13  ;;  %v6854_v19 = vcombine.high %v1429_v14, %v1437_v15 }
 0x19d   :  { %1294 = vmatpush1.bf16.msra.mxu0 %v7925_v22  ;;  %1380 = vmatpush1.bf16.msra.mxu1 %v7928_v23  ;;  %v1452_v22 = vld [vmem:[#allocation9 + $0xc0] sm:$0xff]  ;;  %v1445_v23 = vld [vmem:[#allocation9 + $0x88] sm:$0xff] }
 0x19e   :  { %1295 = vmatprep.subr.bf16.mxu0 %v7933_v25  ;;  %1381 = vmatprep.subr.bf16.mxu1 %v7936_v26  ;;  %v6851_v25 = vcombine.low %v1428_v12, %v1436_v13  ;;  %v6853_v26 = vcombine.low %v1429_v14, %v1437_v15  ;;  %v1549_v12 = vld [vmem:[#allocation9 + $0x3c8] sm:$0xff] }
 0x1a1   :  { %1296 = vmatpush1.bf16.msra.mxu0 %v7931_v27  ;;  %1382 = vmatpush1.bf16.msra.mxu1 %v7934_v28  ;;  %v6868_v27 = vcombine.high %v1444_v20, %v1452_v22  ;;  %v6870_v28 = vcombine.high %v1445_v23, %v1453_v24 }
 0x1a2   :  { %1297 = vmatprep.subr.bf16.mxu0 %v7939_v29  ;;  %1383 = vmatprep.subr.bf16.mxu1 %v7942_v30  ;;  %v1460_v29 = vld [vmem:[#allocation9 + $0x100] sm:$0xff] }
 0x1a3   :  { %v1468_v30 = vld [vmem:[#allocation9 + $0x140] sm:$0xff] }
 0x1a5   :  { %1298 = vmatpush1.bf16.msra.mxu0 %v7937_v31  ;;  %1384 = vmatpush1.bf16.msra.mxu1 %v7940_v32  ;;  %v1461_v31 = vld [vmem:[#allocation9 + $0x108] sm:$0xff] }
 0x1a6   :  { %1299 = vmatprep.subr.bf16.mxu0 %v7945_v33  ;;  %1385 = vmatprep.subr.bf16.mxu1 %v7948_v34  ;;  %v1469_v32 = vld [vmem:[#allocation9 + $0x148] sm:$0xff]  ;;  %v6867_v33 = vcombine.low %v1444_v20, %v1452_v22  ;;  %v6869_v34 = vcombine.low %v1445_v23, %v1453_v24 }
 0x1a7   :  { %v1565_v20 = vld [vmem:[#allocation9 + $0x448] sm:$0xff] }
 0x1a9   :  { %1300 = vmatpush1.bf16.msra.mxu0 %v7943_v35  ;;  %1386 = vmatpush1.bf16.msra.mxu1 %v7946_v36  ;;  %v6884_v35 = vcombine.high %v1460_v29, %v1468_v30  ;;  %v6886_v36 = vcombine.high %v1461_v31, %v1469_v32 }
 0x1aa   :  { %1301 = vmatprep.subr.bf16.mxu0 %v7951_v39  ;;  %1387 = vmatprep.subr.bf16.mxu1 %v7954_v41  ;;  %v1476_v39 = vld [vmem:[#allocation9 + $0x180] sm:$0xff] }
 0x1ab   :  { %v1484_v41 = vld [vmem:[#allocation9 + $0x1c0] sm:$0xff] }
 0x1ad   :  { %1302 = vmatpush1.bf16.msra.mxu0 %v7949_v42  ;;  %1388 = vmatpush1.bf16.msra.mxu1 %v7952_v43  ;;  %v1477_v42 = vld [vmem:[#allocation9 + $0x188] sm:$0xff] }
 0x1ae   :  { %1303 = vmatprep.subr.bf16.mxu0 %v7957_v44  ;;  %1389 = vmatprep.subr.bf16.mxu1 %v7960_v45  ;;  %v1485_v43 = vld [vmem:[#allocation9 + $0x1c8] sm:$0xff]  ;;  %v6883_v44 = vcombine.low %v1460_v29, %v1468_v30  ;;  %v6885_v45 = vcombine.low %v1461_v31, %v1469_v32 }
 0x1af   :  { %v1581_v29 = vld [vmem:[#allocation9 + $0x4c8] sm:$0xff] }
 0x1b1   :  { %1304 = vmatpush1.bf16.msra.mxu0 %v7955_v46  ;;  %1390 = vmatpush1.bf16.msra.mxu1 %v7958_v47  ;;  %v6900_v46 = vcombine.high %v1476_v39, %v1484_v41  ;;  %v1492_v47 = vld [vmem:[#allocation9 + $0x200] sm:$0xff] }
 0x1b2   :  { %1305 = vmatprep.subr.bf16.mxu0 %v7963_v48  ;;  %1391 = vmatprep.subr.bf16.mxu1 %v7966_v49  ;;  %v1500_v48 = vld [vmem:[#allocation9 + $0x240] sm:$0xff]  ;;  %v1493_v49 = vld [vmem:[#allocation9 + $0x208] sm:$0xff] }
 0x1b5   :  { %1306 = vmatpush1.bf16.msra.mxu0 %v7961_v50  ;;  %1392 = vmatpush1.bf16.msra.mxu1 %v7964_v51  ;;  %v1501_v50 = vld [vmem:[#allocation9 + $0x248] sm:$0xff]  ;;  %v6899_v51 = vcombine.low %v1476_v39, %v1484_v41 }
 0x1b6   :  { %1307 = vmatprep.subr.bf16.mxu0 %v7969_v52  ;;  %1393 = vmatprep.subr.bf16.mxu1 %v7972_v54  ;;  %v6901_v52 = vcombine.low %v1477_v42, %v1485_v43  ;;  %v6916_v54 = vcombine.high %v1492_v47, %v1500_v48  ;;  %v1597_v39 = vld [vmem:[#allocation9 + $0x548] sm:$0xff] }
 0x1b9   :  { %1308 = vmatpush1.bf16.msra.mxu0 %v7967_v55  ;;  %1394 = vmatpush1.bf16.msra.mxu1 %v7970_v57  ;;  %v6918_v55 = vcombine.high %v1493_v49, %v1501_v50  ;;  %v1508_v57 = vld [vmem:[#allocation9 + $0x280] sm:$0xff] }
 0x1ba   :  { %1309 = vmatprep.subr.bf16.mxu0 %v7975_v58  ;;  %1395 = vmatprep.subr.bf16.mxu1 %v7978_v59  ;;  %v1516_v58 = vld [vmem:[#allocation9 + $0x2c0] sm:$0xff]  ;;  %v1509_v59 = vld [vmem:[#allocation9 + $0x288] sm:$0xff] }
 0x1bd   :  { %1310 = vmatpush1.bf16.msra.mxu0 %v7973_v60  ;;  %1396 = vmatpush1.bf16.msra.mxu1 %v7976_v61  ;;  %v1517_v60 = vld [vmem:[#allocation9 + $0x2c8] sm:$0xff]  ;;  %v6915_v61 = vcombine.low %v1492_v47, %v1500_v48 }
 0x1be   :  { %1311 = vmatprep.subr.bf16.mxu0 %v7981_v62  ;;  %1397 = vmatprep.subr.bf16.mxu1 %v7984_v63  ;;  %v6917_v62 = vcombine.low %v1493_v49, %v1501_v50  ;;  %v6932_v63 = vcombine.high %v1508_v57, %v1516_v58  ;;  %v1613_v47 = vld [vmem:[#allocation9 + $0x5c8] sm:$0xff] }
 0x1c1   :  { %1312 = vmatpush1.bf16.msra.mxu0 %v7979_v0  ;;  %1398 = vmatpush1.bf16.msra.mxu1 %v7982_v1  ;;  %v6934_v0 = vcombine.high %v1509_v59, %v1517_v60  ;;  %v1524_v1 = vld [vmem:[#allocation9 + $0x300] sm:$0xff] }
 0x1c2   :  { %1313 = vmatprep.subr.bf16.mxu0 %v7987_v2  ;;  %1399 = vmatprep.subr.bf16.mxu1 %v7990_v3  ;;  %v1532_v2 = vld [vmem:[#allocation9 + $0x340] sm:$0xff]  ;;  %v1525_v3 = vld [vmem:[#allocation9 + $0x308] sm:$0xff] }
 0x1c3   :  { %v6947_v13 = vcombine.low %v1524_v1, %v1532_v2 }
 0x1c5   :  { %1314 = vmatpush1.bf16.msra.mxu0 %v7985_v4  ;;  %1400 = vmatpush1.bf16.msra.mxu1 %v7988_v5  ;;  %v1533_v4 = vld [vmem:[#allocation9 + $0x348] sm:$0xff]  ;;  %v6931_v5 = vcombine.low %v1508_v57, %v1516_v58 }
 0x1c6   :  { %1315 = vmatprep.subr.bf16.mxu0 %v7993_v6  ;;  %1401 = vmatprep.subr.bf16.mxu1 %v7996_v7  ;;  %v6933_v6 = vcombine.low %v1509_v59, %v1517_v60  ;;  %v6948_v7 = vcombine.high %v1524_v1, %v1532_v2  ;;  %v6949_v14 = vcombine.low %v1525_v3, %v1533_v4  ;;  %v1629_v57 = vld [vmem:[#allocation9 + $0x648] sm:$0xff] }
 0x1c7   :  { %v1645_v1 = vld [vmem:[#allocation9 + $0x6c8] sm:$0xff] }
 0x1c9   :  { %1316 = vmatpush1.bf16.msra.mxu0 %v7991_v8  ;;  %1402 = vmatpush1.bf16.msra.mxu1 %v7994_v9  ;;  %v6950_v8 = vcombine.high %v1525_v3, %v1533_v4  ;;  %v1540_v9 = vld [vmem:[#allocation9 + $0x380] sm:$0xff] }
 0x1ca   :  { %1317 = vmatprep.subr.bf16.mxu0 %v7999_v10  ;;  %1403 = vmatprep.subr.bf16.mxu1 %v8002_v11  ;;  %v1548_v10 = vld [vmem:[#allocation9 + $0x3c0] sm:$0xff]  ;;  %v1541_v11 = vld [vmem:[#allocation9 + $0x388] sm:$0xff] }
 0x1cb   :  { %v6964_v15 = vcombine.high %v1540_v9, %v1548_v10  ;;  %v6963_v22 = vcombine.low %v1540_v9, %v1548_v10  ;;  %v6965_v23 = vcombine.low %v1541_v11, %v1549_v12  ;;  %v1660_v9 = vld [vmem:[#allocation9 + $0x740] sm:$0xff]  ;;  %v1653_v10 = vld [vmem:[#allocation9 + $0x708] sm:$0xff] }
 0x1cd   :  { %1318 = vmatpush1.bf16.msra.mxu0 %v7997_v16  ;;  %1404 = vmatpush1.bf16.msra.mxu1 %v8000_v17  ;;  %v6966_v16 = vcombine.high %v1541_v11, %v1549_v12  ;;  %v1556_v17 = vld [vmem:[#allocation9 + $0x400] sm:$0xff]  ;;  %v1661_v12 = vld [vmem:[#allocation9 + $0x748] sm:$0xff] }
 0x1ce   :  { %4584 = vmatprep.subr.bf16.mxu0 %v6852_v18  ;;  %4670 = vmatprep.subr.bf16.mxu1 %v6854_v19  ;;  %v1564_v18 = vld [vmem:[#allocation9 + $0x440] sm:$0xff]  ;;  %v1557_v19 = vld [vmem:[#allocation9 + $0x408] sm:$0xff] }
 0x1cf   :  { %v6980_v24 = vcombine.high %v1556_v17, %v1564_v18  ;;  %v6979_v30 = vcombine.low %v1556_v17, %v1564_v18  ;;  %v6981_v31 = vcombine.low %v1557_v19, %v1565_v20  ;;  %v1676_v17 = vld [vmem:[#allocation9 + $0x7c0] sm:$0xff]  ;;  %v1669_v18 = vld [vmem:[#allocation9 + $0x788] sm:$0xff] }
 0x1d0   :  { %1320 = vmatmul.mubr.bf16.vlgmr.msra.gmra.mrb[4].mxu0 %v8512_v21  ;;  %1406 = vmatmul.mubr.bf16.vlgmr.msra.gmra.mrb[4].mxu1 %v8512_v21  ;;  %v6902_v21 = vcombine.high %v1477_v42, %v1485_v43 }
 0x1d1   :  { %4585 = vmatpush1.bf16.msra.mxu0 %v6851_v25  ;;  %4671 = vmatpush1.bf16.msra.mxu1 %v6853_v26  ;;  %v6982_v25 = vcombine.high %v1557_v19, %v1565_v20  ;;  %v1572_v26 = vld [vmem:[#allocation9 + $0x480] sm:$0xff]  ;;  %v1677_v20 = vld [vmem:[#allocation9 + $0x7c8] sm:$0xff] }
 0x1d2   :  { %4586 = vmatprep.subr.bf16.mxu0 %v6868_v27  ;;  %4672 = vmatprep.subr.bf16.mxu1 %v6870_v28  ;;  %v1580_v27 = vld [vmem:[#allocation9 + $0x4c0] sm:$0xff]  ;;  %v1573_v28 = vld [vmem:[#allocation9 + $0x488] sm:$0xff] }
 0x1d3   :  { %v6996_v32 = vcombine.high %v1572_v26, %v1580_v27  ;;  %v6995_v41 = vcombine.low %v1572_v26, %v1580_v27  ;;  %v6997_v42 = vcombine.low %v1573_v28, %v1581_v29  ;;  %v1692_v26 = vld [vmem:[#allocation9 + $0x840] sm:$0xff]  ;;  %v1685_v27 = vld [vmem:[#allocation9 + $0x808] sm:$0xff] }
 0x1d5   :  { %4587 = vmatpush1.bf16.msra.mxu0 %v6867_v33  ;;  %4673 = vmatpush1.bf16.msra.mxu1 %v6869_v34  ;;  %v6998_v33 = vcombine.high %v1573_v28, %v1581_v29  ;;  %v1588_v34 = vld [vmem:[#allocation9 + $0x500] sm:$0xff]  ;;  %v1693_v29 = vld [vmem:[#allocation9 + $0x848] sm:$0xff] }
 0x1d6   :  { %4588 = vmatprep.subr.bf16.mxu0 %v6884_v35  ;;  %4674 = vmatprep.subr.bf16.mxu1 %v6886_v36  ;;  %v1596_v35 = vld [vmem:[#allocation9 + $0x540] sm:$0xff]  ;;  %v1589_v36 = vld [vmem:[#allocation9 + $0x508] sm:$0xff] }
 0x1d7   :  { %v7012_v43 = vcombine.high %v1588_v34, %v1596_v35  ;;  %v7011_v48 = vcombine.low %v1588_v34, %v1596_v35  ;;  %v7013_v49 = vcombine.low %v1589_v36, %v1597_v39 }
 0x1d9   :  { %4589 = vmatpush1.bf16.msra.mxu0 %v6883_v44  ;;  %4675 = vmatpush1.bf16.msra.mxu1 %v6885_v45  ;;  %v7014_v44 = vcombine.high %v1589_v36, %v1597_v39  ;;  %v1604_v45 = vld [vmem:[#allocation9 + $0x580] sm:$0xff] }
 0x1da   :  { %4590 = vmatprep.subr.bf16.mxu0 %v6900_v46  ;;  %4676 = vmatprep.subr.bf16.mxu1 %v6902_v21  ;;  %v1612_v46 = vld [vmem:[#allocation9 + $0x5c0] sm:$0xff]  ;;  %v1605_v21 = vld [vmem:[#allocation9 + $0x588] sm:$0xff] }
 0x1db   :  { %v7028_v50 = vcombine.high %v1604_v45, %v1612_v46  ;;  %v7027_v58 = vcombine.low %v1604_v45, %v1612_v46  ;;  %v7029_v59 = vcombine.low %v1605_v21, %v1613_v47 }
 0x1dd   :  { %4591 = vmatpush1.bf16.msra.mxu0 %v6899_v51  ;;  %4677 = vmatpush1.bf16.msra.mxu1 %v6901_v52  ;;  %v7030_v51 = vcombine.high %v1605_v21, %v1613_v47  ;;  %v1620_v52 = vld [vmem:[#allocation9 + $0x600] sm:$0xff] }
 0x1de   :  { %4592 = vmatprep.subr.bf16.mxu0 %v6916_v54  ;;  %4678 = vmatprep.subr.bf16.mxu1 %v6918_v55  ;;  %v1628_v54 = vld [vmem:[#allocation9 + $0x640] sm:$0xff]  ;;  %v1621_v55 = vld [vmem:[#allocation9 + $0x608] sm:$0xff] }
 0x1df   :  { %v7044_v60 = vcombine.high %v1620_v52, %v1628_v54  ;;  %v7043_v2 = vcombine.low %v1620_v52, %v1628_v54  ;;  %v7045_v3 = vcombine.low %v1621_v55, %v1629_v57 }
 0x1e1   :  { %4593 = vmatpush1.bf16.msra.mxu0 %v6915_v61  ;;  %4679 = vmatpush1.bf16.msra.mxu1 %v6917_v62  ;;  %v7046_v61 = vcombine.high %v1621_v55, %v1629_v57  ;;  %v1636_v62 = vld [vmem:[#allocation9 + $0x680] sm:$0xff] }
 0x1e2   :  { %4594 = vmatprep.subr.bf16.mxu0 %v6932_v63  ;;  %4680 = vmatprep.subr.bf16.mxu1 %v6934_v0  ;;  %v1644_v63 = vld [vmem:[#allocation9 + $0x6c0] sm:$0xff]  ;;  %v1637_v0 = vld [vmem:[#allocation9 + $0x688] sm:$0xff] }
 0x1e3   :  { %v7060_v4 = vcombine.high %v1636_v62, %v1644_v63 }
 0x1e5   :  { %4595 = vmatpush1.bf16.msra.mxu0 %v6931_v5  ;;  %4681 = vmatpush1.bf16.msra.mxu1 %v6933_v6  ;;  %v7062_v5 = vcombine.high %v1637_v0, %v1645_v1  ;;  %v7059_v6 = vcombine.low %v1636_v62, %v1644_v63 }
 0x1e6   :  { %4596 = vmatprep.subr.bf16.mxu0 %v6948_v7  ;;  %4682 = vmatprep.subr.bf16.mxu1 %v6950_v8  ;;  %v7061_v7 = vcombine.low %v1637_v0, %v1645_v1  ;;  %v1652_v8 = vld [vmem:[#allocation9 + $0x700] sm:$0xff] }
 0x1e7   :  { %v7076_v11 = vcombine.high %v1652_v8, %v1660_v9 }
 0x1e9   :  { %4597 = vmatpush1.bf16.msra.mxu0 %v6947_v13  ;;  %4683 = vmatpush1.bf16.msra.mxu1 %v6949_v14  ;;  %v7075_v13 = vcombine.low %v1652_v8, %v1660_v9  ;;  %v7077_v14 = vcombine.low %v1653_v10, %v1661_v12 }
 0x1ea   :  { %4598 = vmatprep.subr.bf16.mxu0 %v6964_v15  ;;  %4684 = vmatprep.subr.bf16.mxu1 %v6966_v16  ;;  %v7078_v15 = vcombine.high %v1653_v10, %v1661_v12  ;;  %v1668_v16 = vld [vmem:[#allocation9 + $0x780] sm:$0xff] }
 0x1eb   :  { %v7092_v19 = vcombine.high %v1668_v16, %v1676_v17  ;;  %v1716_v10 = vld [vmem:[#allocation9 + $0x900] sm:$0xff] }
 0x1ed   :  { %4599 = vmatpush1.bf16.msra.mxu0 %v6963_v22  ;;  %4685 = vmatpush1.bf16.msra.mxu1 %v6965_v23  ;;  %v7091_v22 = vcombine.low %v1668_v16, %v1676_v17  ;;  %v7093_v23 = vcombine.low %v1669_v18, %v1677_v20 }
 0x1ee   :  { %4600 = vmatprep.subr.bf16.mxu0 %v6980_v24  ;;  %4686 = vmatprep.subr.bf16.mxu1 %v6982_v25  ;;  %v7094_v24 = vcombine.high %v1669_v18, %v1677_v20  ;;  %v1684_v25 = vld [vmem:[#allocation9 + $0x800] sm:$0xff] }
 0x1ef   :  { %v7108_v28 = vcombine.high %v1684_v25, %v1692_v26  ;;  %v1732_v20 = vld [vmem:[#allocation9 + $0x980] sm:$0xff] }
 0x1f1   :  { %4601 = vmatpush1.bf16.msra.mxu0 %v6979_v30  ;;  %4687 = vmatpush1.bf16.msra.mxu1 %v6981_v31  ;;  %v7107_v30 = vcombine.low %v1684_v25, %v1692_v26  ;;  %v7109_v31 = vcombine.low %v1685_v27, %v1693_v29 }
 0x1f2   :  { %4602 = vmatprep.subr.bf16.mxu0 %v6996_v32  ;;  %4688 = vmatprep.subr.bf16.mxu1 %v6998_v33  ;;  %v7110_v32 = vcombine.high %v1685_v27, %v1693_v29  ;;  %v582_v33 = vld [vmem:[#allocation7] sm:$0xf]  ;;  %v1748_v29 = vld [vmem:[#allocation9 + $0xa00] sm:$0xff] }
 0x1f3   :  { %v587_v34 = vrot.slane %v582_v33, %v8497_v38  ;;  %v595_v35 = vrot.slane %v582_v33, %v8505_v53  ;;  %v591_v36 = vrot.slane %v582_v33, %v8500_v40  ;;  %v599_v39 = vrot.slane %v582_v33, %v8508_v56 }
 0x1f5   :  { %4603 = vmatpush1.bf16.msra.mxu0 %v6995_v41  ;;  %4689 = vmatpush1.bf16.msra.mxu1 %v6997_v42 }
 0x1f6   :  { %4604 = vmatprep.subr.bf16.mxu0 %v7012_v43  ;;  %4690 = vmatprep.subr.bf16.mxu1 %v7014_v44 }
 0x1f9   :  { %4605 = vmatpush1.bf16.msra.mxu0 %v7011_v48  ;;  %4691 = vmatpush1.bf16.msra.mxu1 %v7013_v49 }
 0x1fa   :  { %4606 = vmatprep.subr.bf16.mxu0 %v7028_v50  ;;  %4692 = vmatprep.subr.bf16.mxu1 %v7030_v51 }
 0x1fd   :  { %4607 = vmatpush1.bf16.msra.mxu0 %v7027_v58  ;;  %4693 = vmatpush1.bf16.msra.mxu1 %v7029_v59 }
 0x1fe   :  { %4608 = vmatprep.subr.bf16.mxu0 %v7044_v60  ;;  %4694 = vmatprep.subr.bf16.mxu1 %v7046_v61 }
 0x201   :  { %4609 = vmatpush1.bf16.msra.mxu0 %v7043_v2  ;;  %4695 = vmatpush1.bf16.msra.mxu1 %v7045_v3  ;;  %v1700_v2 = vld [vmem:[#allocation9 + $0x880] sm:$0xff] }
 0x202   :  { %4610 = vmatprep.subr.bf16.mxu0 %v7060_v4  ;;  %4696 = vmatprep.subr.bf16.mxu1 %v7062_v5  ;;  %v1708_v5 = vld [vmem:[#allocation9 + $0x8c0] sm:$0xff] }
 0x203   :  { %v7123_v16 = vcombine.low %v1700_v2, %v1708_v5 }
 0x205   :  { %4611 = vmatpush1.bf16.msra.mxu0 %v7059_v6  ;;  %4697 = vmatpush1.bf16.msra.mxu1 %v7061_v7  ;;  %v1701_v6 = vld [vmem:[#allocation9 + $0x888] sm:$0xff] }
 0x206   :  { %4612 = vmatprep.subr.bf16.mxu0 %v7076_v11  ;;  %4698 = vmatprep.subr.bf16.mxu1 %v7078_v15  ;;  %v1709_v7 = vld [vmem:[#allocation9 + $0x8c8] sm:$0xff]  ;;  %v7124_v11 = vcombine.high %v1700_v2, %v1708_v5  ;;  %v1820_v2 = vld [vmem:[#allocation9 + $0xc40] sm:$0xff] }
 0x207   :  { %v7126_v12 = vcombine.high %v1701_v6, %v1709_v7  ;;  %v1725_v15 = vld [vmem:[#allocation9 + $0x948] sm:$0xff]  ;;  %v7125_v17 = vcombine.low %v1701_v6, %v1709_v7 }
 0x208   :  { %v1813_v5 = vld [vmem:[#allocation9 + $0xc08] sm:$0xff] }
 0x209   :  { %4613 = vmatpush1.bf16.msra.mxu0 %v7075_v13  ;;  %4699 = vmatpush1.bf16.msra.mxu1 %v7077_v14  ;;  %v1724_v13 = vld [vmem:[#allocation9 + $0x940] sm:$0xff]  ;;  %v1717_v14 = vld [vmem:[#allocation9 + $0x908] sm:$0xff] }
 0x20a   :  { %4614 = vmatprep.subr.bf16.mxu0 %v7092_v19  ;;  %4700 = vmatprep.subr.bf16.mxu1 %v7094_v24  ;;  %v7140_v18 = vcombine.high %v1716_v10, %v1724_v13  ;;  %v7142_v19 = vcombine.high %v1717_v14, %v1725_v15  ;;  %v1741_v24 = vld [vmem:[#allocation9 + $0x9c8] sm:$0xff]  ;;  %v7139_v25 = vcombine.low %v1716_v10, %v1724_v13  ;;  %v1828_v13 = vld [vmem:[#allocation9 + $0xc80] sm:$0xff] }
 0x20b   :  { %v7141_v26 = vcombine.low %v1717_v14, %v1725_v15  ;;  %v1821_v6 = vld [vmem:[#allocation9 + $0xc48] sm:$0xff]  ;;  %v1836_v14 = vld [vmem:[#allocation9 + $0xcc0] sm:$0xff] }
 0x20c   :  { %v1829_v15 = vld [vmem:[#allocation9 + $0xc88] sm:$0xff] }
 0x20d   :  { %4615 = vmatpush1.bf16.msra.mxu0 %v7091_v22  ;;  %4701 = vmatpush1.bf16.msra.mxu1 %v7093_v23  ;;  %v1740_v22 = vld [vmem:[#allocation9 + $0x9c0] sm:$0xff]  ;;  %v1733_v23 = vld [vmem:[#allocation9 + $0x988] sm:$0xff] }
 0x20e   :  { %4627 = vmatprep.subr.bf16.mxu0 %v7108_v28  ;;  %4713 = vmatprep.subr.bf16.mxu1 %v7110_v32  ;;  %v7156_v27 = vcombine.high %v1732_v20, %v1740_v22  ;;  %v7158_v28 = vcombine.high %v1733_v23, %v1741_v24  ;;  %v1757_v32 = vld [vmem:[#allocation9 + $0xa48] sm:$0xff]  ;;  %v7155_v33 = vcombine.low %v1732_v20, %v1740_v22  ;;  %v1844_v22 = vld [vmem:[#allocation9 + $0xd00] sm:$0xff] }
 0x2a3   :  { %v1321_v41 = vpop.f32.mrb[4].mxu0  ;;  %v1407_v42 = vpop.f32.mrb[4].mxu1 }
 0x2a4   :  { %v7668_v43 = vadd.f32 %v1321_v41, %v587_v34  ;;  %v7672_v44 = vadd.f32 %v1407_v42, %v595_v35  ;;  %v1323_v45 = vpop.f32.mrb[5].mxu0  ;;  %v1409_v46 = vpop.f32.mrb[5].mxu1  ;;  %v1772_v41 = vld [vmem:[#allocation9 + $0xac0] sm:$0xff]  ;;  %v1765_v42 = vld [vmem:[#allocation9 + $0xa88] sm:$0xff] }
 0x2a5   :  { %v7669_v21 = vadd.f32 %v1323_v45, %v591_v36  ;;  %v7673_v47 = vadd.f32 %v1409_v46, %v599_v39  ;;  %v1325_v48 = vpop.f32.mrb[6].mxu0  ;;  %v1411_v49 = vpop.f32.mrb[6].mxu1 }
 0x2a6   :  { %v7670_v50 = vadd.f32 %v1325_v48, %v587_v34  ;;  %v7674_v51 = vadd.f32 %v1411_v49, %v595_v35  ;;  %v1327_v52 = vpop.f32.mrb[7].mxu0  ;;  %v1413_v54 = vpop.f32.mrb[7].mxu1  ;;  %v1416_v58 = vmax.f32 %v7668_v43, 0.0  ;;  %v1418_v59 = vmax.f32 %v7672_v44, 0.0  ;;  %v1773_v43 = vld [vmem:[#allocation9 + $0xac8] sm:$0xff]  ;;  %v1788_v48 = vld [vmem:[#allocation9 + $0xb40] sm:$0xff] }
 0x2a7   :  { %v7671_v55 = vadd.f32 %v1327_v52, %v591_v36  ;;  %v7675_v57 = vadd.f32 %v1413_v54, %v599_v39  ;;  %v1417_v62 = vmax.f32 %v7669_v21, 0.0  ;;  %v1419_v63 = vmax.f32 %v7673_v47, 0.0  ;;  %v1764_v39 = vld [vmem:[#allocation9 + $0xa80] sm:$0xff]  ;;  %v1781_v49 = vld [vmem:[#allocation9 + $0xb08] sm:$0xff] }
 0x2a8   :  { %v1420_v60 = vmax.f32 %v7670_v50, 0.0  ;;  %v1422_v61 = vmax.f32 %v7674_v51, 0.0  ;;  %v7157_v34 = vcombine.low %v1733_v23, %v1741_v24  ;;  %v7188_v46 = vcombine.high %v1764_v39, %v1772_v41  ;;  %v1780_v47 = vld [vmem:[#allocation9 + $0xb00] sm:$0xff]  ;;  %v1789_v50 = vld [vmem:[#allocation9 + $0xb48] sm:$0xff] }
 0x2a9   :  { %v1421_v0 = vmax.f32 %v7671_v55, 0.0  ;;  %v1423_v1 = vmax.f32 %v7675_v57, 0.0  ;;  %v7190_v21 = vcombine.high %v1765_v42, %v1773_v43  ;;  %v7187_v51 = vcombine.low %v1764_v39, %v1772_v41  ;;  %v1796_v57 = vld [vmem:[#allocation9 + $0xb80] sm:$0xff]  ;;  %v1845_v24 = vld [vmem:[#allocation9 + $0xd08] sm:$0xff] }
 0x2aa   :  { %v8520_v3 = vpack.c.bf16 %v1420_v60, %v1416_v58  ;;  %v8522_v4 = vpack.c.bf16 %v1422_v61, %v1418_v59  ;;  %v7189_v52 = vcombine.low %v1765_v42, %v1773_v43  ;;  %v7204_v54 = vcombine.high %v1780_v47, %v1788_v48  ;;  %v1804_v58 = vld [vmem:[#allocation9 + $0xbc0] sm:$0xff]  ;;  %v1797_v59 = vld [vmem:[#allocation9 + $0xb88] sm:$0xff] }
 0x2ab   :  { %v8524_v8 = vpack.c.bf16 %v1421_v0, %v1417_v62  ;;  %v8526_v9 = vpack.c.bf16 %v1423_v1, %v1419_v63  ;;  %v7206_v55 = vcombine.high %v1781_v49, %v1789_v50  ;;  %v1805_v60 = vld [vmem:[#allocation9 + $0xbc8] sm:$0xff]  ;;  %v7203_v61 = vcombine.low %v1780_v47, %v1788_v48  ;;  %v1812_v1 = vld [vmem:[#allocation9 + $0xc00] sm:$0xff] }
 0x2ac   :  { %v7205_v62 = vcombine.low %v1781_v49, %v1789_v50  ;;  %v7220_v63 = vcombine.high %v1796_v57, %v1804_v58  ;;  %v7222_v0 = vcombine.high %v1797_v59, %v1805_v60  ;;  %v7219_v7 = vcombine.low %v1796_v57, %v1804_v58  ;;  %v1852_v23 = vld [vmem:[#allocation9 + $0xd40] sm:$0xff]  ;;  %v1877_v43 = vld [vmem:[#allocation9 + $0xe08] sm:$0xff] }
 0x2ad   :  { %4616 = vmatprep.mubr.bf16.mxu0 %v8524_v8  ;;  %4702 = vmatprep.mubr.bf16.mxu1 %v8524_v8  ;;  %v7221_v10 = vcombine.low %v1797_v59, %v1805_v60  ;;  %v1876_v41 = vld [vmem:[#allocation9 + $0xe00] sm:$0xff]  ;;  %v1893_v50 = vld [vmem:[#allocation9 + $0xe88] sm:$0xff] }
 0x2ae   :  { %4617 = vmatmul.mubr.bf16.vlgmr.msra.gmra.mrb[8].mxu0 %v8520_v3  ;;  %4703 = vmatmul.mubr.bf16.vlgmr.msra.gmra.mrb[8].mxu1 %v8520_v3  ;;  %v1884_v42 = vld [vmem:[#allocation9 + $0xe40] sm:$0xff]  ;;  %v1909_v60 = vld [vmem:[#allocation9 + $0xf08] sm:$0xff] }
 0x2af   :  { %4628 = vmatpush1.bf16.msra.mxu0 %v7107_v30  ;;  %4714 = vmatpush1.bf16.msra.mxu1 %v7109_v31  ;;  %v1756_v30 = vld [vmem:[#allocation9 + $0xa40] sm:$0xff]  ;;  %v1749_v31 = vld [vmem:[#allocation9 + $0xa08] sm:$0xff] }
 0x2b0   :  { %4659 = vmatprep.mubr.bf16.mxu0 %v8526_v9  ;;  %4745 = vmatprep.mubr.bf16.mxu1 %v8526_v9  ;;  %v7172_v35 = vcombine.high %v1748_v29, %v1756_v30  ;;  %v7174_v36 = vcombine.high %v1749_v31, %v1757_v32  ;;  %v7171_v44 = vcombine.low %v1748_v29, %v1756_v30  ;;  %v1860_v30 = vld [vmem:[#allocation9 + $0xd80] sm:$0xff] }
 0x2b1   :  { %4629 = vmatprep.subr.bf16.mxu0 %v7124_v11  ;;  %4715 = vmatprep.subr.bf16.mxu1 %v7126_v12  ;;  %v7173_v45 = vcombine.low %v1749_v31, %v1757_v32  ;;  %v7236_v11 = vcombine.high %v1812_v1, %v1820_v2  ;;  %v7238_v12 = vcombine.high %v1813_v5, %v1821_v6  ;;  %v1868_v31 = vld [vmem:[#allocation9 + $0xdc0] sm:$0xff]  ;;  %v1861_v32 = vld [vmem:[#allocation9 + $0xd88] sm:$0xff] }
 0x2b2   :  { %v1892_v48 = vld [vmem:[#allocation9 + $0xe80] sm:$0xff] }
 0x2b3   :  { %4630 = vmatpush1.bf16.msra.mxu0 %v7123_v16  ;;  %4716 = vmatpush1.bf16.msra.mxu1 %v7125_v17  ;;  %v1837_v16 = vld [vmem:[#allocation9 + $0xcc8] sm:$0xff]  ;;  %v7235_v17 = vcombine.low %v1812_v1, %v1820_v2  ;;  %v1900_v49 = vld [vmem:[#allocation9 + $0xec0] sm:$0xff] }
 0x2b4   :  { %4631 = vmatprep.subr.bf16.mxu0 %v7140_v18  ;;  %4717 = vmatprep.subr.bf16.mxu1 %v7142_v19  ;;  %v7237_v18 = vcombine.low %v1813_v5, %v1821_v6  ;;  %v7252_v19 = vcombine.high %v1828_v13, %v1836_v14  ;;  %v7254_v20 = vcombine.high %v1829_v15, %v1837_v16  ;;  %v1908_v58 = vld [vmem:[#allocation9 + $0xf00] sm:$0xff]  ;;  %v1925_v6 = vld [vmem:[#allocation9 + $0xf88] sm:$0xff] }
 0x2b5   :  { %v1916_v59 = vld [vmem:[#allocation9 + $0xf40] sm:$0xff] }
 0x2b6   :  { %v1924_v2 = vld [vmem:[#allocation9 + $0xf80] sm:$0xff] }
 0x2b7   :  { %4632 = vmatpush1.bf16.msra.mxu0 %v7139_v25  ;;  %4718 = vmatpush1.bf16.msra.mxu1 %v7141_v26  ;;  %v1853_v25 = vld [vmem:[#allocation9 + $0xd48] sm:$0xff]  ;;  %v7251_v26 = vcombine.low %v1828_v13, %v1836_v14  ;;  %v1932_v5 = vld [vmem:[#allocation9 + $0xfc0] sm:$0xff]  ;;  %v1430_v14 = vld [vmem:[#allocation9 + $0x10] sm:$0xff] }
 0x2b8   :  { %4633 = vmatprep.subr.bf16.mxu0 %v7156_v27  ;;  %4719 = vmatprep.subr.bf16.mxu1 %v7158_v28  ;;  %v7253_v27 = vcombine.low %v1829_v15, %v1837_v16  ;;  %v7268_v28 = vcombine.high %v1844_v22, %v1852_v23  ;;  %v7270_v29 = vcombine.high %v1845_v24, %v1853_v25  ;;  %v1438_v15 = vld [vmem:[#allocation9 + $0x50] sm:$0xff]  ;;  %v1431_v16 = vld [vmem:[#allocation9 + $0x18] sm:$0xff] }
 0x2bb   :  { %4634 = vmatpush1.bf16.msra.mxu0 %v7155_v33  ;;  %4720 = vmatpush1.bf16.msra.mxu1 %v7157_v34  ;;  %v1869_v33 = vld [vmem:[#allocation9 + $0xdc8] sm:$0xff]  ;;  %v7267_v34 = vcombine.low %v1844_v22, %v1852_v23  ;;  %v1446_v23 = vld [vmem:[#allocation9 + $0x90] sm:$0xff] }
 0x2bc   :  { %4635 = vmatprep.subr.bf16.mxu0 %v7172_v35  ;;  %4721 = vmatprep.subr.bf16.mxu1 %v7174_v36  ;;  %v7269_v35 = vcombine.low %v1845_v24, %v1853_v25  ;;  %v7284_v36 = vcombine.high %v1860_v30, %v1868_v31  ;;  %v7286_v39 = vcombine.high %v1861_v32, %v1869_v33  ;;  %v1454_v24 = vld [vmem:[#allocation9 + $0xd0] sm:$0xff]  ;;  %v1447_v25 = vld [vmem:[#allocation9 + $0x98] sm:$0xff] }
 0x2bf   :  { %4636 = vmatpush1.bf16.msra.mxu0 %v7171_v44  ;;  %4722 = vmatpush1.bf16.msra.mxu1 %v7173_v45  ;;  %v1885_v44 = vld [vmem:[#allocation9 + $0xe48] sm:$0xff]  ;;  %v7283_v45 = vcombine.low %v1860_v30, %v1868_v31  ;;  %v1462_v31 = vld [vmem:[#allocation9 + $0x110] sm:$0xff] }
 0x2c0   :  { %4637 = vmatprep.subr.bf16.mxu0 %v7188_v46  ;;  %4723 = vmatprep.subr.bf16.mxu1 %v7190_v21  ;;  %v7285_v46 = vcombine.low %v1861_v32, %v1869_v33  ;;  %v7300_v21 = vcombine.high %v1876_v41, %v1884_v42  ;;  %v7302_v47 = vcombine.high %v1877_v43, %v1885_v44  ;;  %v1470_v32 = vld [vmem:[#allocation9 + $0x150] sm:$0xff]  ;;  %v1463_v33 = vld [vmem:[#allocation9 + $0x118] sm:$0xff] }
 0x2c3   :  { %4638 = vmatpush1.bf16.msra.mxu0 %v7187_v51  ;;  %4724 = vmatpush1.bf16.msra.mxu1 %v7189_v52  ;;  %v1901_v51 = vld [vmem:[#allocation9 + $0xec8] sm:$0xff]  ;;  %v7299_v52 = vcombine.low %v1876_v41, %v1884_v42  ;;  %v1478_v42 = vld [vmem:[#allocation9 + $0x190] sm:$0xff] }
 0x2c4   :  { %4639 = vmatprep.subr.bf16.mxu0 %v7204_v54  ;;  %4725 = vmatprep.subr.bf16.mxu1 %v7206_v55  ;;  %v7301_v54 = vcombine.low %v1877_v43, %v1885_v44  ;;  %v7316_v55 = vcombine.high %v1892_v48, %v1900_v49  ;;  %v7318_v57 = vcombine.high %v1893_v50, %v1901_v51  ;;  %v1486_v43 = vld [vmem:[#allocation9 + $0x1d0] sm:$0xff]  ;;  %v1479_v44 = vld [vmem:[#allocation9 + $0x198] sm:$0xff] }
 0x2c7   :  { %4640 = vmatpush1.bf16.msra.mxu0 %v7203_v61  ;;  %4726 = vmatpush1.bf16.msra.mxu1 %v7205_v62  ;;  %v1917_v61 = vld [vmem:[#allocation9 + $0xf48] sm:$0xff]  ;;  %v7315_v62 = vcombine.low %v1892_v48, %v1900_v49  ;;  %v1494_v49 = vld [vmem:[#allocation9 + $0x210] sm:$0xff] }
 0x2c8   :  { %4641 = vmatprep.subr.bf16.mxu0 %v7220_v63  ;;  %4727 = vmatprep.subr.bf16.mxu1 %v7222_v0  ;;  %v7317_v63 = vcombine.low %v1893_v50, %v1901_v51  ;;  %v7332_v0 = vcombine.high %v1908_v58, %v1916_v59  ;;  %v7334_v1 = vcombine.high %v1909_v60, %v1917_v61  ;;  %v1502_v50 = vld [vmem:[#allocation9 + $0x250] sm:$0xff]  ;;  %v1495_v51 = vld [vmem:[#allocation9 + $0x218] sm:$0xff] }
 0x2cb   :  { %4642 = vmatpush1.bf16.msra.mxu0 %v7219_v7  ;;  %4728 = vmatpush1.bf16.msra.mxu1 %v7221_v10  ;;  %v1933_v7 = vld [vmem:[#allocation9 + $0xfc8] sm:$0xff]  ;;  %v7331_v10 = vcombine.low %v1908_v58, %v1916_v59  ;;  %v1510_v59 = vld [vmem:[#allocation9 + $0x290] sm:$0xff] }
 0x2cc   :  { %4643 = vmatprep.subr.bf16.mxu0 %v7236_v11  ;;  %4729 = vmatprep.subr.bf16.mxu1 %v7238_v12  ;;  %v7333_v11 = vcombine.low %v1909_v60, %v1917_v61  ;;  %v7348_v12 = vcombine.high %v1924_v2, %v1932_v5  ;;  %v7350_v13 = vcombine.high %v1925_v6, %v1933_v7  ;;  %v1518_v60 = vld [vmem:[#allocation9 + $0x2d0] sm:$0xff]  ;;  %v1511_v61 = vld [vmem:[#allocation9 + $0x298] sm:$0xff] }
 0x2cf   :  { %4644 = vmatpush1.bf16.msra.mxu0 %v7235_v17  ;;  %4730 = vmatpush1.bf16.msra.mxu1 %v7237_v18  ;;  %v1439_v17 = vld [vmem:[#allocation9 + $0x58] sm:$0xff]  ;;  %v7347_v18 = vcombine.low %v1924_v2, %v1932_v5  ;;  %v1526_v5 = vld [vmem:[#allocation9 + $0x310] sm:$0xff] }
 0x2d0   :  { %4645 = vmatprep.subr.bf16.mxu0 %v7252_v19  ;;  %4731 = vmatprep.subr.bf16.mxu1 %v7254_v20  ;;  %v7349_v19 = vcombine.low %v1925_v6, %v1933_v7  ;;  %v6856_v20 = vcombine.high %v1430_v14, %v1438_v15  ;;  %v6858_v22 = vcombine.high %v1431_v16, %v1439_v17  ;;  %v1534_v6 = vld [vmem:[#allocation9 + $0x350] sm:$0xff]  ;;  %v1527_v7 = vld [vmem:[#allocation9 + $0x318] sm:$0xff] }
 0x2d3   :  { %4646 = vmatpush1.bf16.msra.mxu0 %v7251_v26  ;;  %4732 = vmatpush1.bf16.msra.mxu1 %v7253_v27  ;;  %v1455_v26 = vld [vmem:[#allocation9 + $0xd8] sm:$0xff]  ;;  %v6855_v27 = vcombine.low %v1430_v14, %v1438_v15  ;;  %v1542_v15 = vld [vmem:[#allocation9 + $0x390] sm:$0xff] }
 0x2d4   :  { %4647 = vmatprep.subr.bf16.mxu0 %v7268_v28  ;;  %4733 = vmatprep.subr.bf16.mxu1 %v7270_v29  ;;  %v6857_v28 = vcombine.low %v1431_v16, %v1439_v17  ;;  %v6872_v29 = vcombine.high %v1446_v23, %v1454_v24  ;;  %v6874_v30 = vcombine.high %v1447_v25, %v1455_v26  ;;  %v1550_v16 = vld [vmem:[#allocation9 + $0x3d0] sm:$0xff]  ;;  %v1543_v17 = vld [vmem:[#allocation9 + $0x398] sm:$0xff] }
 0x2d7   :  { %4648 = vmatpush1.bf16.msra.mxu0 %v7267_v34  ;;  %4734 = vmatpush1.bf16.msra.mxu1 %v7269_v35  ;;  %v1471_v34 = vld [vmem:[#allocation9 + $0x158] sm:$0xff]  ;;  %v6871_v35 = vcombine.low %v1446_v23, %v1454_v24  ;;  %v1558_v24 = vld [vmem:[#allocation9 + $0x410] sm:$0xff] }
 0x2d8   :  { %4649 = vmatprep.subr.bf16.mxu0 %v7284_v36  ;;  %4735 = vmatprep.subr.bf16.mxu1 %v7286_v39  ;;  %v6873_v36 = vcombine.low %v1447_v25, %v1455_v26  ;;  %v6888_v39 = vcombine.high %v1462_v31, %v1470_v32  ;;  %v6890_v41 = vcombine.high %v1463_v33, %v1471_v34  ;;  %v1566_v25 = vld [vmem:[#allocation9 + $0x450] sm:$0xff]  ;;  %v1559_v26 = vld [vmem:[#allocation9 + $0x418] sm:$0xff] }
 0x2db   :  { %4650 = vmatpush1.bf16.msra.mxu0 %v7283_v45  ;;  %4736 = vmatpush1.bf16.msra.mxu1 %v7285_v46  ;;  %v1487_v45 = vld [vmem:[#allocation9 + $0x1d8] sm:$0xff]  ;;  %v6887_v46 = vcombine.low %v1462_v31, %v1470_v32  ;;  %v1574_v32 = vld [vmem:[#allocation9 + $0x490] sm:$0xff] }
 0x2dc   :  { %4651 = vmatprep.subr.bf16.mxu0 %v7300_v21  ;;  %4737 = vmatprep.subr.bf16.mxu1 %v7302_v47  ;;  %v6889_v21 = vcombine.low %v1463_v33, %v1471_v34  ;;  %v6904_v47 = vcombine.high %v1478_v42, %v1486_v43  ;;  %v6906_v48 = vcombine.high %v1479_v44, %v1487_v45  ;;  %v1582_v33 = vld [vmem:[#allocation9 + $0x4d0] sm:$0xff]  ;;  %v1575_v34 = vld [vmem:[#allocation9 + $0x498] sm:$0xff] }
 0x2df   :  { %4652 = vmatpush1.bf16.msra.mxu0 %v7299_v52  ;;  %4738 = vmatpush1.bf16.msra.mxu1 %v7301_v54  ;;  %v1503_v52 = vld [vmem:[#allocation9 + $0x258] sm:$0xff]  ;;  %v6903_v54 = vcombine.low %v1478_v42, %v1486_v43  ;;  %v1590_v43 = vld [vmem:[#allocation9 + $0x510] sm:$0xff] }
 0x2e0   :  { %4653 = vmatprep.subr.bf16.mxu0 %v7316_v55  ;;  %4739 = vmatprep.subr.bf16.mxu1 %v7318_v57  ;;  %v6905_v55 = vcombine.low %v1479_v44, %v1487_v45  ;;  %v6920_v57 = vcombine.high %v1494_v49, %v1502_v50  ;;  %v6922_v58 = vcombine.high %v1495_v51, %v1503_v52  ;;  %v1598_v44 = vld [vmem:[#allocation9 + $0x550] sm:$0xff]  ;;  %v1591_v45 = vld [vmem:[#allocation9 + $0x518] sm:$0xff] }
 0x2e3   :  { %4654 = vmatpush1.bf16.msra.mxu0 %v7315_v62  ;;  %4740 = vmatpush1.bf16.msra.mxu1 %v7317_v63  ;;  %v1519_v62 = vld [vmem:[#allocation9 + $0x2d8] sm:$0xff]  ;;  %v6919_v63 = vcombine.low %v1494_v49, %v1502_v50  ;;  %v1606_v50 = vld [vmem:[#allocation9 + $0x590] sm:$0xff] }
 0x2e4   :  { %4655 = vmatprep.subr.bf16.mxu0 %v7332_v0  ;;  %4741 = vmatprep.subr.bf16.mxu1 %v7334_v1  ;;  %v6921_v0 = vcombine.low %v1495_v51, %v1503_v52  ;;  %v6936_v1 = vcombine.high %v1510_v59, %v1518_v60  ;;  %v6938_v2 = vcombine.high %v1511_v61, %v1519_v62  ;;  %v1614_v51 = vld [vmem:[#allocation9 + $0x5d0] sm:$0xff]  ;;  %v1607_v52 = vld [vmem:[#allocation9 + $0x598] sm:$0xff] }
 0x2e7   :  { %4656 = vmatpush1.bf16.msra.mxu0 %v7331_v10  ;;  %4742 = vmatpush1.bf16.msra.mxu1 %v7333_v11  ;;  %v1535_v10 = vld [vmem:[#allocation9 + $0x358] sm:$0xff]  ;;  %v6935_v11 = vcombine.low %v1510_v59, %v1518_v60  ;;  %v1622_v60 = vld [vmem:[#allocation9 + $0x610] sm:$0xff] }
 0x2e8   :  { %4657 = vmatprep.subr.bf16.mxu0 %v7348_v12  ;;  %4743 = vmatprep.subr.bf16.mxu1 %v7350_v13  ;;  %v6937_v12 = vcombine.low %v1511_v61, %v1519_v62  ;;  %v6952_v13 = vcombine.high %v1526_v5, %v1534_v6  ;;  %v6954_v14 = vcombine.high %v1527_v7, %v1535_v10  ;;  %v1630_v61 = vld [vmem:[#allocation9 + $0x650] sm:$0xff]  ;;  %v1623_v62 = vld [vmem:[#allocation9 + $0x618] sm:$0xff] }
 0x2eb   :  { %4658 = vmatpush1.bf16.msra.mxu0 %v7347_v18  ;;  %4744 = vmatpush1.bf16.msra.mxu1 %v7349_v19  ;;  %v1551_v18 = vld [vmem:[#allocation9 + $0x3d8] sm:$0xff]  ;;  %v6951_v19 = vcombine.low %v1526_v5, %v1534_v6  ;;  %v1638_v6 = vld [vmem:[#allocation9 + $0x690] sm:$0xff] }
 0x2ec   :  { %4756 = vmatprep.subr.bf16.mxu0 %v6856_v20  ;;  %4842 = vmatprep.subr.bf16.mxu1 %v6858_v22  ;;  %v6953_v20 = vcombine.low %v1527_v7, %v1535_v10  ;;  %v6968_v22 = vcombine.high %v1542_v15, %v1550_v16  ;;  %v6970_v23 = vcombine.high %v1543_v17, %v1551_v18  ;;  %v1646_v7 = vld [vmem:[#allocation9 + $0x6d0] sm:$0xff]  ;;  %v1639_v10 = vld [vmem:[#allocation9 + $0x698] sm:$0xff] }
 0x2ee   :  { %4660 = vmatmul.mubr.bf16.vlgmr.msra.gmra.mrb[8].mxu0 %v8522_v4  ;;  %4746 = vmatmul.mubr.bf16.vlgmr.msra.gmra.mrb[8].mxu1 %v8522_v4 }
 0x2ef   :  { %4757 = vmatpush1.bf16.msra.mxu0 %v6855_v27  ;;  %4788 = vmatprep.mubr.bf16.mxu0 %v8524_v8  ;;  %v1567_v27 = vld [vmem:[#allocation9 + $0x458] sm:$0xff] }
 0x2f0   :  { %4843 = vmatpush1.bf16.msra.mxu1 %v6857_v28  ;;  %4874 = vmatprep.mubr.bf16.mxu1 %v8524_v8  ;;  %v6967_v28 = vcombine.low %v1542_v15, %v1550_v16  ;;  %v6986_v31 = vcombine.high %v1559_v26, %v1567_v27  ;;  %v1654_v16 = vld [vmem:[#allocation9 + $0x710] sm:$0xff] }
 0x2f1   :  { %4758 = vmatprep.subr.bf16.mxu0 %v6872_v29  ;;  %4844 = vmatprep.subr.bf16.mxu1 %v6874_v30  ;;  %v6969_v29 = vcombine.low %v1543_v17, %v1551_v18  ;;  %v6984_v30 = vcombine.high %v1558_v24, %v1566_v25  ;;  %v1662_v17 = vld [vmem:[#allocation9 + $0x750] sm:$0xff]  ;;  %v1655_v18 = vld [vmem:[#allocation9 + $0x718] sm:$0xff] }
 0x2f3   :  { %4759 = vmatpush1.bf16.msra.mxu0 %v6871_v35  ;;  %v1583_v35 = vld [vmem:[#allocation9 + $0x4d8] sm:$0xff] }
 0x2f4   :  { %4845 = vmatpush1.bf16.msra.mxu1 %v6873_v36  ;;  %4760 = vmatprep.subr.bf16.mxu0 %v6888_v39  ;;  %v6983_v36 = vcombine.low %v1558_v24, %v1566_v25  ;;  %v6985_v39 = vcombine.low %v1559_v26, %v1567_v27  ;;  %v7002_v42 = vcombine.high %v1575_v34, %v1583_v35  ;;  %v1670_v25 = vld [vmem:[#allocation9 + $0x790] sm:$0xff]  ;;  %v1671_v27 = vld [vmem:[#allocation9 + $0x798] sm:$0xff] }
 0x2f5   :  { %4846 = vmatprep.subr.bf16.mxu1 %v6890_v41  ;;  %v7000_v41 = vcombine.high %v1574_v32, %v1582_v33  ;;  %v1678_v26 = vld [vmem:[#allocation9 + $0x7d0] sm:$0xff] }
 0x2f7   :  { %4761 = vmatpush1.bf16.msra.mxu0 %v6887_v46  ;;  %v1599_v46 = vld [vmem:[#allocation9 + $0x558] sm:$0xff] }
 0x2f8   :  { %4847 = vmatpush1.bf16.msra.mxu1 %v6889_v21  ;;  %4762 = vmatprep.subr.bf16.mxu0 %v6904_v47  ;;  %v6999_v21 = vcombine.low %v1574_v32, %v1582_v33  ;;  %v7001_v47 = vcombine.low %v1575_v34, %v1583_v35  ;;  %v7018_v49 = vcombine.high %v1591_v45, %v1599_v46  ;;  %v1686_v33 = vld [vmem:[#allocation9 + $0x810] sm:$0xff]  ;;  %v1687_v35 = vld [vmem:[#allocation9 + $0x818] sm:$0xff] }
 0x2f9   :  { %4848 = vmatprep.subr.bf16.mxu1 %v6906_v48  ;;  %v7016_v48 = vcombine.high %v1590_v43, %v1598_v44  ;;  %v1694_v34 = vld [vmem:[#allocation9 + $0x850] sm:$0xff] }
 0x2fb   :  { %4763 = vmatpush1.bf16.msra.mxu0 %v6903_v54  ;;  %v1615_v54 = vld [vmem:[#allocation9 + $0x5d8] sm:$0xff] }
 0x2fc   :  { %4849 = vmatpush1.bf16.msra.mxu1 %v6905_v55  ;;  %4764 = vmatprep.subr.bf16.mxu0 %v6920_v57  ;;  %v7015_v55 = vcombine.low %v1590_v43, %v1598_v44  ;;  %v7017_v57 = vcombine.low %v1591_v45, %v1599_v46  ;;  %v7034_v59 = vcombine.high %v1607_v52, %v1615_v54  ;;  %v1702_v44 = vld [vmem:[#allocation9 + $0x890] sm:$0xff] }
 0x2fd   :  { %4850 = vmatprep.subr.bf16.mxu1 %v6922_v58  ;;  %v7032_v58 = vcombine.high %v1606_v50, %v1614_v51  ;;  %v1710_v45 = vld [vmem:[#allocation9 + $0x8d0] sm:$0xff]  ;;  %v7111_v46 = vcombine.low %v1686_v33, %v1694_v34 }
 0x2ff   :  { %4765 = vmatpush1.bf16.msra.mxu0 %v6919_v63  ;;  %v1631_v63 = vld [vmem:[#allocation9 + $0x658] sm:$0xff] }
 0x300   :  { %4851 = vmatpush1.bf16.msra.mxu1 %v6921_v0  ;;  %4766 = vmatprep.subr.bf16.mxu0 %v6936_v1  ;;  %v7031_v0 = vcombine.low %v1606_v50, %v1614_v51  ;;  %v7033_v1 = vcombine.low %v1607_v52, %v1615_v54  ;;  %v7050_v5 = vcombine.high %v1623_v62, %v1631_v63  ;;  %v1718_v50 = vld [vmem:[#allocation9 + $0x910] sm:$0xff]  ;;  %v1719_v54 = vld [vmem:[#allocation9 + $0x918] sm:$0xff] }
 0x301   :  { %4852 = vmatprep.subr.bf16.mxu1 %v6938_v2  ;;  %v7048_v2 = vcombine.high %v1622_v60, %v1630_v61  ;;  %v1726_v51 = vld [vmem:[#allocation9 + $0x950] sm:$0xff] }
 0x303   :  { %4767 = vmatpush1.bf16.msra.mxu0 %v6935_v11  ;;  %v1647_v11 = vld [vmem:[#allocation9 + $0x6d8] sm:$0xff] }
 0x304   :  { %4853 = vmatpush1.bf16.msra.mxu1 %v6937_v12  ;;  %4768 = vmatprep.subr.bf16.mxu0 %v6952_v13  ;;  %v7047_v12 = vcombine.low %v1622_v60, %v1630_v61  ;;  %v7049_v13 = vcombine.low %v1623_v62, %v1631_v63  ;;  %v7066_v15 = vcombine.high %v1639_v10, %v1647_v11  ;;  %v1734_v61 = vld [vmem:[#allocation9 + $0x990] sm:$0xff]  ;;  %v1735_v63 = vld [vmem:[#allocation9 + $0x998] sm:$0xff] }
 0x305   :  { %4854 = vmatprep.subr.bf16.mxu1 %v6954_v14  ;;  %v7064_v14 = vcombine.high %v1638_v6, %v1646_v7  ;;  %v1742_v62 = vld [vmem:[#allocation9 + $0x9d0] sm:$0xff] }
 0x307   :  { %4769 = vmatpush1.bf16.msra.mxu0 %v6951_v19  ;;  %v1663_v19 = vld [vmem:[#allocation9 + $0x758] sm:$0xff] }
 0x308   :  { %4855 = vmatpush1.bf16.msra.mxu1 %v6953_v20  ;;  %4770 = vmatprep.subr.bf16.mxu0 %v6968_v22  ;;  %v7063_v20 = vcombine.low %v1638_v6, %v1646_v7  ;;  %v7065_v22 = vcombine.low %v1639_v10, %v1647_v11  ;;  %v7082_v24 = vcombine.high %v1655_v18, %v1663_v19  ;;  %v1750_v7 = vld [vmem:[#allocation9 + $0xa10] sm:$0xff]  ;;  %v1751_v11 = vld [vmem:[#allocation9 + $0xa18] sm:$0xff] }
 0x309   :  { %4856 = vmatprep.subr.bf16.mxu1 %v6970_v23  ;;  %v7080_v23 = vcombine.high %v1654_v16, %v1662_v17  ;;  %v1758_v10 = vld [vmem:[#allocation9 + $0xa50] sm:$0xff] }
 0x30b   :  { %4771 = vmatpush1.bf16.msra.mxu0 %v6967_v28  ;;  %v1679_v28 = vld [vmem:[#allocation9 + $0x7d8] sm:$0xff] }
 0x30c   :  { %4857 = vmatpush1.bf16.msra.mxu1 %v6969_v29  ;;  %4772 = vmatprep.subr.bf16.mxu0 %v6984_v30  ;;  %v7079_v29 = vcombine.low %v1654_v16, %v1662_v17  ;;  %v7081_v30 = vcombine.low %v1655_v18, %v1663_v19  ;;  %v7098_v32 = vcombine.high %v1671_v27, %v1679_v28  ;;  %v1766_v17 = vld [vmem:[#allocation9 + $0xa90] sm:$0xff]  ;;  %v1767_v19 = vld [vmem:[#allocation9 + $0xa98] sm:$0xff] }
 0x30d   :  { %4858 = vmatprep.subr.bf16.mxu1 %v6986_v31  ;;  %v7096_v31 = vcombine.high %v1670_v25, %v1678_v26  ;;  %v1774_v18 = vld [vmem:[#allocation9 + $0xad0] sm:$0xff] }
 0x30f   :  { %4773 = vmatpush1.bf16.msra.mxu0 %v6983_v36  ;;  %v1695_v36 = vld [vmem:[#allocation9 + $0x858] sm:$0xff] }
 0x310   :  { %4859 = vmatpush1.bf16.msra.mxu1 %v6985_v39  ;;  %4774 = vmatprep.subr.bf16.mxu0 %v7000_v41  ;;  %v7095_v39 = vcombine.low %v1670_v25, %v1678_v26  ;;  %v7097_v41 = vcombine.low %v1671_v27, %v1679_v28  ;;  %v7114_v43 = vcombine.high %v1687_v35, %v1695_v36  ;;  %v1782_v26 = vld [vmem:[#allocation9 + $0xb10] sm:$0xff]  ;;  %v1783_v28 = vld [vmem:[#allocation9 + $0xb18] sm:$0xff] }
 0x311   :  { %4860 = vmatprep.subr.bf16.mxu1 %v7002_v42  ;;  %v7112_v42 = vcombine.high %v1686_v33, %v1694_v34  ;;  %v1790_v27 = vld [vmem:[#allocation9 + $0xb50] sm:$0xff] }
 0x312   :  { %v1798_v34 = vld [vmem:[#allocation9 + $0xb90] sm:$0xff] }
 0x313   :  { %4775 = vmatpush1.bf16.msra.mxu0 %v6999_v21  ;;  %v1703_v21 = vld [vmem:[#allocation9 + $0x898] sm:$0xff] }
 0x314   :  { %4861 = vmatpush1.bf16.msra.mxu1 %v7001_v47  ;;  %4776 = vmatprep.subr.bf16.mxu0 %v7016_v48  ;;  %v1711_v47 = vld [vmem:[#allocation9 + $0x8d8] sm:$0xff]  ;;  %v7113_v48 = vcombine.low %v1687_v35, %v1695_v36  ;;  %v1806_v35 = vld [vmem:[#allocation9 + $0xbd0] sm:$0xff] }
 0x315   :  { %4862 = vmatprep.subr.bf16.mxu1 %v7018_v49  ;;  %v7128_v49 = vcombine.high %v1702_v44, %v1710_v45  ;;  %v7130_v52 = vcombine.high %v1703_v21, %v1711_v47  ;;  %v1799_v36 = vld [vmem:[#allocation9 + $0xb98] sm:$0xff] }
 0x317   :  { %4777 = vmatpush1.bf16.msra.mxu0 %v7015_v55  ;;  %v1727_v55 = vld [vmem:[#allocation9 + $0x958] sm:$0xff] }
 0x318   :  { %4863 = vmatpush1.bf16.msra.mxu1 %v7017_v57  ;;  %4778 = vmatprep.subr.bf16.mxu0 %v7032_v58  ;;  %v7127_v57 = vcombine.low %v1702_v44, %v1710_v45  ;;  %v7129_v58 = vcombine.low %v1703_v21, %v1711_v47  ;;  %v7146_v60 = vcombine.high %v1719_v54, %v1727_v55  ;;  %v1814_v45 = vld [vmem:[#allocation9 + $0xc10] sm:$0xff]  ;;  %v1815_v21 = vld [vmem:[#allocation9 + $0xc18] sm:$0xff] }
 0x319   :  { %4864 = vmatprep.subr.bf16.mxu1 %v7034_v59  ;;  %v7144_v59 = vcombine.high %v1718_v50, %v1726_v51  ;;  %v1823_v47 = vld [vmem:[#allocation9 + $0xc58] sm:$0xff] }
 0x31b   :  { %4779 = vmatpush1.bf16.msra.mxu0 %v7031_v0  ;;  %v1743_v0 = vld [vmem:[#allocation9 + $0x9d8] sm:$0xff] }
 0x31c   :  { %4865 = vmatpush1.bf16.msra.mxu1 %v7033_v1  ;;  %4780 = vmatprep.subr.bf16.mxu0 %v7048_v2  ;;  %v7143_v1 = vcombine.low %v1718_v50, %v1726_v51  ;;  %v7145_v2 = vcombine.low %v1719_v54, %v1727_v55  ;;  %v7162_v6 = vcombine.high %v1735_v63, %v1743_v0  ;;  %v1838_v54 = vld [vmem:[#allocation9 + $0xcd0] sm:$0xff]  ;;  %v1831_v55 = vld [vmem:[#allocation9 + $0xc98] sm:$0xff] }
 0x31d   :  { %4866 = vmatprep.subr.bf16.mxu1 %v7050_v5  ;;  %v7160_v5 = vcombine.high %v1734_v61, %v1742_v62  ;;  %v7242_v51 = vcombine.high %v1815_v21, %v1823_v47 }
 0x31f   :  { %4781 = vmatpush1.bf16.msra.mxu0 %v7047_v12  ;;  %v1759_v12 = vld [vmem:[#allocation9 + $0xa58] sm:$0xff] }
 0x320   :  { %4867 = vmatpush1.bf16.msra.mxu1 %v7049_v13  ;;  %4782 = vmatprep.subr.bf16.mxu0 %v7064_v14  ;;  %v7159_v13 = vcombine.low %v1734_v61, %v1742_v62  ;;  %v7161_v14 = vcombine.low %v1735_v63, %v1743_v0  ;;  %v7178_v16 = vcombine.high %v1751_v11, %v1759_v12  ;;  %v1846_v62 = vld [vmem:[#allocation9 + $0xd10] sm:$0xff]  ;;  %v1847_v0 = vld [vmem:[#allocation9 + $0xd18] sm:$0xff] }
 0x321   :  { %4868 = vmatprep.subr.bf16.mxu1 %v7066_v15  ;;  %v7176_v15 = vcombine.high %v1750_v7, %v1758_v10  ;;  %v1854_v63 = vld [vmem:[#allocation9 + $0xd50] sm:$0xff] }
 0x323   :  { %4783 = vmatpush1.bf16.msra.mxu0 %v7063_v20  ;;  %v1775_v20 = vld [vmem:[#allocation9 + $0xad8] sm:$0xff] }
 0x324   :  { %4869 = vmatpush1.bf16.msra.mxu1 %v7065_v22  ;;  %4784 = vmatprep.subr.bf16.mxu0 %v7080_v23  ;;  %v7175_v22 = vcombine.low %v1750_v7, %v1758_v10  ;;  %v7177_v23 = vcombine.low %v1751_v11, %v1759_v12  ;;  %v7194_v25 = vcombine.high %v1767_v19, %v1775_v20  ;;  %v1862_v10 = vld [vmem:[#allocation9 + $0xd90] sm:$0xff]  ;;  %v1863_v12 = vld [vmem:[#allocation9 + $0xd98] sm:$0xff] }
 0x325   :  { %4870 = vmatprep.subr.bf16.mxu1 %v7082_v24  ;;  %v7192_v24 = vcombine.high %v1766_v17, %v1774_v18  ;;  %v1870_v11 = vld [vmem:[#allocation9 + $0xdd0] sm:$0xff] }
 0x327   :  { %4785 = vmatpush1.bf16.msra.mxu0 %v7079_v29  ;;  %v1791_v29 = vld [vmem:[#allocation9 + $0xb58] sm:$0xff] }
 0x328   :  { %4871 = vmatpush1.bf16.msra.mxu1 %v7081_v30  ;;  %4786 = vmatprep.subr.bf16.mxu0 %v7096_v31  ;;  %v7191_v30 = vcombine.low %v1766_v17, %v1774_v18  ;;  %v7193_v31 = vcombine.low %v1767_v19, %v1775_v20  ;;  %v7210_v33 = vcombine.high %v1783_v28, %v1791_v29  ;;  %v1878_v18 = vld [vmem:[#allocation9 + $0xe10] sm:$0xff]  ;;  %v1879_v20 = vld [vmem:[#allocation9 + $0xe18] sm:$0xff] }
 0x329   :  { %4872 = vmatprep.subr.bf16.mxu1 %v7098_v32  ;;  %v7208_v32 = vcombine.high %v1782_v26, %v1790_v27  ;;  %v1886_v19 = vld [vmem:[#allocation9 + $0xe50] sm:$0xff] }
 0x32b   :  { %4787 = vmatpush1.bf16.msra.mxu0 %v7095_v39  ;;  %v1807_v39 = vld [vmem:[#allocation9 + $0xbd8] sm:$0xff] }
 0x32c   :  { %4873 = vmatpush1.bf16.msra.mxu1 %v7097_v41  ;;  %4799 = vmatprep.subr.bf16.mxu0 %v7112_v42  ;;  %v7207_v41 = vcombine.low %v1782_v26, %v1790_v27  ;;  %v7209_v42 = vcombine.low %v1783_v28, %v1791_v29  ;;  %v7226_v44 = vcombine.high %v1799_v36, %v1807_v39  ;;  %v1894_v27 = vld [vmem:[#allocation9 + $0xe90] sm:$0xff]  ;;  %v1895_v29 = vld [vmem:[#allocation9 + $0xe98] sm:$0xff] }
 0x32d   :  { %4885 = vmatprep.subr.bf16.mxu1 %v7114_v43  ;;  %v7224_v43 = vcombine.high %v1798_v34, %v1806_v35  ;;  %v1902_v28 = vld [vmem:[#allocation9 + $0xed0] sm:$0xff] }
 0x32e   :  { %4789 = vmatmul.mubr.bf16.vlgmr.msra.gmra.mrb[12].mxu0 %v8520_v3 }
 0x32f   :  { %4875 = vmatmul.mubr.bf16.vlgmr.msra.gmra.mrb[12].mxu1 %v8520_v3  ;;  %4800 = vmatpush1.bf16.msra.mxu0 %v7111_v46  ;;  %v1822_v46 = vld [vmem:[#allocation9 + $0xc50] sm:$0xff] }
 0x330   :  { %4831 = vmatprep.mubr.bf16.mxu0 %v8526_v9  ;;  %4886 = vmatpush1.bf16.msra.mxu1 %v7113_v48  ;;  %v7223_v48 = vcombine.low %v1798_v34, %v1806_v35  ;;  %v7240_v50 = vcombine.high %v1814_v45, %v1822_v46  ;;  %v1910_v35 = vld [vmem:[#allocation9 + $0xf10] sm:$0xff] }
 0x331   :  { %4917 = vmatprep.mubr.bf16.mxu1 %v8526_v9  ;;  %4801 = vmatprep.subr.bf16.mxu0 %v7128_v49  ;;  %v7225_v49 = vcombine.low %v1799_v36, %v1807_v39  ;;  %v1918_v36 = vld [vmem:[#allocation9 + $0xf50] sm:$0xff]  ;;  %v1911_v39 = vld [vmem:[#allocation9 + $0xf18] sm:$0xff] }
 0x332   :  { %4887 = vmatprep.subr.bf16.mxu1 %v7130_v52  ;;  %v1830_v52 = vld [vmem:[#allocation9 + $0xc90] sm:$0xff] }
 0x333   :  { %4802 = vmatpush1.bf16.msra.mxu0 %v7127_v57  ;;  %v1839_v57 = vld [vmem:[#allocation9 + $0xcd8] sm:$0xff] }
 0x334   :  { %4888 = vmatpush1.bf16.msra.mxu1 %v7129_v58  ;;  %4803 = vmatprep.subr.bf16.mxu0 %v7144_v59  ;;  %v7239_v58 = vcombine.low %v1814_v45, %v1822_v46  ;;  %v7241_v59 = vcombine.low %v1815_v21, %v1823_v47  ;;  %v7258_v61 = vcombine.high %v1831_v55, %v1839_v57  ;;  %v1926_v46 = vld [vmem:[#allocation9 + $0xf90] sm:$0xff]  ;;  %v1927_v47 = vld [vmem:[#allocation9 + $0xf98] sm:$0xff] }
 0x335   :  { %4889 = vmatprep.subr.bf16.mxu1 %v7146_v60  ;;  %v7256_v60 = vcombine.high %v1830_v52, %v1838_v54  ;;  %v1934_v21 = vld [vmem:[#allocation9 + $0xfd0] sm:$0xff] }
 0x337   :  { %4804 = vmatpush1.bf16.msra.mxu0 %v7143_v1  ;;  %v1855_v1 = vld [vmem:[#allocation9 + $0xd58] sm:$0xff] }
 0x338   :  { %4890 = vmatpush1.bf16.msra.mxu1 %v7145_v2  ;;  %4805 = vmatprep.subr.bf16.mxu0 %v7160_v5  ;;  %v7255_v2 = vcombine.low %v1830_v52, %v1838_v54  ;;  %v7257_v5 = vcombine.low %v1831_v55, %v1839_v57  ;;  %v7274_v7 = vcombine.high %v1847_v0, %v1855_v1  ;;  %v1432_v54 = vld [vmem:[#allocation9 + $0x20] sm:$0xff]  ;;  %v1433_v57 = vld [vmem:[#allocation9 + $0x28] sm:$0xff] }
 0x339   :  { %4891 = vmatprep.subr.bf16.mxu1 %v7162_v6  ;;  %v7272_v6 = vcombine.high %v1846_v62, %v1854_v63  ;;  %v1440_v55 = vld [vmem:[#allocation9 + $0x60] sm:$0xff] }
 0x33b   :  { %4806 = vmatpush1.bf16.msra.mxu0 %v7159_v13  ;;  %v1871_v13 = vld [vmem:[#allocation9 + $0xdd8] sm:$0xff] }
 0x33c   :  { %4892 = vmatpush1.bf16.msra.mxu1 %v7161_v14  ;;  %4807 = vmatprep.subr.bf16.mxu0 %v7176_v15  ;;  %v7271_v14 = vcombine.low %v1846_v62, %v1854_v63  ;;  %v7273_v15 = vcombine.low %v1847_v0, %v1855_v1  ;;  %v7290_v17 = vcombine.high %v1863_v12, %v1871_v13  ;;  %v1448_v63 = vld [vmem:[#allocation9 + $0xa0] sm:$0xff] }
 0x33d   :  { %4893 = vmatprep.subr.bf16.mxu1 %v7178_v16  ;;  %v7288_v16 = vcombine.high %v1862_v10, %v1870_v11  ;;  %v1456_v0 = vld [vmem:[#allocation9 + $0xe0] sm:$0xff]  ;;  %v6859_v1 = vcombine.low %v1432_v54, %v1440_v55 }
 0x33f   :  { %4808 = vmatpush1.bf16.msra.mxu0 %v7175_v22  ;;  %v1887_v22 = vld [vmem:[#allocation9 + $0xe58] sm:$0xff] }
 0x340   :  { %4894 = vmatpush1.bf16.msra.mxu1 %v7177_v23  ;;  %4809 = vmatprep.subr.bf16.mxu0 %v7192_v24  ;;  %v7287_v23 = vcombine.low %v1862_v10, %v1870_v11  ;;  %v7289_v24 = vcombine.low %v1863_v12, %v1871_v13  ;;  %v7306_v26 = vcombine.high %v1879_v20, %v1887_v22  ;;  %v1464_v10 = vld [vmem:[#allocation9 + $0x120] sm:$0xff]  ;;  %v1465_v13 = vld [vmem:[#allocation9 + $0x128] sm:$0xff] }
 0x341   :  { %4895 = vmatprep.subr.bf16.mxu1 %v7194_v25  ;;  %v7304_v25 = vcombine.high %v1878_v18, %v1886_v19  ;;  %v1472_v11 = vld [vmem:[#allocation9 + $0x160] sm:$0xff] }
 0x343   :  { %4810 = vmatpush1.bf16.msra.mxu0 %v7191_v30  ;;  %v1903_v30 = vld [vmem:[#allocation9 + $0xed8] sm:$0xff] }
 0x344   :  { %4896 = vmatpush1.bf16.msra.mxu1 %v7193_v31  ;;  %4811 = vmatprep.subr.bf16.mxu0 %v7208_v32  ;;  %v7303_v31 = vcombine.low %v1878_v18, %v1886_v19  ;;  %v7305_v32 = vcombine.low %v1879_v20, %v1887_v22  ;;  %v7322_v34 = vcombine.high %v1895_v29, %v1903_v30  ;;  %v1480_v19 = vld [vmem:[#allocation9 + $0x1a0] sm:$0xff]  ;;  %v1481_v22 = vld [vmem:[#allocation9 + $0x1a8] sm:$0xff] }
 0x345   :  { %4897 = vmatprep.subr.bf16.mxu1 %v7210_v33  ;;  %v7320_v33 = vcombine.high %v1894_v27, %v1902_v28  ;;  %v1488_v20 = vld [vmem:[#allocation9 + $0x1e0] sm:$0xff] }
 0x347   :  { %4812 = vmatpush1.bf16.msra.mxu0 %v7207_v41  ;;  %v1919_v41 = vld [vmem:[#allocation9 + $0xf58] sm:$0xff] }
 0x348   :  { %4898 = vmatpush1.bf16.msra.mxu1 %v7209_v42  ;;  %4813 = vmatprep.subr.bf16.mxu0 %v7224_v43  ;;  %v7319_v42 = vcombine.low %v1894_v27, %v1902_v28  ;;  %v7321_v43 = vcombine.low %v1895_v29, %v1903_v30  ;;  %v7338_v45 = vcombine.high %v1911_v39, %v1919_v41  ;;  %v1496_v28 = vld [vmem:[#allocation9 + $0x220] sm:$0xff]  ;;  %v1497_v30 = vld [vmem:[#allocation9 + $0x228] sm:$0xff] }
 0x349   :  { %4899 = vmatprep.subr.bf16.mxu1 %v7226_v44  ;;  %v7336_v44 = vcombine.high %v1910_v35, %v1918_v36  ;;  %v1504_v29 = vld [vmem:[#allocation9 + $0x260] sm:$0xff] }
 0x34b   :  { %4814 = vmatpush1.bf16.msra.mxu0 %v7223_v48  ;;  %v1935_v48 = vld [vmem:[#allocation9 + $0xfd8] sm:$0xff] }
 0x34c   :  { %4900 = vmatpush1.bf16.msra.mxu1 %v7225_v49  ;;  %4815 = vmatprep.subr.bf16.mxu0 %v7240_v50  ;;  %v7335_v49 = vcombine.low %v1910_v35, %v1918_v36  ;;  %v7337_v50 = vcombine.low %v1911_v39, %v1919_v41  ;;  %v7354_v52 = vcombine.high %v1927_v47, %v1935_v48  ;;  %v1512_v36 = vld [vmem:[#allocation9 + $0x2a0] sm:$0xff]  ;;  %v1513_v41 = vld [vmem:[#allocation9 + $0x2a8] sm:$0xff] }
 0x34d   :  { %4901 = vmatprep.subr.bf16.mxu1 %v7242_v51  ;;  %v7352_v51 = vcombine.high %v1926_v46, %v1934_v21  ;;  %v1520_v39 = vld [vmem:[#allocation9 + $0x2e0] sm:$0xff] }
 0x34f   :  { %4816 = vmatpush1.bf16.msra.mxu0 %v7239_v58  ;;  %v1441_v58 = vld [vmem:[#allocation9 + $0x68] sm:$0xff] }
 0x350   :  { %4902 = vmatpush1.bf16.msra.mxu1 %v7241_v59  ;;  %4817 = vmatprep.subr.bf16.mxu0 %v7256_v60  ;;  %v7351_v59 = vcombine.low %v1926_v46, %v1934_v21  ;;  %v7353_v60 = vcombine.low %v1927_v47, %v1935_v48  ;;  %v6862_v62 = vcombine.high %v1433_v57, %v1441_v58  ;;  %v1528_v21 = vld [vmem:[#allocation9 + $0x320] sm:$0xff]  ;;  %v1529_v48 = vld [vmem:[#allocation9 + $0x328] sm:$0xff] }
 0x351   :  { %4903 = vmatprep.subr.bf16.mxu1 %v7258_v61  ;;  %v6860_v61 = vcombine.high %v1432_v54, %v1440_v55  ;;  %v1536_v47 = vld [vmem:[#allocation9 + $0x360] sm:$0xff] }
 0x352   :  { %v1544_v55 = vld [vmem:[#allocation9 + $0x3a0] sm:$0xff] }
 0x353   :  { %4818 = vmatpush1.bf16.msra.mxu0 %v7255_v2  ;;  %v1449_v2 = vld [vmem:[#allocation9 + $0xa8] sm:$0xff] }
 0x354   :  { %4904 = vmatpush1.bf16.msra.mxu1 %v7257_v5  ;;  %4819 = vmatprep.subr.bf16.mxu0 %v7272_v6  ;;  %v1457_v5 = vld [vmem:[#allocation9 + $0xe8] sm:$0xff]  ;;  %v6861_v6 = vcombine.low %v1433_v57, %v1441_v58  ;;  %v1552_v57 = vld [vmem:[#allocation9 + $0x3e0] sm:$0xff] }
 0x355   :  { %4905 = vmatprep.subr.bf16.mxu1 %v7274_v7  ;;  %v6876_v7 = vcombine.high %v1448_v63, %v1456_v0  ;;  %v6878_v12 = vcombine.high %v1449_v2, %v1457_v5  ;;  %v1545_v58 = vld [vmem:[#allocation9 + $0x3a8] sm:$0xff] }
 0x357   :  { %4820 = vmatpush1.bf16.msra.mxu0 %v7271_v14  ;;  %v1473_v14 = vld [vmem:[#allocation9 + $0x168] sm:$0xff] }
 0x358   :  { %4906 = vmatpush1.bf16.msra.mxu1 %v7273_v15  ;;  %4821 = vmatprep.subr.bf16.mxu0 %v7288_v16  ;;  %v6875_v15 = vcombine.low %v1448_v63, %v1456_v0  ;;  %v6877_v16 = vcombine.low %v1449_v2, %v1457_v5  ;;  %v6894_v18 = vcombine.high %v1465_v13, %v1473_v14  ;;  %v1560_v0 = vld [vmem:[#allocation9 + $0x420] sm:$0xff]  ;;  %v1561_v2 = vld [vmem:[#allocation9 + $0x428] sm:$0xff] }
 0x359   :  { %4907 = vmatprep.subr.bf16.mxu1 %v7290_v17  ;;  %v6892_v17 = vcombine.high %v1464_v10, %v1472_v11  ;;  %v1569_v5 = vld [vmem:[#allocation9 + $0x468] sm:$0xff] }
 0x35b   :  { %4822 = vmatpush1.bf16.msra.mxu0 %v7287_v23  ;;  %v1489_v23 = vld [vmem:[#allocation9 + $0x1e8] sm:$0xff] }
 0x35c   :  { %4908 = vmatpush1.bf16.msra.mxu1 %v7289_v24  ;;  %4823 = vmatprep.subr.bf16.mxu0 %v7304_v25  ;;  %v6891_v24 = vcombine.low %v1464_v10, %v1472_v11  ;;  %v6893_v25 = vcombine.low %v1465_v13, %v1473_v14  ;;  %v6910_v27 = vcombine.high %v1481_v22, %v1489_v23  ;;  %v1584_v13 = vld [vmem:[#allocation9 + $0x4e0] sm:$0xff]  ;;  %v1577_v14 = vld [vmem:[#allocation9 + $0x4a8] sm:$0xff] }
 0x35d   :  { %4909 = vmatprep.subr.bf16.mxu1 %v7306_v26  ;;  %v6908_v26 = vcombine.high %v1480_v19, %v1488_v20  ;;  %v6990_v11 = vcombine.high %v1561_v2, %v1569_v5 }
 0x35f   :  { %4824 = vmatpush1.bf16.msra.mxu0 %v7303_v31  ;;  %v1505_v31 = vld [vmem:[#allocation9 + $0x268] sm:$0xff] }
 0x360   :  { %4910 = vmatpush1.bf16.msra.mxu1 %v7305_v32  ;;  %4825 = vmatprep.subr.bf16.mxu0 %v7320_v33  ;;  %v6907_v32 = vcombine.low %v1480_v19, %v1488_v20  ;;  %v6909_v33 = vcombine.low %v1481_v22, %v1489_v23  ;;  %v6926_v35 = vcombine.high %v1497_v30, %v1505_v31  ;;  %v1592_v20 = vld [vmem:[#allocation9 + $0x520] sm:$0xff]  ;;  %v1593_v23 = vld [vmem:[#allocation9 + $0x528] sm:$0xff] }
 0x361   :  { %4911 = vmatprep.subr.bf16.mxu1 %v7322_v34  ;;  %v6924_v34 = vcombine.high %v1496_v28, %v1504_v29  ;;  %v1600_v22 = vld [vmem:[#allocation9 + $0x560] sm:$0xff] }
 0x363   :  { %4826 = vmatpush1.bf16.msra.mxu0 %v7319_v42  ;;  %v1521_v42 = vld [vmem:[#allocation9 + $0x2e8] sm:$0xff] }
 0x364   :  { %4912 = vmatpush1.bf16.msra.mxu1 %v7321_v43  ;;  %4827 = vmatprep.subr.bf16.mxu0 %v7336_v44  ;;  %v6923_v43 = vcombine.low %v1496_v28, %v1504_v29  ;;  %v6925_v44 = vcombine.low %v1497_v30, %v1505_v31  ;;  %v6942_v46 = vcombine.high %v1513_v41, %v1521_v42  ;;  %v1608_v29 = vld [vmem:[#allocation9 + $0x5a0] sm:$0xff]  ;;  %v1609_v31 = vld [vmem:[#allocation9 + $0x5a8] sm:$0xff] }
 0x365   :  { %4913 = vmatprep.subr.bf16.mxu1 %v7338_v45  ;;  %v6940_v45 = vcombine.high %v1512_v36, %v1520_v39  ;;  %v1616_v30 = vld [vmem:[#allocation9 + $0x5e0] sm:$0xff] }
 0x367   :  { %4828 = vmatpush1.bf16.msra.mxu0 %v7335_v49  ;;  %v1537_v49 = vld [vmem:[#allocation9 + $0x368] sm:$0xff] }
 0x368   :  { %4914 = vmatpush1.bf16.msra.mxu1 %v7337_v50  ;;  %4829 = vmatprep.subr.bf16.mxu0 %v7352_v51  ;;  %v6939_v50 = vcombine.low %v1512_v36, %v1520_v39  ;;  %v6941_v51 = vcombine.low %v1513_v41, %v1521_v42  ;;  %v6958_v54 = vcombine.high %v1529_v48, %v1537_v49  ;;  %v1624_v39 = vld [vmem:[#allocation9 + $0x620] sm:$0xff]  ;;  %v1625_v42 = vld [vmem:[#allocation9 + $0x628] sm:$0xff] }
 0x369   :  { %4915 = vmatprep.subr.bf16.mxu1 %v7354_v52  ;;  %v6956_v52 = vcombine.high %v1528_v21, %v1536_v47  ;;  %v1632_v41 = vld [vmem:[#allocation9 + $0x660] sm:$0xff] }
 0x36b   :  { %4830 = vmatpush1.bf16.msra.mxu0 %v7351_v59  ;;  %v1553_v59 = vld [vmem:[#allocation9 + $0x3e8] sm:$0xff] }
 0x36c   :  { %4916 = vmatpush1.bf16.msra.mxu1 %v7353_v60  ;;  %4928 = vmatprep.subr.bf16.mxu0 %v6860_v61  ;;  %v6955_v60 = vcombine.low %v1528_v21, %v1536_v47  ;;  %v6957_v61 = vcombine.low %v1529_v48, %v1537_v49  ;;  %v6974_v63 = vcombine.high %v1545_v58, %v1553_v59  ;;  %v1640_v47 = vld [vmem:[#allocation9 + $0x6a0] sm:$0xff]  ;;  %v1641_v49 = vld [vmem:[#allocation9 + $0x6a8] sm:$0xff] }
 0x36d   :  { %5014 = vmatprep.subr.bf16.mxu1 %v6862_v62  ;;  %v6972_v62 = vcombine.high %v1544_v55, %v1552_v57  ;;  %v1648_v48 = vld [vmem:[#allocation9 + $0x6e0] sm:$0xff] }
 0x36e   :  { %4832 = vmatmul.mubr.bf16.vlgmr.msra.gmra.mrb[12].mxu0 %v8522_v4 }
 0x36f   :  { %4918 = vmatmul.mubr.bf16.vlgmr.msra.gmra.mrb[12].mxu1 %v8522_v4  ;;  %4929 = vmatpush1.bf16.msra.mxu0 %v6859_v1  ;;  %v1568_v1 = vld [vmem:[#allocation9 + $0x460] sm:$0xff] }
 0x370   :  { %4960 = vmatprep.mubr.bf16.mxu0 %v8524_v8  ;;  %5015 = vmatpush1.bf16.msra.mxu1 %v6861_v6  ;;  %v6971_v6 = vcombine.low %v1544_v55, %v1552_v57  ;;  %v6988_v10 = vcombine.high %v1560_v0, %v1568_v1  ;;  %v1656_v57 = vld [vmem:[#allocation9 + $0x720] sm:$0xff] }
 0x371   :  { %5046 = vmatprep.mubr.bf16.mxu1 %v8524_v8  ;;  %4930 = vmatprep.subr.bf16.mxu0 %v6876_v7  ;;  %v6973_v7 = vcombine.low %v1545_v58, %v1553_v59  ;;  %v1664_v58 = vld [vmem:[#allocation9 + $0x760] sm:$0xff]  ;;  %v1657_v59 = vld [vmem:[#allocation9 + $0x728] sm:$0xff] }
 0x372   :  { %5016 = vmatprep.subr.bf16.mxu1 %v6878_v12  ;;  %v1576_v12 = vld [vmem:[#allocation9 + $0x4a0] sm:$0xff] }
 0x373   :  { %4931 = vmatpush1.bf16.msra.mxu0 %v6875_v15  ;;  %v1585_v15 = vld [vmem:[#allocation9 + $0x4e8] sm:$0xff] }
 0x374   :  { %5017 = vmatpush1.bf16.msra.mxu1 %v6877_v16  ;;  %4932 = vmatprep.subr.bf16.mxu0 %v6892_v17  ;;  %v6987_v16 = vcombine.low %v1560_v0, %v1568_v1  ;;  %v6989_v17 = vcombine.low %v1561_v2, %v1569_v5  ;;  %v7006_v19 = vcombine.high %v1577_v14, %v1585_v15  ;;  %v1672_v1 = vld [vmem:[#allocation9 + $0x7a0] sm:$0xff]  ;;  %v1673_v5 = vld [vmem:[#allocation9 + $0x7a8] sm:$0xff] }
 0x375   :  { %5018 = vmatprep.subr.bf16.mxu1 %v6894_v18  ;;  %v7004_v18 = vcombine.high %v1576_v12, %v1584_v13  ;;  %v1680_v2 = vld [vmem:[#allocation9 + $0x7e0] sm:$0xff] }
 0x377   :  { %4933 = vmatpush1.bf16.msra.mxu0 %v6891_v24  ;;  %v1601_v24 = vld [vmem:[#allocation9 + $0x568] sm:$0xff] }
 0x378   :  { %5019 = vmatpush1.bf16.msra.mxu1 %v6893_v25  ;;  %4934 = vmatprep.subr.bf16.mxu0 %v6908_v26  ;;  %v7003_v25 = vcombine.low %v1576_v12, %v1584_v13  ;;  %v7005_v26 = vcombine.low %v1577_v14, %v1585_v15  ;;  %v7022_v28 = vcombine.high %v1593_v23, %v1601_v24  ;;  %v1688_v13 = vld [vmem:[#allocation9 + $0x820] sm:$0xff]  ;;  %v1689_v15 = vld [vmem:[#allocation9 + $0x828] sm:$0xff] }
 0x379   :  { %5020 = vmatprep.subr.bf16.mxu1 %v6910_v27  ;;  %v7020_v27 = vcombine.high %v1592_v20, %v1600_v22  ;;  %v1696_v14 = vld [vmem:[#allocation9 + $0x860] sm:$0xff] }
 0x37b   :  { %4935 = vmatpush1.bf16.msra.mxu0 %v6907_v32  ;;  %v1617_v32 = vld [vmem:[#allocation9 + $0x5e8] sm:$0xff] }
 0x37c   :  { %5021 = vmatpush1.bf16.msra.mxu1 %v6909_v33  ;;  %4936 = vmatprep.subr.bf16.mxu0 %v6924_v34  ;;  %v7019_v33 = vcombine.low %v1592_v20, %v1600_v22  ;;  %v7021_v34 = vcombine.low %v1593_v23, %v1601_v24  ;;  %v7038_v36 = vcombine.high %v1609_v31, %v1617_v32  ;;  %v1704_v22 = vld [vmem:[#allocation9 + $0x8a0] sm:$0xff] }
 0x37d   :  { %5022 = vmatprep.subr.bf16.mxu1 %v6926_v35  ;;  %v7036_v35 = vcombine.high %v1608_v29, %v1616_v30  ;;  %v1712_v23 = vld [vmem:[#allocation9 + $0x8e0] sm:$0xff]  ;;  %v7115_v24 = vcombine.low %v1688_v13, %v1696_v14 }
 0x37f   :  { %4937 = vmatpush1.bf16.msra.mxu0 %v6923_v43  ;;  %v1633_v43 = vld [vmem:[#allocation9 + $0x668] sm:$0xff] }
 0x380   :  { %5023 = vmatpush1.bf16.msra.mxu1 %v6925_v44  ;;  %4938 = vmatprep.subr.bf16.mxu0 %v6940_v45  ;;  %v7035_v44 = vcombine.low %v1608_v29, %v1616_v30  ;;  %v7037_v45 = vcombine.low %v1609_v31, %v1617_v32  ;;  %v7054_v21 = vcombine.high %v1625_v42, %v1633_v43  ;;  %v1720_v29 = vld [vmem:[#allocation9 + $0x920] sm:$0xff]  ;;  %v1721_v32 = vld [vmem:[#allocation9 + $0x928] sm:$0xff] }
 0x381   :  { %5024 = vmatprep.subr.bf16.mxu1 %v6942_v46  ;;  %v7052_v46 = vcombine.high %v1624_v39, %v1632_v41  ;;  %v1728_v30 = vld [vmem:[#allocation9 + $0x960] sm:$0xff] }
 0x383   :  { %4939 = vmatpush1.bf16.msra.mxu0 %v6939_v50  ;;  %v1649_v50 = vld [vmem:[#allocation9 + $0x6e8] sm:$0xff] }
 0x384   :  { %5025 = vmatpush1.bf16.msra.mxu1 %v6941_v51  ;;  %4940 = vmatprep.subr.bf16.mxu0 %v6956_v52  ;;  %v7051_v51 = vcombine.low %v1624_v39, %v1632_v41  ;;  %v7053_v52 = vcombine.low %v1625_v42, %v1633_v43  ;;  %v7070_v55 = vcombine.high %v1641_v49, %v1649_v50  ;;  %v1736_v41 = vld [vmem:[#allocation9 + $0x9a0] sm:$0xff]  ;;  %v1737_v43 = vld [vmem:[#allocation9 + $0x9a8] sm:$0xff] }
 0x385   :  { %5026 = vmatprep.subr.bf16.mxu1 %v6958_v54  ;;  %v7068_v54 = vcombine.high %v1640_v47, %v1648_v48  ;;  %v1744_v42 = vld [vmem:[#allocation9 + $0x9e0] sm:$0xff] }
 0x387   :  { %4941 = vmatpush1.bf16.msra.mxu0 %v6955_v60  ;;  %v1665_v60 = vld [vmem:[#allocation9 + $0x768] sm:$0xff] }
 0x388   :  { %5027 = vmatpush1.bf16.msra.mxu1 %v6957_v61  ;;  %4942 = vmatprep.subr.bf16.mxu0 %v6972_v62  ;;  %v7067_v61 = vcombine.low %v1640_v47, %v1648_v48  ;;  %v7069_v62 = vcombine.low %v1641_v49, %v1649_v50  ;;  %v7086_v0 = vcombine.high %v1657_v59, %v1665_v60  ;;  %v1752_v48 = vld [vmem:[#allocation9 + $0xa20] sm:$0xff]  ;;  %v1753_v50 = vld [vmem:[#allocation9 + $0xa28] sm:$0xff] }
 0x389   :  { %5028 = vmatprep.subr.bf16.mxu1 %v6974_v63  ;;  %v7084_v63 = vcombine.high %v1656_v57, %v1664_v58  ;;  %v1760_v49 = vld [vmem:[#allocation9 + $0xa60] sm:$0xff] }
 0x38b   :  { %4943 = vmatpush1.bf16.msra.mxu0 %v6971_v6  ;;  %v1681_v6 = vld [vmem:[#allocation9 + $0x7e8] sm:$0xff] }
 0x38c   :  { %5029 = vmatpush1.bf16.msra.mxu1 %v6973_v7  ;;  %4944 = vmatprep.subr.bf16.mxu0 %v6988_v10  ;;  %v7083_v7 = vcombine.low %v1656_v57, %v1664_v58  ;;  %v7085_v10 = vcombine.low %v1657_v59, %v1665_v60  ;;  %v7102_v12 = vcombine.high %v1673_v5, %v1681_v6  ;;  %v1768_v58 = vld [vmem:[#allocation9 + $0xaa0] sm:$0xff]  ;;  %v1769_v60 = vld [vmem:[#allocation9 + $0xaa8] sm:$0xff] }
 0x38d   :  { %5030 = vmatprep.subr.bf16.mxu1 %v6990_v11  ;;  %v7100_v11 = vcombine.high %v1672_v1, %v1680_v2  ;;  %v1776_v59 = vld [vmem:[#allocation9 + $0xae0] sm:$0xff] }
 0x38f   :  { %4945 = vmatpush1.bf16.msra.mxu0 %v6987_v16  ;;  %v1697_v16 = vld [vmem:[#allocation9 + $0x868] sm:$0xff] }
 0x390   :  { %5031 = vmatpush1.bf16.msra.mxu1 %v6989_v17  ;;  %4946 = vmatprep.subr.bf16.mxu0 %v7004_v18  ;;  %v7099_v17 = vcombine.low %v1672_v1, %v1680_v2  ;;  %v7101_v18 = vcombine.low %v1673_v5, %v1681_v6  ;;  %v7118_v20 = vcombine.high %v1689_v15, %v1697_v16  ;;  %v1784_v5 = vld [vmem:[#allocation9 + $0xb20] sm:$0xff] }
 0x391   :  { %5032 = vmatprep.subr.bf16.mxu1 %v7006_v19  ;;  %v7116_v19 = vcombine.high %v1688_v13, %v1696_v14  ;;  %v7196_v1 = vcombine.high %v1768_v58, %v1776_v59  ;;  %v1792_v6 = vld [vmem:[#allocation9 + $0xb60] sm:$0xff] }
 0x393   :  { %4947 = vmatpush1.bf16.msra.mxu0 %v7003_v25  ;;  %v1705_v25 = vld [vmem:[#allocation9 + $0x8a8] sm:$0xff] }
 0x394   :  { %5033 = vmatpush1.bf16.msra.mxu1 %v7005_v26  ;;  %4948 = vmatprep.subr.bf16.mxu0 %v7020_v27  ;;  %v1713_v26 = vld [vmem:[#allocation9 + $0x8e8] sm:$0xff]  ;;  %v7117_v27 = vcombine.low %v1689_v15, %v1697_v16  ;;  %v7195_v15 = vcombine.low %v1768_v58, %v1776_v59 }
 0x395   :  { %5034 = vmatprep.subr.bf16.mxu1 %v7022_v28  ;;  %v7132_v28 = vcombine.high %v1704_v22, %v1712_v23  ;;  %v7134_v31 = vcombine.high %v1705_v25, %v1713_v26 }
 0x397   :  { %4949 = vmatpush1.bf16.msra.mxu0 %v7019_v33  ;;  %v1729_v33 = vld [vmem:[#allocation9 + $0x968] sm:$0xff] }
 0x398   :  { %5035 = vmatpush1.bf16.msra.mxu1 %v7021_v34  ;;  %4950 = vmatprep.subr.bf16.mxu0 %v7036_v35  ;;  %v7131_v34 = vcombine.low %v1704_v22, %v1712_v23  ;;  %v7133_v35 = vcombine.low %v1705_v25, %v1713_v26  ;;  %v7150_v39 = vcombine.high %v1721_v32, %v1729_v33 }
 0x399   :  { %5036 = vmatprep.subr.bf16.mxu1 %v7038_v36  ;;  %v7148_v36 = vcombine.high %v1720_v29, %v1728_v30 }
 0x39b   :  { %4951 = vmatpush1.bf16.msra.mxu0 %v7035_v44  ;;  %v1745_v44 = vld [vmem:[#allocation9 + $0x9e8] sm:$0xff] }
 0x39c   :  { %5037 = vmatpush1.bf16.msra.mxu1 %v7037_v45  ;;  %4952 = vmatprep.subr.bf16.mxu0 %v7052_v46  ;;  %v7147_v45 = vcombine.low %v1720_v29, %v1728_v30  ;;  %v7149_v46 = vcombine.low %v1721_v32, %v1729_v33  ;;  %v7166_v47 = vcombine.high %v1737_v43, %v1745_v44  ;;  %v1801_v29 = vld [vmem:[#allocation9 + $0xba8] sm:$0xff] }
 0x39d   :  { %5038 = vmatprep.subr.bf16.mxu1 %v7054_v21  ;;  %v7164_v21 = vcombine.high %v1736_v41, %v1744_v42  ;;  %v1809_v30 = vld [vmem:[#allocation9 + $0xbe8] sm:$0xff] }
 0x39f   :  { %4953 = vmatpush1.bf16.msra.mxu0 %v7051_v51  ;;  %v1761_v51 = vld [vmem:[#allocation9 + $0xa68] sm:$0xff] }
 0x3a0   :  { %5039 = vmatpush1.bf16.msra.mxu1 %v7053_v52  ;;  %4954 = vmatprep.subr.bf16.mxu0 %v7068_v54  ;;  %v7163_v52 = vcombine.low %v1736_v41, %v1744_v42  ;;  %v7165_v54 = vcombine.low %v1737_v43, %v1745_v44  ;;  %v7182_v57 = vcombine.high %v1753_v50, %v1761_v51 }
 0x3a1   :  { %5040 = vmatprep.subr.bf16.mxu1 %v7070_v55  ;;  %v7180_v55 = vcombine.high %v1752_v48, %v1760_v49 }
 0x3a3   :  { %4955 = vmatpush1.bf16.msra.mxu0 %v7067_v61  ;;  %v1777_v61 = vld [vmem:[#allocation9 + $0xae8] sm:$0xff] }
 0x3a4   :  { %5041 = vmatpush1.bf16.msra.mxu1 %v7069_v62  ;;  %4956 = vmatprep.subr.bf16.mxu0 %v7084_v63  ;;  %v7179_v62 = vcombine.low %v1752_v48, %v1760_v49  ;;  %v8550_v63 = vld [vmem:[#allocation10] sm:$0xff]  ;;  %v7198_v2 = vcombine.high %v1769_v60, %v1777_v61  ;;  %v7197_v16 = vcombine.low %v1769_v60, %v1777_v61 }
 0x3a5   :  { %5042 = vmatprep.subr.bf16.mxu1 %v7086_v0  ;;  %v7181_v0 = vcombine.low %v1753_v50, %v1761_v51  ;;  %v1951_v13 = vrot.slane %v8550_v63, %v8500_v40  ;;  %v1959_v14 = vrot.slane %v8550_v63, %v8508_v56  ;;  %v1816_v48 = vld [vmem:[#allocation9 + $0xc20] sm:$0xff] }
 0x3a6   :  { %v1824_v49 = vld [vmem:[#allocation9 + $0xc60] sm:$0xff] }
 0x3a7   :  { %4957 = vmatpush1.bf16.msra.mxu0 %v7083_v7  ;;  %v1947_v7 = vrot.slane %v8550_v63, %v8497_v38 }
 0x3a8   :  { %5043 = vmatpush1.bf16.msra.mxu1 %v7085_v10  ;;  %4958 = vmatprep.subr.bf16.mxu0 %v7100_v11  ;;  %v1955_v10 = vrot.slane %v8550_v63, %v8505_v53  ;;  %v1785_v11 = vld [vmem:[#allocation9 + $0xb28] sm:$0xff] }
 0x3a9   :  { %5044 = vmatprep.subr.bf16.mxu1 %v7102_v12  ;;  %v1793_v12 = vld [vmem:[#allocation9 + $0xb68] sm:$0xff] }
 0x3aa   :  { %v7214_v23 = vcombine.high %v1785_v11, %v1793_v12 }
 0x3ab   :  { %4959 = vmatpush1.bf16.msra.mxu0 %v7099_v17  ;;  %v7212_v17 = vcombine.high %v1784_v5, %v1792_v6 }
 0x3ac   :  { %5045 = vmatpush1.bf16.msra.mxu1 %v7101_v18  ;;  %4971 = vmatprep.subr.bf16.mxu0 %v7116_v19  ;;  %v1800_v18 = vld [vmem:[#allocation9 + $0xba0] sm:$0xff] }
 0x3ad   :  { %5057 = vmatprep.subr.bf16.mxu1 %v7118_v20  ;;  %v1808_v19 = vld [vmem:[#allocation9 + $0xbe0] sm:$0xff] }
 0x3ae   :  { %4961 = vmatmul.mubr.bf16.vlgmr.msra.gmra.mrb[16].mxu0 %v8520_v3  ;;  %v7228_v44 = vcombine.high %v1800_v18, %v1808_v19 }
 0x3af   :  { %5047 = vmatmul.mubr.bf16.vlgmr.msra.gmra.mrb[16].mxu1 %v8520_v3  ;;  %4972 = vmatpush1.bf16.msra.mxu0 %v7115_v24 }
 0x3b0   :  { %5003 = vmatprep.mubr.bf16.mxu0 %v8526_v9  ;;  %5058 = vmatpush1.bf16.msra.mxu1 %v7117_v27 }
 0x3b1   :  { %5089 = vmatprep.mubr.bf16.mxu1 %v8526_v9  ;;  %4973 = vmatprep.subr.bf16.mxu0 %v7132_v28  ;;  %v7211_v28 = vcombine.low %v1784_v5, %v1792_v6 }
 0x3b2   :  { %5059 = vmatprep.subr.bf16.mxu1 %v7134_v31 }
 0x3b3   :  { %4974 = vmatpush1.bf16.msra.mxu0 %v7131_v34 }
 0x3b4   :  { %5060 = vmatpush1.bf16.msra.mxu1 %v7133_v35  ;;  %4975 = vmatprep.subr.bf16.mxu0 %v7148_v36  ;;  %v7213_v35 = vcombine.low %v1785_v11, %v1793_v12  ;;  %v7227_v36 = vcombine.low %v1800_v18, %v1808_v19  ;;  %v1833_v11 = vld [vmem:[#allocation9 + $0xca8] sm:$0xff]  ;;  %v1856_v18 = vld [vmem:[#allocation9 + $0xd60] sm:$0xff] }
 0x3b5   :  { %5061 = vmatprep.subr.bf16.mxu1 %v7150_v39  ;;  %v1841_v12 = vld [vmem:[#allocation9 + $0xce8] sm:$0xff] }
 0x3b6   :  { %v1849_v19 = vld [vmem:[#allocation9 + $0xd28] sm:$0xff] }
 0x3b7   :  { %4976 = vmatpush1.bf16.msra.mxu0 %v7147_v45 }
 0x3b8   :  { %5062 = vmatpush1.bf16.msra.mxu1 %v7149_v46  ;;  %4977 = vmatprep.subr.bf16.mxu0 %v7164_v21  ;;  %v7229_v21 = vcombine.low %v1801_v29, %v1809_v30 }
 0x3b9   :  { %5063 = vmatprep.subr.bf16.mxu1 %v7166_v47  ;;  %v7230_v47 = vcombine.high %v1801_v29, %v1809_v30  ;;  %v1873_v29 = vld [vmem:[#allocation9 + $0xde8] sm:$0xff] }
 0x3bb   :  { %4978 = vmatpush1.bf16.msra.mxu0 %v7163_v52 }
 0x3bc   :  { %5064 = vmatpush1.bf16.msra.mxu1 %v7165_v54  ;;  %4979 = vmatprep.subr.bf16.mxu0 %v7180_v55  ;;  %v1817_v55 = vld [vmem:[#allocation9 + $0xc28] sm:$0xff] }
 0x3bd   :  { %5065 = vmatprep.subr.bf16.mxu1 %v7182_v57  ;;  %v1825_v57 = vld [vmem:[#allocation9 + $0xc68] sm:$0xff] }
 0x3be   :  { %v7246_v6 = vcombine.high %v1817_v55, %v1825_v57 }
 0x3bf   :  { %4980 = vmatpush1.bf16.msra.mxu0 %v7179_v62 }
 0x3c0   :  { %5066 = vmatpush1.bf16.msra.mxu1 %v7181_v0  ;;  %4981 = vmatprep.subr.bf16.mxu0 %v7196_v1  ;;  %v7244_v1 = vcombine.high %v1816_v48, %v1824_v49 }
 0x3c1   :  { %v4661_v20 = vpop.f32.mrb[8].mxu0  ;;  %v4747_v22 = vpop.f32.mrb[8].mxu1  ;;  %5067 = vmatprep.subr.bf16.mxu1 %v7198_v2 }
 0x3c2   :  { %v7676_v24 = vadd.f32 %v4661_v20, %v1947_v7  ;;  %v7680_v25 = vadd.f32 %v4747_v22, %v1955_v10  ;;  %v4663_v26 = vpop.f32.mrb[9].mxu0  ;;  %v4749_v27 = vpop.f32.mrb[9].mxu1  ;;  %v1857_v20 = vld [vmem:[#allocation9 + $0xd68] sm:$0xff] }
 0x3c3   :  { %v7677_v31 = vadd.f32 %v4663_v26, %v1951_v13  ;;  %v7681_v32 = vadd.f32 %v4749_v27, %v1959_v14  ;;  %v4665_v33 = vpop.f32.mrb[10].mxu0  ;;  %v4751_v34 = vpop.f32.mrb[10].mxu1  ;;  %4982 = vmatpush1.bf16.msra.mxu0 %v7195_v15  ;;  %v1864_v26 = vld [vmem:[#allocation9 + $0xda0] sm:$0xff] }
 0x3c4   :  { %v7678_v39 = vadd.f32 %v4665_v33, %v1947_v7  ;;  %v7682_v41 = vadd.f32 %v4751_v34, %v1955_v10  ;;  %5068 = vmatpush1.bf16.msra.mxu1 %v7197_v16  ;;  %v4667_v42 = vpop.f32.mrb[11].mxu0  ;;  %v4753_v43 = vpop.f32.mrb[11].mxu1  ;;  %4983 = vmatprep.subr.bf16.mxu0 %v7212_v17  ;;  %v5272_v50 = vmax.f32 %v7676_v24, 0.0  ;;  %v5274_v51 = vmax.f32 %v7680_v25, 0.0  ;;  %v1832_v7 = vld [vmem:[#allocation9 + $0xca0] sm:$0xff] }
 0x3c5   :  { %v7679_v45 = vadd.f32 %v4667_v42, %v1951_v13  ;;  %v7683_v46 = vadd.f32 %v4753_v43, %v1959_v14  ;;  %5069 = vmatprep.subr.bf16.mxu1 %v7214_v23  ;;  %v5273_v58 = vmax.f32 %v7677_v31, 0.0  ;;  %v5275_v59 = vmax.f32 %v7681_v32, 0.0  ;;  %v1840_v10 = vld [vmem:[#allocation9 + $0xce0] sm:$0xff] }
 0x3c6   :  { %v5288_v52 = vmax.f32 %v7678_v39, 0.0  ;;  %v5290_v54 = vmax.f32 %v7682_v41, 0.0  ;;  %v7243_v13 = vcombine.low %v1816_v48, %v1824_v49  ;;  %v7245_v14 = vcombine.low %v1817_v55, %v1825_v57  ;;  %v1848_v17 = vld [vmem:[#allocation9 + $0xd20] sm:$0xff]  ;;  %v1889_v39 = vld [vmem:[#allocation9 + $0xe68] sm:$0xff] }
 0x3c7   :  { %v5289_v60 = vmax.f32 %v7679_v45, 0.0  ;;  %v5291_v61 = vmax.f32 %v7683_v46, 0.0  ;;  %4984 = vmatpush1.bf16.msra.mxu0 %v7211_v28  ;;  %v7260_v15 = vcombine.high %v1832_v7, %v1840_v10  ;;  %v7262_v16 = vcombine.high %v1833_v11, %v1841_v12  ;;  %v1872_v27 = vld [vmem:[#allocation9 + $0xde0] sm:$0xff]  ;;  %v1865_v28 = vld [vmem:[#allocation9 + $0xda8] sm:$0xff] }
 0x3c8   :  { %v8560_v62 = vpack.c.bf16 %v5288_v52, %v5272_v50  ;;  %v8562_v0 = vpack.c.bf16 %v5290_v54, %v5274_v51  ;;  %5070 = vmatpush1.bf16.msra.mxu1 %v7213_v35  ;;  %4985 = vmatprep.subr.bf16.mxu0 %v7228_v44  ;;  %v7259_v22 = vcombine.low %v1832_v7, %v1840_v10  ;;  %v1880_v34 = vld [vmem:[#allocation9 + $0xe20] sm:$0xff]  ;;  %v1913_v55 = vld [vmem:[#allocation9 + $0xf28] sm:$0xff] }
 0x3c9   :  { %v8564_v2 = vpack.c.bf16 %v5289_v60, %v5273_v58  ;;  %v8566_v5 = vpack.c.bf16 %v5291_v61, %v5275_v59  ;;  %5071 = vmatprep.subr.bf16.mxu1 %v7230_v47  ;;  %v7261_v23 = vcombine.low %v1833_v11, %v1841_v12  ;;  %v7276_v24 = vcombine.high %v1848_v17, %v1856_v18  ;;  %v1888_v35 = vld [vmem:[#allocation9 + $0xe60] sm:$0xff]  ;;  %v1905_v47 = vld [vmem:[#allocation9 + $0xee8] sm:$0xff] }
 0x3ca   :  { %v7278_v25 = vcombine.high %v1849_v19, %v1857_v20  ;;  %v7275_v30 = vcombine.low %v1848_v17, %v1856_v18  ;;  %v7277_v31 = vcombine.low %v1849_v19, %v1857_v20  ;;  %v7292_v32 = vcombine.high %v1864_v26, %v1872_v27  ;;  %v1896_v45 = vld [vmem:[#allocation9 + $0xea0] sm:$0xff]  ;;  %v1921_v57 = vld [vmem:[#allocation9 + $0xf68] sm:$0xff]  ;;  %v1435_v17 = vld [vmem:[#allocation9 + $0x38] sm:$0xff] }
 0x3cb   :  { %4986 = vmatpush1.bf16.msra.mxu0 %v7227_v36  ;;  %v7294_v33 = vcombine.high %v1865_v28, %v1873_v29  ;;  %v1881_v36 = vld [vmem:[#allocation9 + $0xe28] sm:$0xff]  ;;  %v7291_v41 = vcombine.low %v1864_v26, %v1872_v27  ;;  %v7293_v42 = vcombine.low %v1865_v28, %v1873_v29  ;;  %v7308_v43 = vcombine.high %v1880_v34, %v1888_v35  ;;  %v1904_v46 = vld [vmem:[#allocation9 + $0xee0] sm:$0xff]  ;;  %v1443_v18 = vld [vmem:[#allocation9 + $0x78] sm:$0xff] }
 0x3cc   :  { %5072 = vmatpush1.bf16.msra.mxu1 %v7229_v21  ;;  %4987 = vmatprep.subr.bf16.mxu0 %v7244_v1  ;;  %v7310_v44 = vcombine.high %v1881_v36, %v1889_v39  ;;  %v1897_v21 = vld [vmem:[#allocation9 + $0xea8] sm:$0xff]  ;;  %v7307_v48 = vcombine.low %v1880_v34, %v1888_v35  ;;  %v7309_v49 = vcombine.low %v1881_v36, %v1889_v39  ;;  %v1912_v52 = vld [vmem:[#allocation9 + $0xf20] sm:$0xff]  ;;  %v1451_v27 = vld [vmem:[#allocation9 + $0xb8] sm:$0xff] }
 0x3cd   :  { %5073 = vmatprep.subr.bf16.mxu1 %v7246_v6  ;;  %v7324_v50 = vcombine.high %v1896_v45, %v1904_v46  ;;  %v7326_v51 = vcombine.high %v1897_v21, %v1905_v47  ;;  %v1920_v54 = vld [vmem:[#allocation9 + $0xf60] sm:$0xff]  ;;  %v7323_v58 = vcombine.low %v1896_v45, %v1904_v46  ;;  %v7325_v59 = vcombine.low %v1897_v21, %v1905_v47  ;;  %v1929_v7 = vld [vmem:[#allocation9 + $0xfa8] sm:$0xff]  ;;  %v1459_v28 = vld [vmem:[#allocation9 + $0xf8] sm:$0xff] }
 0x3ce   :  { %v7340_v60 = vcombine.high %v1912_v52, %v1920_v54  ;;  %v7342_v61 = vcombine.high %v1913_v55, %v1921_v57  ;;  %v1928_v1 = vld [vmem:[#allocation9 + $0xfa0] sm:$0xff]  ;;  %v1937_v10 = vld [vmem:[#allocation9 + $0xfe8] sm:$0xff]  ;;  %v7339_v11 = vcombine.low %v1912_v52, %v1920_v54  ;;  %v7341_v12 = vcombine.low %v1913_v55, %v1921_v57  ;;  %v1467_v34 = vld [vmem:[#allocation9 + $0x138] sm:$0xff] }
 0x3cf   :  { %4988 = vmatpush1.bf16.msra.mxu0 %v7243_v13  ;;  %v1936_v6 = vld [vmem:[#allocation9 + $0xfe0] sm:$0xff]  ;;  %v7357_v20 = vcombine.low %v1929_v7, %v1937_v10  ;;  %v6865_v29 = vcombine.low %v1435_v17, %v1443_v18  ;;  %v1475_v35 = vld [vmem:[#allocation9 + $0x178] sm:$0xff]  ;;  %v6881_v39 = vcombine.low %v1451_v27, %v1459_v28 }
 0x3d0   :  { %5074 = vmatpush1.bf16.msra.mxu1 %v7245_v14  ;;  %4989 = vmatprep.subr.bf16.mxu0 %v7260_v15  ;;  %v7356_v13 = vcombine.high %v1928_v1, %v1936_v6  ;;  %v7358_v14 = vcombine.high %v1929_v7, %v1937_v10  ;;  %v1434_v15 = vld [vmem:[#allocation9 + $0x30] sm:$0xff]  ;;  %v7355_v19 = vcombine.low %v1928_v1, %v1936_v6  ;;  %v1483_v45 = vld [vmem:[#allocation9 + $0x1b8] sm:$0xff] }
 0x3d1   :  { %5075 = vmatprep.subr.bf16.mxu1 %v7262_v16  ;;  %v1442_v16 = vld [vmem:[#allocation9 + $0x70] sm:$0xff]  ;;  %v1491_v46 = vld [vmem:[#allocation9 + $0x1f8] sm:$0xff]  ;;  %v6897_v47 = vcombine.low %v1467_v34, %v1475_v35 }
 0x3d2   :  { %v6863_v26 = vcombine.low %v1434_v15, %v1442_v16  ;;  %v1499_v52 = vld [vmem:[#allocation9 + $0x238] sm:$0xff]  ;;  %v6913_v55 = vcombine.low %v1483_v45, %v1491_v46 }
 0x3d3   :  { %4990 = vmatpush1.bf16.msra.mxu0 %v7259_v22  ;;  %v6864_v22 = vcombine.high %v1434_v15, %v1442_v16  ;;  %v1507_v54 = vld [vmem:[#allocation9 + $0x278] sm:$0xff] }
 0x3d4   :  { %5076 = vmatpush1.bf16.msra.mxu1 %v7261_v23  ;;  %4991 = vmatprep.subr.bf16.mxu0 %v7276_v24  ;;  %v6866_v23 = vcombine.high %v1435_v17, %v1443_v18  ;;  %v1450_v24 = vld [vmem:[#allocation9 + $0xb0] sm:$0xff]  ;;  %v1523_v1 = vld [vmem:[#allocation9 + $0x2f8] sm:$0xff]  ;;  %v6929_v7 = vcombine.low %v1499_v52, %v1507_v54 }
 0x3d5   :  { %5077 = vmatprep.subr.bf16.mxu1 %v7278_v25  ;;  %v1458_v25 = vld [vmem:[#allocation9 + $0xf0] sm:$0xff]  ;;  %v1539_v15 = vld [vmem:[#allocation9 + $0x378] sm:$0xff] }
 0x3d6   :  { %v6879_v36 = vcombine.low %v1450_v24, %v1458_v25 }
 0x3d7   :  { %4992 = vmatpush1.bf16.msra.mxu0 %v7275_v30  ;;  %v6880_v30 = vcombine.high %v1450_v24, %v1458_v25  ;;  %v1555_v24 = vld [vmem:[#allocation9 + $0x3f8] sm:$0xff] }
 0x3d8   :  { %5078 = vmatpush1.bf16.msra.mxu1 %v7277_v31  ;;  %4993 = vmatprep.subr.bf16.mxu0 %v7292_v32  ;;  %v1466_v31 = vld [vmem:[#allocation9 + $0x130] sm:$0xff] }
 0x3d9   :  { %5079 = vmatprep.subr.bf16.mxu1 %v7294_v33  ;;  %v1474_v32 = vld [vmem:[#allocation9 + $0x170] sm:$0xff]  ;;  %v6882_v33 = vcombine.high %v1451_v27, %v1459_v28 }
 0x3da   :  { %v6895_v21 = vcombine.low %v1466_v31, %v1474_v32 }
 0x3db   :  { %4994 = vmatpush1.bf16.msra.mxu0 %v7291_v41  ;;  %v6896_v41 = vcombine.high %v1466_v31, %v1474_v32  ;;  %v1563_v31 = vld [vmem:[#allocation9 + $0x438] sm:$0xff] }
 0x3dc   :  { %5080 = vmatpush1.bf16.msra.mxu1 %v7293_v42  ;;  %4995 = vmatprep.subr.bf16.mxu0 %v7308_v43  ;;  %v6898_v42 = vcombine.high %v1467_v34, %v1475_v35  ;;  %v1482_v43 = vld [vmem:[#allocation9 + $0x1b0] sm:$0xff]  ;;  %v1571_v32 = vld [vmem:[#allocation9 + $0x478] sm:$0xff] }
 0x3dd   :  { %5081 = vmatprep.subr.bf16.mxu1 %v7310_v44  ;;  %v1490_v44 = vld [vmem:[#allocation9 + $0x1f0] sm:$0xff] }
 0x3df   :  { %4996 = vmatpush1.bf16.msra.mxu0 %v7307_v48  ;;  %v6912_v48 = vcombine.high %v1482_v43, %v1490_v44 }
 0x3e0   :  { %5082 = vmatpush1.bf16.msra.mxu1 %v7309_v49  ;;  %4997 = vmatprep.subr.bf16.mxu0 %v7324_v50  ;;  %v6914_v49 = vcombine.high %v1483_v45, %v1491_v46  ;;  %v1498_v50 = vld [vmem:[#allocation9 + $0x230] sm:$0xff]  ;;  %v6993_v45 = vcombine.low %v1563_v31, %v1571_v32 }
 0x3e1   :  { %5083 = vmatprep.subr.bf16.mxu1 %v7326_v51  ;;  %v1506_v51 = vld [vmem:[#allocation9 + $0x270] sm:$0xff] }
 0x3e2   :  { %v6928_v57 = vcombine.high %v1498_v50, %v1506_v51  ;;  %v6927_v6 = vcombine.low %v1498_v50, %v1506_v51  ;;  %v1603_v50 = vld [vmem:[#allocation9 + $0x578] sm:$0xff] }
 0x3e3   :  { %4998 = vmatpush1.bf16.msra.mxu0 %v7323_v58  ;;  %v6930_v58 = vcombine.high %v1499_v52, %v1507_v54 }
 0x3e4   :  { %5084 = vmatpush1.bf16.msra.mxu1 %v7325_v59  ;;  %4999 = vmatprep.subr.bf16.mxu0 %v7340_v60  ;;  %v1514_v59 = vld [vmem:[#allocation9 + $0x2b0] sm:$0xff] }
 0x3e5   :  { %5085 = vmatprep.subr.bf16.mxu1 %v7342_v61  ;;  %v1522_v60 = vld [vmem:[#allocation9 + $0x2f0] sm:$0xff]  ;;  %v1515_v61 = vld [vmem:[#allocation9 + $0x2b8] sm:$0xff] }
 0x3e6   :  { %v6944_v10 = vcombine.high %v1514_v59, %v1522_v60  ;;  %v6943_v16 = vcombine.low %v1514_v59, %v1522_v60  ;;  %v6945_v17 = vcombine.low %v1515_v61, %v1523_v1  ;;  %v1619_v59 = vld [vmem:[#allocation9 + $0x5f8] sm:$0xff] }
 0x3e7   :  { %5000 = vmatpush1.bf16.msra.mxu0 %v7339_v11  ;;  %v6946_v11 = vcombine.high %v1515_v61, %v1523_v1 }
 0x3e8   :  { %5086 = vmatpush1.bf16.msra.mxu1 %v7341_v12  ;;  %5001 = vmatprep.subr.bf16.mxu0 %v7356_v13  ;;  %v1530_v12 = vld [vmem:[#allocation9 + $0x330] sm:$0xff] }
 0x3e9   :  { %5087 = vmatprep.subr.bf16.mxu1 %v7358_v14  ;;  %v1538_v13 = vld [vmem:[#allocation9 + $0x370] sm:$0xff]  ;;  %v1531_v14 = vld [vmem:[#allocation9 + $0x338] sm:$0xff] }
 0x3ea   :  { %v6960_v18 = vcombine.high %v1530_v12, %v1538_v13  ;;  %v6959_v25 = vcombine.low %v1530_v12, %v1538_v13  ;;  %v1635_v12 = vld [vmem:[#allocation9 + $0x678] sm:$0xff] }
 0x3eb   :  { %5002 = vmatpush1.bf16.msra.mxu0 %v7355_v19  ;;  %v6962_v19 = vcombine.high %v1531_v14, %v1539_v15 }
 0x3ec   :  { %5088 = vmatpush1.bf16.msra.mxu1 %v7357_v20  ;;  %5100 = vmatprep.subr.bf16.mxu0 %v6864_v22  ;;  %v1546_v20 = vld [vmem:[#allocation9 + $0x3b0] sm:$0xff] }
 0x3ed   :  { %5186 = vmatprep.subr.bf16.mxu1 %v6866_v23  ;;  %v1554_v22 = vld [vmem:[#allocation9 + $0x3f0] sm:$0xff]  ;;  %v1547_v23 = vld [vmem:[#allocation9 + $0x3b8] sm:$0xff] }
 0x3ee   :  { %5004 = vmatmul.mubr.bf16.vlgmr.msra.gmra.mrb[16].mxu0 %v8522_v4  ;;  %v6976_v27 = vcombine.high %v1546_v20, %v1554_v22  ;;  %v6978_v28 = vcombine.high %v1547_v23, %v1555_v24  ;;  %v6977_v34 = vcombine.low %v1547_v23, %v1555_v24 }
 0x3ef   :  { %5090 = vmatmul.mubr.bf16.vlgmr.msra.gmra.mrb[16].mxu1 %v8522_v4  ;;  %5101 = vmatpush1.bf16.msra.mxu0 %v6863_v26  ;;  %v6961_v26 = vcombine.low %v1531_v14, %v1539_v15 }
 0x3f0   :  { %5132 = vmatprep.mubr.bf16.mxu0 %v8524_v8  ;;  %5187 = vmatpush1.bf16.msra.mxu1 %v6865_v29  ;;  %v1562_v29 = vld [vmem:[#allocation9 + $0x430] sm:$0xff] }
 0x3f1   :  { %5218 = vmatprep.mubr.bf16.mxu1 %v8524_v8  ;;  %5102 = vmatprep.subr.bf16.mxu0 %v6880_v30  ;;  %v6911_v8 = vcombine.low %v1482_v43, %v1490_v44  ;;  %v1570_v30 = vld [vmem:[#allocation9 + $0x470] sm:$0xff]  ;;  %v1587_v43 = vld [vmem:[#allocation9 + $0x4f8] sm:$0xff] }
 0x3f2   :  { %5188 = vmatprep.subr.bf16.mxu1 %v6882_v33  ;;  %v6975_v33 = vcombine.low %v1546_v20, %v1554_v22  ;;  %v6992_v35 = vcombine.high %v1562_v29, %v1570_v30  ;;  %v6991_v44 = vcombine.low %v1562_v29, %v1570_v30  ;;  %v1651_v20 = vld [vmem:[#allocation9 + $0x6f8] sm:$0xff] }
 0x3f3   :  { %5103 = vmatpush1.bf16.msra.mxu0 %v6879_v36  ;;  %v6994_v36 = vcombine.high %v1563_v31, %v1571_v32  ;;  %v1667_v29 = vld [vmem:[#allocation9 + $0x778] sm:$0xff] }
 0x3f4   :  { %5189 = vmatpush1.bf16.msra.mxu1 %v6881_v39  ;;  %5104 = vmatprep.subr.bf16.mxu0 %v6896_v41  ;;  %v1578_v39 = vld [vmem:[#allocation9 + $0x4b0] sm:$0xff] }
 0x3f5   :  { %5190 = vmatprep.subr.bf16.mxu1 %v6898_v42  ;;  %v1586_v41 = vld [vmem:[#allocation9 + $0x4f0] sm:$0xff]  ;;  %v1579_v42 = vld [vmem:[#allocation9 + $0x4b8] sm:$0xff] }
 0x3f6   :  { %v7008_v46 = vcombine.high %v1578_v39, %v1586_v41  ;;  %v7007_v51 = vcombine.low %v1578_v39, %v1586_v41  ;;  %v7009_v52 = vcombine.low %v1579_v42, %v1587_v43  ;;  %v1683_v39 = vld [vmem:[#allocation9 + $0x7f8] sm:$0xff] }
 0x3f7   :  { %5105 = vmatpush1.bf16.msra.mxu0 %v6895_v21  ;;  %v7010_v21 = vcombine.high %v1579_v42, %v1587_v43 }
 0x3f8   :  { %5191 = vmatpush1.bf16.msra.mxu1 %v6897_v47  ;;  %5106 = vmatprep.subr.bf16.mxu0 %v6912_v48  ;;  %v1594_v47 = vld [vmem:[#allocation9 + $0x530] sm:$0xff] }
 0x3f9   :  { %5192 = vmatprep.subr.bf16.mxu1 %v6914_v49  ;;  %v1602_v48 = vld [vmem:[#allocation9 + $0x570] sm:$0xff]  ;;  %v1595_v49 = vld [vmem:[#allocation9 + $0x538] sm:$0xff] }
 0x3fa   :  { %v7024_v54 = vcombine.high %v1594_v47, %v1602_v48  ;;  %v7023_v60 = vcombine.low %v1594_v47, %v1602_v48  ;;  %v7025_v61 = vcombine.low %v1595_v49, %v1603_v50  ;;  %v1699_v47 = vld [vmem:[#allocation9 + $0x878] sm:$0xff] }
 0x3fb   :  { %5107 = vmatpush1.bf16.msra.mxu0 %v6911_v8  ;;  %v7026_v8 = vcombine.high %v1595_v49, %v1603_v50 }
 0x3fc   :  { %5193 = vmatpush1.bf16.msra.mxu1 %v6913_v55  ;;  %5108 = vmatprep.subr.bf16.mxu0 %v6928_v57  ;;  %v1610_v55 = vld [vmem:[#allocation9 + $0x5b0] sm:$0xff] }
 0x3fd   :  { %5194 = vmatprep.subr.bf16.mxu1 %v6930_v58  ;;  %v1618_v57 = vld [vmem:[#allocation9 + $0x5f0] sm:$0xff]  ;;  %v1611_v58 = vld [vmem:[#allocation9 + $0x5b8] sm:$0xff] }
 0x3fe   :  { %v7040_v1 = vcombine.high %v1610_v55, %v1618_v57  ;;  %v7039_v13 = vcombine.low %v1610_v55, %v1618_v57  ;;  %v7041_v14 = vcombine.low %v1611_v58, %v1619_v59  ;;  %v1707_v55 = vld [vmem:[#allocation9 + $0x8b8] sm:$0xff] }
 0x3ff   :  { %5109 = vmatpush1.bf16.msra.mxu0 %v6927_v6  ;;  %v7042_v6 = vcombine.high %v1611_v58, %v1619_v59  ;;  %v1715_v57 = vld [vmem:[#allocation9 + $0x8f8] sm:$0xff] }
 0x400   :  { %5195 = vmatpush1.bf16.msra.mxu1 %v6929_v7  ;;  %5110 = vmatprep.subr.bf16.mxu0 %v6944_v10  ;;  %v1626_v7 = vld [vmem:[#allocation9 + $0x630] sm:$0xff] }
 0x401   :  { %5196 = vmatprep.subr.bf16.mxu1 %v6946_v11  ;;  %v1634_v10 = vld [vmem:[#allocation9 + $0x670] sm:$0xff]  ;;  %v1627_v11 = vld [vmem:[#allocation9 + $0x638] sm:$0xff] }
 0x402   :  { %v7056_v15 = vcombine.high %v1626_v7, %v1634_v10  ;;  %v7055_v22 = vcombine.low %v1626_v7, %v1634_v10  ;;  %v7057_v23 = vcombine.low %v1627_v11, %v1635_v12  ;;  %v1731_v7 = vld [vmem:[#allocation9 + $0x978] sm:$0xff] }
 0x403   :  { %5111 = vmatpush1.bf16.msra.mxu0 %v6943_v16  ;;  %v7058_v16 = vcombine.high %v1627_v11, %v1635_v12  ;;  %v7137_v11 = vcombine.low %v1707_v55, %v1715_v57 }
 0x404   :  { %5197 = vmatpush1.bf16.msra.mxu1 %v6945_v17  ;;  %5112 = vmatprep.subr.bf16.mxu0 %v6960_v18  ;;  %v1642_v17 = vld [vmem:[#allocation9 + $0x6b0] sm:$0xff] }
 0x405   :  { %5198 = vmatprep.subr.bf16.mxu1 %v6962_v19  ;;  %v1650_v18 = vld [vmem:[#allocation9 + $0x6f0] sm:$0xff]  ;;  %v1643_v19 = vld [vmem:[#allocation9 + $0x6b8] sm:$0xff] }
 0x406   :  { %v7072_v24 = vcombine.high %v1642_v17, %v1650_v18  ;;  %v7071_v30 = vcombine.low %v1642_v17, %v1650_v18  ;;  %v7073_v31 = vcombine.low %v1643_v19, %v1651_v20  ;;  %v1747_v17 = vld [vmem:[#allocation9 + $0x9f8] sm:$0xff] }
 0x407   :  { %5113 = vmatpush1.bf16.msra.mxu0 %v6959_v25  ;;  %v7074_v25 = vcombine.high %v1643_v19, %v1651_v20 }
 0x408   :  { %5199 = vmatpush1.bf16.msra.mxu1 %v6961_v26  ;;  %5114 = vmatprep.subr.bf16.mxu0 %v6976_v27  ;;  %v1658_v26 = vld [vmem:[#allocation9 + $0x730] sm:$0xff] }
 0x409   :  { %5200 = vmatprep.subr.bf16.mxu1 %v6978_v28  ;;  %v1666_v27 = vld [vmem:[#allocation9 + $0x770] sm:$0xff]  ;;  %v1659_v28 = vld [vmem:[#allocation9 + $0x738] sm:$0xff] }
 0x40a   :  { %v7088_v32 = vcombine.high %v1658_v26, %v1666_v27  ;;  %v7087_v41 = vcombine.low %v1658_v26, %v1666_v27  ;;  %v7089_v42 = vcombine.low %v1659_v28, %v1667_v29 }
 0x40b   :  { %5115 = vmatpush1.bf16.msra.mxu0 %v6975_v33  ;;  %v7090_v33 = vcombine.high %v1659_v28, %v1667_v29  ;;  %v1770_v29 = vld [vmem:[#allocation9 + $0xab0] sm:$0xff] }
 0x40c   :  { %5201 = vmatpush1.bf16.msra.mxu1 %v6977_v34  ;;  %5116 = vmatprep.subr.bf16.mxu0 %v6992_v35  ;;  %v1674_v34 = vld [vmem:[#allocation9 + $0x7b0] sm:$0xff] }
 0x40d   :  { %5202 = vmatprep.subr.bf16.mxu1 %v6994_v36  ;;  %v1682_v35 = vld [vmem:[#allocation9 + $0x7f0] sm:$0xff]  ;;  %v1675_v36 = vld [vmem:[#allocation9 + $0x7b8] sm:$0xff] }
 0x40e   :  { %v7104_v43 = vcombine.high %v1674_v34, %v1682_v35  ;;  %v7103_v48 = vcombine.low %v1674_v34, %v1682_v35  ;;  %v7105_v49 = vcombine.low %v1675_v36, %v1683_v39  ;;  %v1970_v35 = vsub.s32 6, %v8494_v37 }
 0x40f   :  { %5117 = vmatpush1.bf16.msra.mxu0 %v6991_v44  ;;  %v7106_v44 = vcombine.high %v1675_v36, %v1683_v39  ;;  %v1966_v36 = vsub.s32 5, %v8494_v37 }
 0x410   :  { %5203 = vmatpush1.bf16.msra.mxu1 %v6993_v45  ;;  %5118 = vmatprep.subr.bf16.mxu0 %v7008_v46  ;;  %v1690_v45 = vld [vmem:[#allocation9 + $0x830] sm:$0xff] }
 0x411   :  { %5204 = vmatprep.subr.bf16.mxu1 %v7010_v21  ;;  %v1698_v46 = vld [vmem:[#allocation9 + $0x870] sm:$0xff]  ;;  %v1691_v21 = vld [vmem:[#allocation9 + $0x838] sm:$0xff] }
 0x412   :  { %v7120_v50 = vcombine.high %v1690_v45, %v1698_v46  ;;  %v7121_v58 = vcombine.low %v1691_v21, %v1699_v47 }
 0x413   :  { %5119 = vmatpush1.bf16.msra.mxu0 %v7007_v51  ;;  %v7122_v51 = vcombine.high %v1691_v21, %v1699_v47  ;;  %v1787_v21 = vld [vmem:[#allocation9 + $0xb38] sm:$0xff] }
 0x414   :  { %5205 = vmatpush1.bf16.msra.mxu1 %v7009_v52  ;;  %5120 = vmatprep.subr.bf16.mxu0 %v7024_v54  ;;  %v1706_v52 = vld [vmem:[#allocation9 + $0x8b0] sm:$0xff]  ;;  %v1795_v47 = vld [vmem:[#allocation9 + $0xb78] sm:$0xff] }
 0x415   :  { %5206 = vmatprep.subr.bf16.mxu1 %v7026_v8  ;;  %v1714_v54 = vld [vmem:[#allocation9 + $0x8f0] sm:$0xff]  ;;  %v7119_v8 = vcombine.low %v1690_v45, %v1698_v46 }
 0x416   :  { %v7136_v59 = vcombine.high %v1706_v52, %v1714_v54  ;;  %v7135_v10 = vcombine.low %v1706_v52, %v1714_v54  ;;  %v1794_v45 = vld [vmem:[#allocation9 + $0xb70] sm:$0xff] }
 0x417   :  { %5121 = vmatpush1.bf16.msra.mxu0 %v7023_v60  ;;  %v1722_v60 = vld [vmem:[#allocation9 + $0x930] sm:$0xff] }
 0x418   :  { %5207 = vmatpush1.bf16.msra.mxu1 %v7025_v61  ;;  %5122 = vmatprep.subr.bf16.mxu0 %v7040_v1  ;;  %v1730_v61 = vld [vmem:[#allocation9 + $0x970] sm:$0xff]  ;;  %v7138_v1 = vcombine.high %v1707_v55, %v1715_v57  ;;  %v7218_v55 = vcombine.high %v1787_v21, %v1795_v47 }
 0x419   :  { %5208 = vmatprep.subr.bf16.mxu1 %v7042_v6  ;;  %v1723_v6 = vld [vmem:[#allocation9 + $0x938] sm:$0xff]  ;;  %v7152_v12 = vcombine.high %v1722_v60, %v1730_v61  ;;  %v7151_v18 = vcombine.low %v1722_v60, %v1730_v61  ;;  %v1802_v57 = vld [vmem:[#allocation9 + $0xbb0] sm:$0xff] }
 0x41b   :  { %5123 = vmatpush1.bf16.msra.mxu0 %v7039_v13  ;;  %v7154_v13 = vcombine.high %v1723_v6, %v1731_v7 }
 0x41c   :  { %5209 = vmatpush1.bf16.msra.mxu1 %v7041_v14  ;;  %5124 = vmatprep.subr.bf16.mxu0 %v7056_v15  ;;  %v1738_v14 = vld [vmem:[#allocation9 + $0x9b0] sm:$0xff] }
 0x41d   :  { %5210 = vmatprep.subr.bf16.mxu1 %v7058_v16  ;;  %v1746_v15 = vld [vmem:[#allocation9 + $0x9f0] sm:$0xff]  ;;  %v1739_v16 = vld [vmem:[#allocation9 + $0x9b8] sm:$0xff] }
 0x41e   :  { %v7168_v19 = vcombine.high %v1738_v14, %v1746_v15  ;;  %v7170_v20 = vcombine.high %v1739_v16, %v1747_v17  ;;  %v7169_v26 = vcombine.low %v1739_v16, %v1747_v17 }
 0x41f   :  { %5125 = vmatpush1.bf16.msra.mxu0 %v7055_v22  ;;  %v1754_v22 = vld [vmem:[#allocation9 + $0xa30] sm:$0xff] }
 0x420   :  { %5211 = vmatpush1.bf16.msra.mxu1 %v7057_v23  ;;  %5126 = vmatprep.subr.bf16.mxu0 %v7072_v24  ;;  %v1762_v23 = vld [vmem:[#allocation9 + $0xa70] sm:$0xff]  ;;  %v1755_v24 = vld [vmem:[#allocation9 + $0xa38] sm:$0xff] }
 0x421   :  { %5212 = vmatprep.subr.bf16.mxu1 %v7074_v25  ;;  %v1763_v25 = vld [vmem:[#allocation9 + $0xa78] sm:$0xff]  ;;  %v7184_v27 = vcombine.high %v1754_v22, %v1762_v23  ;;  %v7183_v34 = vcombine.low %v1754_v22, %v1762_v23 }
 0x422   :  { %v7186_v28 = vcombine.high %v1755_v24, %v1763_v25  ;;  %v7185_v39 = vcombine.low %v1755_v24, %v1763_v25  ;;  %v1818_v24 = vld [vmem:[#allocation9 + $0xc30] sm:$0xff] }
 0x423   :  { %5127 = vmatpush1.bf16.msra.mxu0 %v7071_v30  ;;  %v1778_v30 = vld [vmem:[#allocation9 + $0xaf0] sm:$0xff] }
 0x424   :  { %5213 = vmatpush1.bf16.msra.mxu1 %v7073_v31  ;;  %5128 = vmatprep.subr.bf16.mxu0 %v7088_v32  ;;  %v1962_v31 = vsub.s32 4, %v8494_v37  ;;  %v1771_v32 = vld [vmem:[#allocation9 + $0xab8] sm:$0xff]  ;;  %v1826_v25 = vld [vmem:[#allocation9 + $0xc70] sm:$0xff] }
 0x425   :  { %5214 = vmatprep.subr.bf16.mxu1 %v7090_v33  ;;  %v1779_v33 = vld [vmem:[#allocation9 + $0xaf8] sm:$0xff] }
 0x426   :  { %v1963_v46 = vrot.slane %v8550_v63, %v1962_v31  ;;  %v7201_v52 = vcombine.low %v1771_v32, %v1779_v33 }
 0x427   :  { %5129 = vmatpush1.bf16.msra.mxu0 %v7087_v41  ;;  %v1974_v41 = vsub.s32 7, %v8494_v37 }
 0x428   :  { %5215 = vmatpush1.bf16.msra.mxu1 %v7089_v42  ;;  %5130 = vmatprep.subr.bf16.mxu0 %v7104_v43  ;;  %v7200_v42 = vcombine.high %v1770_v29, %v1778_v30  ;;  %v7202_v43 = vcombine.high %v1771_v32, %v1779_v33 }
 0x429   :  { %5216 = vmatprep.subr.bf16.mxu1 %v7106_v44  ;;  %v1786_v44 = vld [vmem:[#allocation9 + $0xb30] sm:$0xff] }
 0x42a   :  { %v7216_v54 = vcombine.high %v1786_v44, %v1794_v45 }
 0x42b   :  { %5131 = vmatpush1.bf16.msra.mxu0 %v7103_v48  ;;  %v1971_v48 = vrot.slane %v8550_v63, %v1970_v35 }
 0x42c   :  { %5217 = vmatpush1.bf16.msra.mxu1 %v7105_v49  ;;  %5143 = vmatprep.subr.bf16.mxu0 %v7120_v50  ;;  %v1967_v49 = vrot.slane %v8550_v63, %v1966_v36  ;;  %v7199_v50 = vcombine.low %v1770_v29, %v1778_v30  ;;  %v1819_v29 = vld [vmem:[#allocation9 + $0xc38] sm:$0xff] }
 0x42d   :  { %5229 = vmatprep.subr.bf16.mxu1 %v7122_v51  ;;  %v1975_v51 = vrot.slane %v8550_v63, %v1974_v41  ;;  %v7217_v63 = vcombine.low %v1787_v21, %v1795_v47  ;;  %v1827_v30 = vld [vmem:[#allocation9 + $0xc78] sm:$0xff] }
 0x42e   :  { %5133 = vmatmul.mubr.bf16.vlgmr.msra.gmra.mrb[20].mxu0 %v8520_v3  ;;  %v7250_v47 = vcombine.high %v1819_v29, %v1827_v30 }
 0x42f   :  { %5219 = vmatmul.mubr.bf16.vlgmr.msra.gmra.mrb[20].mxu1 %v8520_v3  ;;  %5144 = vmatpush1.bf16.msra.mxu0 %v7119_v8  ;;  %v7153_v3 = vcombine.low %v1723_v6, %v1731_v7  ;;  %v1811_v6 = vld [vmem:[#allocation9 + $0xbf8] sm:$0xff] }
 0x430   :  { %5175 = vmatprep.mubr.bf16.mxu0 %v8526_v9  ;;  %5230 = vmatpush1.bf16.msra.mxu1 %v7121_v58  ;;  %v1810_v58 = vld [vmem:[#allocation9 + $0xbf0] sm:$0xff] }
 0x431   :  { %5261 = vmatprep.mubr.bf16.mxu1 %v8526_v9  ;;  %5145 = vmatprep.subr.bf16.mxu0 %v7136_v59  ;;  %v7167_v9 = vcombine.low %v1738_v14, %v1746_v15  ;;  %v7231_v22 = vcombine.low %v1802_v57, %v1810_v58 }
 0x432   :  { %5231 = vmatprep.subr.bf16.mxu1 %v7138_v1  ;;  %v1803_v1 = vld [vmem:[#allocation9 + $0xbb8] sm:$0xff] }
 0x433   :  { %5146 = vmatpush1.bf16.msra.mxu0 %v7135_v10  ;;  %v7234_v23 = vcombine.high %v1803_v1, %v1811_v6 }
 0x434   :  { %5232 = vmatpush1.bf16.msra.mxu1 %v7137_v11  ;;  %5147 = vmatprep.subr.bf16.mxu0 %v7152_v12 }
 0x435   :  { %5233 = vmatprep.subr.bf16.mxu1 %v7154_v13  ;;  %v7215_v13 = vcombine.low %v1786_v44, %v1794_v45  ;;  %v7248_v45 = vcombine.high %v1818_v24, %v1826_v25 }
 0x437   :  { %5148 = vmatpush1.bf16.msra.mxu0 %v7151_v18  ;;  %v7232_v18 = vcombine.high %v1802_v57, %v1810_v58  ;;  %v1850_v58 = vld [vmem:[#allocation9 + $0xd30] sm:$0xff] }
 0x438   :  { %5234 = vmatpush1.bf16.msra.mxu1 %v7153_v3  ;;  %5149 = vmatprep.subr.bf16.mxu0 %v7168_v19 }
 0x439   :  { %5235 = vmatprep.subr.bf16.mxu1 %v7170_v20 }
 0x43b   :  { %5150 = vmatpush1.bf16.msra.mxu0 %v7167_v9 }
 0x43c   :  { %5236 = vmatpush1.bf16.msra.mxu1 %v7169_v26  ;;  %5151 = vmatprep.subr.bf16.mxu0 %v7184_v27 }
 0x43d   :  { %5237 = vmatprep.subr.bf16.mxu1 %v7186_v28  ;;  %v7233_v28 = vcombine.low %v1803_v1, %v1811_v6 }
 0x43f   :  { %5152 = vmatpush1.bf16.msra.mxu0 %v7183_v34 }
 0x440   :  { %5238 = vmatpush1.bf16.msra.mxu1 %v7185_v39  ;;  %5153 = vmatprep.subr.bf16.mxu0 %v7200_v42 }
 0x441   :  { %v4833_v8 = vpop.f32.mrb[12].mxu0  ;;  %5239 = vmatprep.subr.bf16.mxu1 %v7202_v43 }
 0x442   :  { %v7684_v59 = vadd.f32 %v4833_v8, %v1963_v46  ;;  %v4919_v60 = vpop.f32.mrb[12].mxu1  ;;  %v4835_v61 = vpop.f32.mrb[13].mxu0  ;;  %v7249_v8 = vcombine.low %v1819_v29, %v1827_v30 }
 0x443   :  { %v7688_v7 = vadd.f32 %v4919_v60, %v1971_v48  ;;  %v7685_v10 = vadd.f32 %v4835_v61, %v1967_v49  ;;  %v4921_v11 = vpop.f32.mrb[13].mxu1  ;;  %v4837_v12 = vpop.f32.mrb[14].mxu0  ;;  %5154 = vmatpush1.bf16.msra.mxu0 %v7199_v50  ;;  %v1851_v60 = vld [vmem:[#allocation9 + $0xd38] sm:$0xff] }
 0x444   :  { %v7689_v14 = vadd.f32 %v4921_v11, %v1975_v51  ;;  %v7686_v15 = vadd.f32 %v4837_v12, %v1963_v46  ;;  %v4923_v16 = vpop.f32.mrb[14].mxu1  ;;  %5240 = vmatpush1.bf16.msra.mxu1 %v7201_v52  ;;  %v4839_v17 = vpop.f32.mrb[15].mxu0  ;;  %5155 = vmatprep.subr.bf16.mxu0 %v7216_v54  ;;  %v5276_v9 = vmax.f32 %v7684_v59, 0.0  ;;  %v1843_v52 = vld [vmem:[#allocation9 + $0xcf8] sm:$0xff]  ;;  %v7247_v54 = vcombine.low %v1818_v24, %v1826_v25  ;;  %v1858_v59 = vld [vmem:[#allocation9 + $0xd70] sm:$0xff] }
 0x445   :  { %v7690_v3 = vadd.f32 %v4923_v16, %v1971_v48  ;;  %v7687_v19 = vadd.f32 %v4839_v17, %v1967_v49  ;;  %v4925_v20 = vpop.f32.mrb[15].mxu1  ;;  %5241 = vmatprep.subr.bf16.mxu1 %v7218_v55  ;;  %v5278_v32 = vmax.f32 %v7688_v7, 0.0  ;;  %v5277_v33 = vmax.f32 %v7685_v10, 0.0  ;;  %v1834_v48 = vld [vmem:[#allocation9 + $0xcb0] sm:$0xff]  ;;  %v1859_v61 = vld [vmem:[#allocation9 + $0xd78] sm:$0xff] }
 0x446   :  { %v5292_v26 = vmax.f32 %v7686_v15, 0.0  ;;  %v7691_v27 = vadd.f32 %v4925_v20, %v1975_v51  ;;  %v5279_v42 = vmax.f32 %v7689_v14, 0.0  ;;  %v1842_v49 = vld [vmem:[#allocation9 + $0xcf0] sm:$0xff]  ;;  %v1835_v51 = vld [vmem:[#allocation9 + $0xcb8] sm:$0xff]  ;;  %v7280_v7 = vcombine.high %v1850_v58, %v1858_v59 }
 0x447   :  { %v5294_v34 = vmax.f32 %v7690_v3, 0.0  ;;  %v5293_v39 = vmax.f32 %v7687_v19, 0.0  ;;  %5156 = vmatpush1.bf16.msra.mxu0 %v7215_v13  ;;  %v7264_v55 = vcombine.high %v1834_v48, %v1842_v49  ;;  %v7266_v57 = vcombine.high %v1835_v51, %v1843_v52  ;;  %v1866_v11 = vld [vmem:[#allocation9 + $0xdb0] sm:$0xff]  ;;  %v1867_v13 = vld [vmem:[#allocation9 + $0xdb8] sm:$0xff] }
 0x448   :  { %v8592_v43 = vpack.c.bf16 %v5292_v26, %v5276_v9  ;;  %v5295_v44 = vmax.f32 %v7691_v27, 0.0  ;;  %5242 = vmatpush1.bf16.msra.mxu1 %v7217_v63  ;;  %5157 = vmatprep.subr.bf16.mxu0 %v7232_v18  ;;  %v7263_v1 = vcombine.low %v1834_v48, %v1842_v49  ;;  %v7265_v6 = vcombine.low %v1835_v51, %v1843_v52  ;;  %v1874_v12 = vld [vmem:[#allocation9 + $0xdf0] sm:$0xff]  ;;  %v1875_v63 = vld [vmem:[#allocation9 + $0xdf8] sm:$0xff] }
 0x449   :  { %v8594_v46 = vpack.c.bf16 %v5294_v34, %v5278_v32  ;;  %v8596_v21 = vpack.c.bf16 %v5293_v39, %v5277_v33  ;;  %5243 = vmatprep.subr.bf16.mxu1 %v7234_v23  ;;  %v7282_v10 = vcombine.high %v1851_v60, %v1859_v61  ;;  %v7279_v14 = vcombine.low %v1850_v58, %v1858_v59  ;;  %v1882_v18 = vld [vmem:[#allocation9 + $0xe30] sm:$0xff]  ;;  %v1883_v19 = vld [vmem:[#allocation9 + $0xe38] sm:$0xff] }
 0x44a   :  { %v8598_v50 = vpack.c.bf16 %v5295_v44, %v5279_v42  ;;  %v7281_v15 = vcombine.low %v1851_v60, %v1859_v61  ;;  %v7296_v16 = vcombine.high %v1866_v11, %v1874_v12  ;;  %v7298_v17 = vcombine.high %v1867_v13, %v1875_v63  ;;  %v1890_v3 = vld [vmem:[#allocation9 + $0xe70] sm:$0xff]  ;;  %v1891_v20 = vld [vmem:[#allocation9 + $0xe78] sm:$0xff] }
 0x44b   :  { %5158 = vmatpush1.bf16.msra.mxu0 %v7231_v22  ;;  %v7295_v22 = vcombine.low %v1866_v11, %v1874_v12  ;;  %v7297_v23 = vcombine.low %v1867_v13, %v1875_v63  ;;  %v7312_v24 = vcombine.high %v1882_v18, %v1890_v3  ;;  %v7314_v25 = vcombine.high %v1883_v19, %v1891_v20  ;;  %v1898_v9 = vld [vmem:[#allocation9 + $0xeb0] sm:$0xff]  ;;  %v1899_v27 = vld [vmem:[#allocation9 + $0xeb8] sm:$0xff] }
 0x44c   :  { %5244 = vmatpush1.bf16.msra.mxu1 %v7233_v28  ;;  %5159 = vmatprep.subr.bf16.mxu0 %v7248_v45  ;;  %v1906_v26 = vld [vmem:[#allocation9 + $0xef0] sm:$0xff]  ;;  %v1907_v28 = vld [vmem:[#allocation9 + $0xef8] sm:$0xff]  ;;  %v7311_v29 = vcombine.low %v1882_v18, %v1890_v3  ;;  %v7313_v30 = vcombine.low %v1883_v19, %v1891_v20  ;;  %v8015_v18 = vld [vmem:[#allocation12 + $0x58] sm:$0xff]  }
 0x44d   :  { %5245 = vmatprep.subr.bf16.mxu1 %v7250_v47  ;;  %v7328_v32 = vcombine.high %v1898_v9, %v1906_v26  ;;  %v7330_v33 = vcombine.high %v1899_v27, %v1907_v28  ;;  %v1914_v34 = vld [vmem:[#allocation9 + $0xf30] sm:$0xff]  ;;  %v1915_v42 = vld [vmem:[#allocation9 + $0xf38] sm:$0xff]  ;;  %v7327_v45 = vcombine.low %v1898_v9, %v1906_v26  ;;  %v7329_v47 = vcombine.low %v1899_v27, %v1907_v28  ;;  %v8017_v3 = vld [vmem:[#allocation12 + $0x18] sm:$0xff]  }
 0x44e   :  { %v1922_v39 = vld [vmem:[#allocation9 + $0xf70] sm:$0xff]  ;;  %v1923_v44 = vld [vmem:[#allocation9 + $0xf78] sm:$0xff]  ;;  %v8027_v26 = vld [vmem:[#allocation12 + $0x70] sm:$0xff]  }
 0x44f   :  { %5160 = vmatpush1.bf16.msra.mxu0 %v7247_v54  ;;  %v7344_v48 = vcombine.high %v1914_v34, %v1922_v39  ;;  %v7346_v49 = vcombine.high %v1915_v42, %v1923_v44  ;;  %v1930_v51 = vld [vmem:[#allocation9 + $0xfb0] sm:$0xff]  ;;  %v1931_v54 = vld [vmem:[#allocation9 + $0xfb8] sm:$0xff]  ;;  %v8028_v27 = vld [vmem:[#allocation12 + $0xf0] sm:$0xff]  }
 0x450   :  { %5246 = vmatpush1.bf16.msra.mxu1 %v7249_v8  ;;  %5161 = vmatprep.subr.bf16.mxu0 %v7264_v55  ;;  %v1938_v52 = vld [vmem:[#allocation9 + $0xff0] sm:$0xff]  ;;  %v1939_v8 = vld [vmem:[#allocation9 + $0xff8] sm:$0xff]  ;;  %v7343_v55 = vcombine.low %v1914_v34, %v1922_v39  ;;  %v8029_v28 = vld [vmem:[#allocation12 + $0x30] sm:$0xff]  }
 0x451   :  { %5247 = vmatprep.subr.bf16.mxu1 %v7266_v57  ;;  %v7345_v57 = vcombine.low %v1915_v42, %v1923_v44  ;;  %v7360_v58 = vcombine.high %v1930_v51, %v1938_v52  ;;  %v7362_v59 = vcombine.high %v1931_v54, %v1939_v8  ;;  %v7359_v60 = vcombine.low %v1930_v51, %v1938_v52  ;;  %v8007_v11 = vld [vmem:[#allocation12 + $0x48] sm:$0xff]   ;;  %v8019_v19 = vld [vmem:[#allocation12 + $0x60] sm:$0xff]   ;;  %v8034_v34 = vld [vmem:[#allocation12 + $0xb8] sm:$0xff]  }
 0x452   :  { %v7361_v61 = vcombine.low %v1931_v54, %v1939_v8  ;;  %v8008_v12 = vld [vmem:[#allocation12 + $0xc8] sm:$0xff]   ;;  %v8020_v20 = vld [vmem:[#allocation12 + $0xe0] sm:$0xff]   ;;  %v8043_v52 = vld [vmem:[#allocation12 + $0x150] sm:$0xff]  }
 0x453   :  { %5162 = vmatpush1.bf16.msra.mxu0 %v7263_v1  ;;  %v8003_v1 = vld [vmem:[#allocation12 + $0x40] sm:$0xff]   ;;  %v8009_v13 = vld [vmem:[#allocation12 + $0x8] sm:$0xff]   ;;  %v8044_v54 = vld [vmem:[#allocation12 + $0x1d0] sm:$0xff]  }
 0x454   :  { %5248 = vmatpush1.bf16.msra.mxu1 %v7265_v6  ;;  %5163 = vmatprep.subr.bf16.mxu0 %v7280_v7  ;;  %v8004_v6 = vld [vmem:[#allocation12 + $0xc0] sm:$0xff]   ;;  %v8010_v63 = vld [vmem:[#allocation12 + $0x88] sm:$0xff]   ;;  %v8045_v8 = vld [vmem:[#allocation12 + $0x110] sm:$0xff]  }
 0x455   :  { %5249 = vmatprep.subr.bf16.mxu1 %v7282_v10  ;;  %v8005_v7 = vld [vmem:[#allocation12] sm:$0xff]   ;;  %v8026_v9 = vld [vmem:[#allocation12 + $0xa8] sm:$0xff]  }
 0x456   :  { %v8006_v10 = vld [vmem:[#allocation12 + $0x80] sm:$0xff]   ;;  %v8042_v51 = vld [vmem:[#allocation12 + $0x188] sm:$0xff]  }
 0x457   :  { %5164 = vmatpush1.bf16.msra.mxu0 %v7279_v14  ;;  %v8011_v14 = vld [vmem:[#allocation12 + $0x50] sm:$0xff]   ;;  %v8035_v39 = vld [vmem:[#allocation12 + $0x140] sm:$0xff]  }
 0x458   :  { %5250 = vmatpush1.bf16.msra.mxu1 %v7281_v15  ;;  %5165 = vmatprep.subr.bf16.mxu0 %v7296_v16  ;;  %v8012_v15 = vld [vmem:[#allocation12 + $0xd0] sm:$0xff]   ;;  %v8036_v42 = vld [vmem:[#allocation12 + $0x1c0] sm:$0xff]  }
 0x459   :  { %5251 = vmatprep.subr.bf16.mxu1 %v7298_v17  ;;  %v8013_v16 = vld [vmem:[#allocation12 + $0x10] sm:$0xff]   ;;  %v8037_v44 = vld [vmem:[#allocation12 + $0x100] sm:$0xff]  }
 0x45a   :  { %v8014_v17 = vld [vmem:[#allocation12 + $0x90] sm:$0xff]  }
 0x45b   :  { %5166 = vmatpush1.bf16.msra.mxu0 %v7295_v22  ;;  %v8022_v22 = vld [vmem:[#allocation12 + $0xa0] sm:$0xff]  }
 0x45c   :  { %5252 = vmatpush1.bf16.msra.mxu1 %v7297_v23  ;;  %5167 = vmatprep.subr.bf16.mxu0 %v7312_v24  ;;  %v8023_v23 = vld [vmem:[#allocation12 + $0x68] sm:$0xff]  }
 0x45d   :  { %5253 = vmatprep.subr.bf16.mxu1 %v7314_v25  ;;  %v8024_v24 = vld [vmem:[#allocation12 + $0xe8] sm:$0xff]  }
 0x45e   :  { %v8025_v25 = vld [vmem:[#allocation12 + $0x28] sm:$0xff]  }
 0x45f   :  { %5168 = vmatpush1.bf16.msra.mxu0 %v7311_v29  ;;  %v8030_v29 = vld [vmem:[#allocation12 + $0xb0] sm:$0xff]  }
 0x460   :  { %5254 = vmatpush1.bf16.msra.mxu1 %v7313_v30  ;;  %5169 = vmatprep.subr.bf16.mxu0 %v7328_v32  ;;  %v8031_v30 = vld [vmem:[#allocation12 + $0x78] sm:$0xff]  }
 0x461   :  { %5255 = vmatprep.subr.bf16.mxu1 %v7330_v33  ;;  %v8032_v32 = vld [vmem:[#allocation12 + $0xf8] sm:$0xff]  }
 0x462   :  { %v8033_v33 = vld [vmem:[#allocation12 + $0x38] sm:$0xff]  }
 0x463   :  { %5170 = vmatpush1.bf16.msra.mxu0 %v7327_v45  ;;  %v8038_v45 = vld [vmem:[#allocation12 + $0x180] sm:$0xff]  }
 0x464   :  { %5256 = vmatpush1.bf16.msra.mxu1 %v7329_v47  ;;  %5171 = vmatprep.subr.bf16.mxu0 %v7344_v48  ;;  %v8039_v47 = vld [vmem:[#allocation12 + $0x148] sm:$0xff]  }
 0x465   :  { %5257 = vmatprep.subr.bf16.mxu1 %v7346_v49  ;;  %v8040_v48 = vld [vmem:[#allocation12 + $0x1c8] sm:$0xff]  }
 0x466   :  { %v8041_v49 = vld [vmem:[#allocation12 + $0x108] sm:$0xff]  }
 0x467   :  { %5172 = vmatpush1.bf16.msra.mxu0 %v7343_v55  ;;  %v8047_v55 = vld [vmem:[#allocation12 + $0x158] sm:$0xff]  }
 0x468   :  { %5258 = vmatpush1.bf16.msra.mxu1 %v7345_v57  ;;  %5173 = vmatprep.subr.bf16.mxu0 %v7360_v58  ;;  %v8049_v57 = vld [vmem:[#allocation12 + $0x118] sm:$0xff]   ;;  %v8051_v58 = vld [vmem:[#allocation12 + $0x160] sm:$0xff]  }
 0x469   :  { %5259 = vmatprep.subr.bf16.mxu1 %v7362_v59  ;;  %v8052_v59 = vld [vmem:[#allocation12 + $0x1e0] sm:$0xff]  }
 0x46b   :  { %5174 = vmatpush1.bf16.msra.mxu0 %v7359_v60  ;;  %v8054_v60 = vld [vmem:[#allocation12 + $0x1a0] sm:$0xff]  }
 0x46c   :  { %5260 = vmatpush1.bf16.msra.mxu1 %v7361_v61  ;;  %7492 = vmatprep.subr.bf16.mxu0 %v8003_v1  ;;  %v8055_v61 = vld [vmem:[#allocation12 + $0x168] sm:$0xff]  }
 0x46d   :  { %7514 = vmatprep.subr.bf16.mxu1 %v8004_v6  ;;  %v8056_v1 = vld [vmem:[#allocation12 + $0x1e8] sm:$0xff]  }
 0x46e   :  { %5176 = vmatmul.mubr.bf16.vlgmr.msra.gmra.mrb[20].mxu0 %v8522_v4  ;;  %v8057_v6 = vld [vmem:[#allocation12 + $0x128] sm:$0xff]  }
 0x46f   :  { %5262 = vmatmul.mubr.bf16.vlgmr.msra.gmra.mrb[20].mxu1 %v8522_v4  ;;  %7493 = vmatpush3.bf16.msra.mxu0 %v8005_v7  ;;  %v8016_v4 = vld [vmem:[#allocation12 + $0xd8] sm:$0xff]   ;;  %v8058_v7 = vld [vmem:[#allocation12 + $0x1a8] sm:$0xff]  }
 0x470   :  { %6383 = vmatprep.mubr.bf16.mxu0 %v8564_v2  ;;  %7515 = vmatpush3.bf16.msra.mxu1 %v8006_v10  ;;  %v8018_v2 = vld [vmem:[#allocation12 + $0x98] sm:$0xff]   ;;  %v8059_v10 = vld [vmem:[#allocation12 + $0x170] sm:$0xff]  }
 0x471   :  { %6424 = vmatprep.mubr.bf16.mxu1 %v8566_v5  ;;  %7494 = vmatprep.subr.bf16.mxu0 %v8007_v11  ;;  %v8021_v5 = vld [vmem:[#allocation12 + $0x20] sm:$0xff]   ;;  %v8060_v11 = vld [vmem:[#allocation12 + $0x1f0] sm:$0xff]  }
 0x472   :  { %7516 = vmatprep.subr.bf16.mxu1 %v8008_v12  ;;  %v8061_v12 = vld [vmem:[#allocation12 + $0x130] sm:$0xff]  }
 0x473   :  { %7495 = vmatpush3.bf16.msra.mxu0 %v8009_v13  ;;  %v8062_v13 = vld [vmem:[#allocation12 + $0x1b0] sm:$0xff]  }
 0x474   :  { %7517 = vmatpush3.bf16.msra.mxu1 %v8010_v63  ;;  %7496 = vmatprep.subr.bf16.mxu0 %v8011_v14  ;;  %v8063_v63 = vld [vmem:[#allocation12 + $0x178] sm:$0xff]  }
 0x475   :  { %7518 = vmatprep.subr.bf16.mxu1 %v8012_v15  ;;  %v8064_v14 = vld [vmem:[#allocation12 + $0x1f8] sm:$0xff]  }
 0x476   :  { %v8065_v15 = vld [vmem:[#allocation12 + $0x138] sm:$0xff]  }
 0x477   :  { %7497 = vmatpush3.bf16.msra.mxu0 %v8013_v16  ;;  %v8066_v16 = vld [vmem:[#allocation12 + $0x1b8] sm:$0xff]  }
 0x478   :  { %7519 = vmatpush3.bf16.msra.mxu1 %v8014_v17  ;;  %7498 = vmatprep.subr.bf16.mxu0 %v8015_v18  ;;  %v8067_v17 = vld [vmem:[#allocation12 + $0x240] sm:$0xff]  }
 0x479   :  { %7520 = vmatprep.subr.bf16.mxu1 %v8016_v4  ;;  %v8068_v18 = vld [vmem:[#allocation12 + $0x2c0] sm:$0xff]  }
 0x47a   :  { %v8069_v4 = vld [vmem:[#allocation12 + $0x200] sm:$0xff]  }
 0x47b   :  { %7499 = vmatpush3.bf16.msra.mxu0 %v8017_v3  ;;  %v8070_v3 = vld [vmem:[#allocation12 + $0x280] sm:$0xff]  }
 0x47c   :  { %7521 = vmatpush3.bf16.msra.mxu1 %v8018_v2  ;;  %7500 = vmatprep.subr.bf16.mxu0 %v8019_v19  ;;  %v8071_v2 = vld [vmem:[#allocation12 + $0x248] sm:$0xff]  }
 0x47d   :  { %7522 = vmatprep.subr.bf16.mxu1 %v8020_v20  ;;  %v8072_v19 = vld [vmem:[#allocation12 + $0x2c8] sm:$0xff]  }
 0x47e   :  { %v8073_v20 = vld [vmem:[#allocation12 + $0x208] sm:$0xff]  }
 0x47f   :  { %7501 = vmatpush3.bf16.msra.mxu0 %v8021_v5  ;;  %v8074_v5 = vld [vmem:[#allocation12 + $0x288] sm:$0xff]  }
 0x480   :  { %7523 = vmatpush3.bf16.msra.mxu1 %v8022_v22  ;;  %7502 = vmatprep.subr.bf16.mxu0 %v8023_v23  ;;  %v8075_v22 = vld [vmem:[#allocation12 + $0x250] sm:$0xff]  }
 0x481   :  { %7524 = vmatprep.subr.bf16.mxu1 %v8024_v24  ;;  %v8076_v23 = vld [vmem:[#allocation12 + $0x2d0] sm:$0xff]  }
 0x482   :  { %v8077_v24 = vld [vmem:[#allocation12 + $0x210] sm:$0xff]  }
 0x483   :  { %7503 = vmatpush3.bf16.msra.mxu0 %v8025_v25  ;;  %v8078_v25 = vld [vmem:[#allocation12 + $0x290] sm:$0xff]  }
 0x484   :  { %7525 = vmatpush3.bf16.msra.mxu1 %v8026_v9  ;;  %7504 = vmatprep.subr.bf16.mxu0 %v8027_v26  ;;  %v8079_v9 = vld [vmem:[#allocation12 + $0x258] sm:$0xff]  }
 0x485   :  { %7526 = vmatprep.subr.bf16.mxu1 %v8028_v27  ;;  %v8080_v26 = vld [vmem:[#allocation12 + $0x2d8] sm:$0xff]   ;;  %v8083_v27 = vld [vmem:[#allocation12 + $0x260] sm:$0xff]  }
 0x487   :  { %7505 = vmatpush3.bf16.msra.mxu0 %v8029_v28  ;;  %v8084_v28 = vld [vmem:[#allocation12 + $0x2e0] sm:$0xff]  }
 0x488   :  { %7527 = vmatpush3.bf16.msra.mxu1 %v8030_v29  ;;  %7506 = vmatprep.subr.bf16.mxu0 %v8031_v30  ;;  %v8085_v29 = vld [vmem:[#allocation12 + $0x220] sm:$0xff]   ;;  %v8610_v30 = vld [vmem:[#allocation10 + $0x8] sm:$0xff] }
 0x489   :  { %7528 = vmatprep.subr.bf16.mxu1 %v8032_v32  ;;  %v8086_v32 = vld [vmem:[#allocation12 + $0x2a0] sm:$0xff]  }
 0x48b   :  { %7507 = vmatpush3.bf16.msra.mxu0 %v8033_v33  ;;  %v8087_v33 = vld [vmem:[#allocation12 + $0x268] sm:$0xff]  }
 0x48c   :  { %7529 = vmatpush3.bf16.msra.mxu1 %v8034_v34  ;;  %7536 = vmatprep.subr.bf16.mxu0 %v8035_v39  ;;  %v8088_v34 = vld [vmem:[#allocation12 + $0x2e8] sm:$0xff]   ;;  %v1979_v39 = vrot.slane %v8610_v30, %v8497_v38 }
 0x48d   :  { %7558 = vmatprep.subr.bf16.mxu1 %v8036_v42  ;;  %v1987_v42 = vrot.slane %v8610_v30, %v8505_v53 }
 0x48e   :  { %6384 = vmatmul.mubr.bf16.vlgmr.msra.gmra.mrb[24].mxu0 %v8560_v62  ;;  %v8046_v62 = vld [vmem:[#allocation12 + $0x190] sm:$0xff]  }
 0x48f   :  { %6425 = vmatmul.mubr.bf16.vlgmr.msra.gmra.mrb[24].mxu1 %v8562_v0  ;;  %7537 = vmatpush3.bf16.msra.mxu0 %v8037_v44  ;;  %v8048_v0 = vld [vmem:[#allocation12 + $0x1d8] sm:$0xff]   ;;  %v1983_v44 = vrot.slane %v8610_v30, %v8500_v40  ;;  %v8093_v40 = vld [vmem:[#allocation12 + $0x230] sm:$0xff]  }
 0x490   :  { %6465 = vmatprep.mubr.bf16.mxu0 %v8596_v21  ;;  %7559 = vmatpush3.bf16.msra.mxu1 %v8038_v45  ;;  %v8050_v21 = vld [vmem:[#allocation12 + $0x198] sm:$0xff]   ;;  %v8089_v45 = vld [vmem:[#allocation12 + $0x228] sm:$0xff]  }
 0x491   :  { %6506 = vmatprep.mubr.bf16.mxu1 %v8598_v50  ;;  %7538 = vmatprep.subr.bf16.mxu0 %v8039_v47  ;;  %v8053_v50 = vld [vmem:[#allocation12 + $0x120] sm:$0xff]   ;;  %v1991_v47 = vrot.slane %v8610_v30, %v8508_v56 }
 0x492   :  { %7560 = vmatprep.subr.bf16.mxu1 %v8040_v48  ;;  %v8090_v48 = vld [vmem:[#allocation12 + $0x2a8] sm:$0xff]  }
 0x493   :  { %7539 = vmatpush3.bf16.msra.mxu0 %v8041_v49  ;;  %v8091_v49 = vld [vmem:[#allocation12 + $0x270] sm:$0xff]  }
 0x494   :  { %7561 = vmatpush3.bf16.msra.mxu1 %v8042_v51  ;;  %7540 = vmatprep.subr.bf16.mxu0 %v8043_v52  ;;  %v8092_v52 = vld [vmem:[#allocation12 + $0x2f0] sm:$0xff]  }
 0x495   :  { %7562 = vmatprep.subr.bf16.mxu1 %v8044_v54 }
 0x497   :  { %7541 = vmatpush3.bf16.msra.mxu0 %v8045_v8 }
 0x498   :  { %7563 = vmatpush3.bf16.msra.mxu1 %v8046_v62  ;;  %7542 = vmatprep.subr.bf16.mxu0 %v8047_v55 }
 0x499   :  { %7564 = vmatprep.subr.bf16.mxu1 %v8048_v0 }
 0x49b   :  { %7543 = vmatpush3.bf16.msra.mxu0 %v8049_v57 }
 0x49c   :  { %7565 = vmatpush3.bf16.msra.mxu1 %v8050_v21  ;;  %7544 = vmatprep.subr.bf16.mxu0 %v8051_v58 }
 0x49d   :  { %7566 = vmatprep.subr.bf16.mxu1 %v8052_v59  ;;  %v8094_v59 = vld [vmem:[#allocation12 + $0x2b0] sm:$0xff]  }
 0x49f   :  { %7545 = vmatpush3.bf16.msra.mxu0 %v8053_v50  ;;  %v8095_v50 = vld [vmem:[#allocation12 + $0x278] sm:$0xff]  }
 0x4a0   :  { %7567 = vmatpush3.bf16.msra.mxu1 %v8054_v60  ;;  %7546 = vmatprep.subr.bf16.mxu0 %v8055_v61 }
 0x4a1   :  { %7568 = vmatprep.subr.bf16.mxu1 %v8056_v1 }
 0x4a3   :  { %7547 = vmatpush3.bf16.msra.mxu0 %v8057_v6  ;;  %v8096_v6 = vld [vmem:[#allocation12 + $0x2f8] sm:$0xff]  }
 0x4a4   :  { %7569 = vmatpush3.bf16.msra.mxu1 %v8058_v7  ;;  %7548 = vmatprep.subr.bf16.mxu0 %v8059_v10 }
 0x4a5   :  { %7570 = vmatprep.subr.bf16.mxu1 %v8060_v11 }
 0x4a7   :  { %7549 = vmatpush3.bf16.msra.mxu0 %v8061_v12 }
 0x4a8   :  { %7571 = vmatpush3.bf16.msra.mxu1 %v8062_v13  ;;  %7550 = vmatprep.subr.bf16.mxu0 %v8063_v63 }
 0x4a9   :  { %7572 = vmatprep.subr.bf16.mxu1 %v8064_v14 }
 0x4ab   :  { %7551 = vmatpush3.bf16.msra.mxu0 %v8065_v15  ;;  %v8097_v15 = vld [vmem:[#allocation12 + $0x238] sm:$0xff]  }
 0x4ac   :  { %7573 = vmatpush3.bf16.msra.mxu1 %v8066_v16  ;;  %7580 = vmatprep.subr.bf16.mxu0 %v8067_v17 }
 0x4ad   :  { %7602 = vmatprep.subr.bf16.mxu1 %v8068_v18 }
 0x4ae   :  { %6466 = vmatmul.mubr.bf16.vlgmr.msra.gmra.mrb[28].mxu0 %v8592_v43  ;;  %v8081_v43 = vld [vmem:[#allocation12 + $0x218] sm:$0xff]  }
 0x4af   :  { %6507 = vmatmul.mubr.bf16.vlgmr.msra.gmra.mrb[28].mxu1 %v8594_v46  ;;  %7581 = vmatpush3.bf16.msra.mxu0 %v8069_v4  ;;  %v8082_v46 = vld [vmem:[#allocation12 + $0x298] sm:$0xff]  }
 0x4b0   :  { %7603 = vmatpush3.bf16.msra.mxu1 %v8070_v3  ;;  %7582 = vmatprep.subr.bf16.mxu0 %v8071_v2  ;;  %v8098_v4 = vld [vmem:[#allocation12 + $0x2b8] sm:$0xff]  }
 0x4b1   :  { %7604 = vmatprep.subr.bf16.mxu1 %v8072_v19  ;;  %v8099_v19 = vld [vmem:[#allocation12 + $0x340] sm:$0xff]  }
 0x4b3   :  { %7583 = vmatpush3.bf16.msra.mxu0 %v8073_v20  ;;  %v8100_v20 = vld [vmem:[#allocation12 + $0x3c0] sm:$0xff]  }
 0x4b4   :  { %7605 = vmatpush3.bf16.msra.mxu1 %v8074_v5  ;;  %7584 = vmatprep.subr.bf16.mxu0 %v8075_v22  ;;  %v8101_v22 = vld [vmem:[#allocation12 + $0x300] sm:$0xff]  }
 0x4b5   :  { %7606 = vmatprep.subr.bf16.mxu1 %v8076_v23  ;;  %v8102_v23 = vld [vmem:[#allocation12 + $0x380] sm:$0xff]  }
 0x4b7   :  { %7585 = vmatpush3.bf16.msra.mxu0 %v8077_v24  ;;  %v8103_v24 = vld [vmem:[#allocation12 + $0x348] sm:$0xff]  }
 0x4b8   :  { %7607 = vmatpush3.bf16.msra.mxu1 %v8078_v25  ;;  %7586 = vmatprep.subr.bf16.mxu0 %v8079_v9  ;;  %v8104_v25 = vld [vmem:[#allocation12 + $0x3c8] sm:$0xff]  }
 0x4b9   :  { %7608 = vmatprep.subr.bf16.mxu1 %v8080_v26  ;;  %v8105_v9 = vld [vmem:[#allocation12 + $0x308] sm:$0xff]  }
 0x4ba   :  { %v8106_v26 = vld [vmem:[#allocation12 + $0x388] sm:$0xff]  }
 0x4bb   :  { %7587 = vmatpush3.bf16.msra.mxu0 %v8081_v43  ;;  %v8107_v43 = vld [vmem:[#allocation12 + $0x350] sm:$0xff]  }
 0x4bc   :  { %7609 = vmatpush3.bf16.msra.mxu1 %v8082_v46  ;;  %7588 = vmatprep.subr.bf16.mxu0 %v8083_v27  ;;  %v8108_v46 = vld [vmem:[#allocation12 + $0x3d0] sm:$0xff]  }
 0x4bd   :  { %7610 = vmatprep.subr.bf16.mxu1 %v8084_v28  ;;  %v8109_v27 = vld [vmem:[#allocation12 + $0x310] sm:$0xff]  }
 0x4be   :  { %v8110_v28 = vld [vmem:[#allocation12 + $0x390] sm:$0xff]  }
 0x4bf   :  { %7589 = vmatpush3.bf16.msra.mxu0 %v8085_v29  ;;  %v8111_v29 = vld [vmem:[#allocation12 + $0x358] sm:$0xff]  }
 0x4c0   :  { %7611 = vmatpush3.bf16.msra.mxu1 %v8086_v32  ;;  %7590 = vmatprep.subr.bf16.mxu0 %v8087_v33  ;;  %v8112_v32 = vld [vmem:[#allocation12 + $0x3d8] sm:$0xff]  }
 0x4c1   :  { %v5005_v51 = vpop.f32.mrb[16].mxu0  ;;  %7612 = vmatprep.subr.bf16.mxu1 %v8088_v34  ;;  %v8113_v33 = vld [vmem:[#allocation12 + $0x318] sm:$0xff]  }
 0x4c2   :  { %v7692_v54 = vadd.f32 %v5005_v51, %v1979_v39  ;;  %v5091_v38 = vpop.f32.mrb[16].mxu1  ;;  %v5007_v8 = vpop.f32.mrb[17].mxu0  ;;  %v8114_v34 = vld [vmem:[#allocation12 + $0x398] sm:$0xff]   ;;  %v8122_v51 = vld [vmem:[#allocation12 + $0x3a8] sm:$0xff]  }
 0x4c3   :  { %v7696_v62 = vadd.f32 %v5091_v38, %v1987_v42  ;;  %v7693_v55 = vadd.f32 %v5007_v8, %v1983_v44  ;;  %v5093_v53 = vpop.f32.mrb[17].mxu1  ;;  %v5009_v0 = vpop.f32.mrb[18].mxu0  ;;  %7591 = vmatpush3.bf16.msra.mxu0 %v8089_v45  ;;  %v8118_v45 = vld [vmem:[#allocation12 + $0x3a0] sm:$0xff]   ;;  %v8125_v38 = vld [vmem:[#allocation12 + $0x330] sm:$0xff]  }
 0x4c4   :  { %v7697_v57 = vadd.f32 %v5093_v53, %v1991_v47  ;;  %v7694_v21 = vadd.f32 %v5009_v0, %v1979_v39  ;;  %v5095_v58 = vpop.f32.mrb[18].mxu1  ;;  %7613 = vmatpush3.bf16.msra.mxu1 %v8090_v48  ;;  %v5011_v56 = vpop.f32.mrb[19].mxu0  ;;  %7592 = vmatprep.subr.bf16.mxu0 %v8091_v49  ;;  %v5280_v7 = vmax.f32 %v7692_v54, 0.0  ;;  %v8115_v39 = vld [vmem:[#allocation12 + $0x360] sm:$0xff]   ;;  %v8120_v48 = vld [vmem:[#allocation12 + $0x3e8] sm:$0xff]   ;;  %v8124_v54 = vld [vmem:[#allocation12 + $0x3f0] sm:$0xff]  }
 0x4c5   :  { %v7698_v60 = vadd.f32 %v5095_v58, %v1987_v42  ;;  %v7695_v61 = vadd.f32 %v5011_v56, %v1983_v44  ;;  %v5097_v1 = vpop.f32.mrb[19].mxu1  ;;  %7614 = vmatprep.subr.bf16.mxu1 %v8092_v52  ;;  %v5282_v12 = vmax.f32 %v7696_v62, 0.0  ;;  %v5281_v13 = vmax.f32 %v7693_v55, 0.0  ;;  %v8116_v42 = vld [vmem:[#allocation12 + $0x3e0] sm:$0xff]   ;;  %v8121_v49 = vld [vmem:[#allocation12 + $0x328] sm:$0xff]   ;;  %v8123_v52 = vld [vmem:[#allocation12 + $0x370] sm:$0xff]  }
 0x4c6   :  { %v5296_v10 = vmax.f32 %v7694_v21, 0.0  ;;  %v7699_v11 = vadd.f32 %v5097_v1, %v1991_v47  ;;  %v5283_v16 = vmax.f32 %v7697_v57, 0.0  ;;  %v8117_v44 = vld [vmem:[#allocation12 + $0x320] sm:$0xff]   ;;  %v8119_v47 = vld [vmem:[#allocation12 + $0x368] sm:$0xff]   ;;  %v8126_v8 = vld [vmem:[#allocation12 + $0x3b0] sm:$0xff]   ;;  %v2003_v57 = vrot.slane %v8610_v30, %v1970_v35 }
 0x4c7   :  { %v5298_v63 = vmax.f32 %v7698_v60, 0.0  ;;  %v5297_v14 = vmax.f32 %v7695_v61, 0.0  ;;  %7593 = vmatpush3.bf16.msra.mxu0 %v8093_v40  ;;  %v8127_v62 = vld [vmem:[#allocation12 + $0x378] sm:$0xff]   ;;  %v1995_v40 = vrot.slane %v8610_v30, %v1962_v31  ;;  %v1999_v21 = vrot.slane %v8610_v30, %v1966_v36 }
 0x4c8   :  { %v5312_v17 = vpack.c.bf16 %v5296_v10, %v5280_v7  ;;  %v5299_v18 = vmax.f32 %v7699_v11, 0.0  ;;  %7615 = vmatpush3.bf16.msra.mxu1 %v8094_v59  ;;  %7594 = vmatprep.subr.bf16.mxu0 %v8095_v50  ;;  %v8128_v55 = vld [vmem:[#allocation12 + $0x3f8] sm:$0xff]   ;;  %v2007_v58 = vrot.slane %v8610_v30, %v1974_v41 }
 0x4c9   :  { %v5314_v3 = vpack.c.bf16 %v5298_v63, %v5282_v12  ;;  %v5313_v2 = vpack.c.bf16 %v5297_v14, %v5281_v13  ;;  %7616 = vmatprep.subr.bf16.mxu1 %v8096_v6  ;;  %v8129_v53 = vld [vmem:[#allocation12 + $0x338] sm:$0xff]  }
 0x4ca   :  { %v5315_v5 = vpack.c.bf16 %v5299_v18, %v5283_v16  ;;  %v8130_v0 = vld [vmem:[#allocation12 + $0x3b8] sm:$0xff]  }
 0x4cb   :  { %7595 = vmatpush3.bf16.msra.mxu0 %v8097_v15  ;;  %6547 = vmatprep.mubr.bf16.mxu0 %v5313_v2 }
 0x4cc   :  { %7617 = vmatpush3.bf16.msra.mxu1 %v8098_v4  ;;  %6588 = vmatprep.mubr.bf16.mxu1 %v5315_v5 }
 0x4cd   :  { %7624 = vmatprep.subr.bf16.mxu0 %v8099_v19  ;;  %7646 = vmatprep.subr.bf16.mxu1 %v8100_v20 }
 0x4ce   :  { %6548 = vmatmul.mubr.bf16.vlgmr.msra.gmra.mrb[32].mxu0 %v5312_v17 }
 0x4cf   :  { %6589 = vmatmul.mubr.bf16.vlgmr.msra.gmra.mrb[32].mxu1 %v5314_v3  ;;  %7625 = vmatpush3.bf16.msra.mxu0 %v8101_v22  ;;  %v7363_v22 = vld [vmem:[#allocation13] ss:$0 sm:$0xff] }
 0x4d0   :  { %7647 = vmatpush3.bf16.msra.mxu1 %v8102_v23  ;;  %7626 = vmatprep.subr.bf16.mxu0 %v8103_v24 }
 0x4d1   :  { %7648 = vmatprep.subr.bf16.mxu1 %v8104_v25 }
 0x4d3   :  { %7627 = vmatpush3.bf16.msra.mxu0 %v8105_v9 }
 0x4d4   :  { %7649 = vmatpush3.bf16.msra.mxu1 %v8106_v26  ;;  %7628 = vmatprep.subr.bf16.mxu0 %v8107_v43 }
 0x4d5   :  { %7650 = vmatprep.subr.bf16.mxu1 %v8108_v46 }
 0x4d7   :  { %7629 = vmatpush3.bf16.msra.mxu0 %v8109_v27 }
 0x4d8   :  { %7651 = vmatpush3.bf16.msra.mxu1 %v8110_v28  ;;  %7630 = vmatprep.subr.bf16.mxu0 %v8111_v29 }
 0x4d9   :  { %7652 = vmatprep.subr.bf16.mxu1 %v8112_v32 }
 0x4db   :  { %7631 = vmatpush3.bf16.msra.mxu0 %v8113_v33 }
 0x4dc   :  { %7653 = vmatpush3.bf16.msra.mxu1 %v8114_v34  ;;  %7632 = vmatprep.subr.bf16.mxu0 %v8115_v39 }
 0x4dd   :  { %7654 = vmatprep.subr.bf16.mxu1 %v8116_v42 }
 0x4df   :  { %7633 = vmatpush3.bf16.msra.mxu0 %v8117_v44 }
 0x4e0   :  { %7655 = vmatpush3.bf16.msra.mxu1 %v8118_v45  ;;  %7634 = vmatprep.subr.bf16.mxu0 %v8119_v47 }
 0x4e1   :  { %7656 = vmatprep.subr.bf16.mxu1 %v8120_v48 }
 0x4e3   :  { %7635 = vmatpush3.bf16.msra.mxu0 %v8121_v49 }
 0x4e4   :  { %7657 = vmatpush3.bf16.msra.mxu1 %v8122_v51  ;;  %7636 = vmatprep.subr.bf16.mxu0 %v8123_v52 }
 0x4e5   :  { %7658 = vmatprep.subr.bf16.mxu1 %v8124_v54 }
 0x4e7   :  { %7637 = vmatpush3.bf16.msra.mxu0 %v8125_v38 }
 0x4e8   :  { %7659 = vmatpush3.bf16.msra.mxu1 %v8126_v8  ;;  %7638 = vmatprep.subr.bf16.mxu0 %v8127_v62 }
 0x4e9   :  { %7660 = vmatprep.subr.bf16.mxu1 %v8128_v55 }
 0x4eb   :  { %7639 = vmatpush3.bf16.msra.mxu0 %v8129_v53 }
 0x4ec   :  { %7661 = vmatpush3.bf16.msra.mxu1 %v8130_v0 }
 0x541   :  { %v5177_v56 = vpop.f32.mrb[20].mxu0 }
 0x542   :  { %v7700_v59 = vadd.f32 %v5177_v56, %v1995_v40  ;;  %v5263_v50 = vpop.f32.mrb[20].mxu1  ;;  %v5179_v60 = vpop.f32.mrb[21].mxu0 }
 0x543   :  { %v7704_v61 = vadd.f32 %v5263_v50, %v2003_v57  ;;  %v7701_v1 = vadd.f32 %v5179_v60, %v1999_v21  ;;  %v5265_v6 = vpop.f32.mrb[21].mxu1  ;;  %v5181_v31 = vpop.f32.mrb[22].mxu0 }
 0x544   :  { %v7705_v7 = vadd.f32 %v5265_v6, %v2007_v58  ;;  %v7702_v10 = vadd.f32 %v5181_v31, %v1995_v40  ;;  %v5267_v11 = vpop.f32.mrb[22].mxu1  ;;  %v5183_v35 = vpop.f32.mrb[23].mxu0  ;;  %v5284_v36 = vmax.f32 %v7700_v59, 0.0 }
 0x545   :  { %v7706_v12 = vadd.f32 %v5267_v11, %v2003_v57  ;;  %v7703_v13 = vadd.f32 %v5183_v35, %v1999_v21  ;;  %v5269_v63 = vpop.f32.mrb[23].mxu1  ;;  %v5286_v15 = vmax.f32 %v7704_v61, 0.0  ;;  %v5285_v41 = vmax.f32 %v7701_v1, 0.0 }
 0x546   :  { %v5300_v14 = vmax.f32 %v7702_v10, 0.0  ;;  %v7707_v37 = vadd.f32 %v5269_v63, %v2007_v58  ;;  %v5287_v17 = vmax.f32 %v7705_v7, 0.0 }
 0x547   :  { %v5302_v30 = vmax.f32 %v7706_v12, 0.0  ;;  %v5301_v16 = vmax.f32 %v7703_v13, 0.0 }
 0x548   :  { %v5316_v18 = vpack.c.bf16 %v5300_v14, %v5284_v36  ;;  %v5303_v4 = vmax.f32 %v7707_v37, 0.0 }
 0x549   :  { %v5318_v3 = vpack.c.bf16 %v5302_v30, %v5286_v15  ;;  %v5317_v2 = vpack.c.bf16 %v5301_v16, %v5285_v41 }
 0x54a   :  { %v5319_v19 = vpack.c.bf16 %v5303_v4, %v5287_v17 }
 0x54b   :  { %6629 = vmatprep.mubr.bf16.mxu0 %v5317_v2 }
 0x54c   :  { %6670 = vmatprep.mubr.bf16.mxu1 %v5319_v19  ;;  %6630 = vmatmul.mubr.bf16.vlgmr.msra.gmra.mrb[36].mxu0 %v5316_v18 }
 0x54d   :  { %6671 = vmatmul.mubr.bf16.vlgmr.msra.gmra.mrb[36].mxu1 %v5318_v3 }
 0x561   :  { %v7508_v20 = vpop.f32.mrb[24].mxu0 }
 0x562   :  { %v7530_v5 = vpop.f32.mrb[24].mxu1  ;;  %v7509_v23 = vpop.f32.mrb[25].mxu0 }
 0x563   :  { %v7510_v24 = vadd.f32 %v7509_v23, %v7508_v20  ;;  %v7531_v25 = vpop.f32.mrb[25].mxu1  ;;  %v7511_v9 = vpop.f32.mrb[26].mxu0 }
 0x564   :  { %v7532_v26 = vadd.f32 %v7531_v25, %v7530_v5  ;;  %v7533_v43 = vpop.f32.mrb[26].mxu1  ;;  %v7512_v46 = vpop.f32.mrb[27].mxu0 }
 0x565   :  { %v6386_v27 = vadd.f32 %v7510_v24, %v7363_v22  ;;  %v7513_v28 = vadd.f32 %v7512_v46, %v7511_v9  ;;  %v7534_v29 = vpop.f32.mrb[27].mxu1 }
 0x566   :  { %v7535_v32 = vadd.f32 %v7534_v29, %v7533_v43 }
 0x567   :  { %v6427_v33 = vadd.f32 %v7532_v26, %v6386_v27  ;;  %v6389_v34 = vadd.f32 %v7513_v28, %v7363_v22 }
 0x569   :  { %v6430_v39 = vadd.f32 %v7535_v32, %v6389_v34 }
 0x581   :  { %v7552_v42 = vpop.f32.mrb[28].mxu0 }
 0x582   :  { %v7574_v44 = vpop.f32.mrb[28].mxu1  ;;  %v7553_v45 = vpop.f32.mrb[29].mxu0 }
 0x583   :  { %v7554_v47 = vadd.f32 %v7553_v45, %v7552_v42  ;;  %v7575_v48 = vpop.f32.mrb[29].mxu1  ;;  %v7555_v49 = vpop.f32.mrb[30].mxu0 }
 0x584   :  { %v7576_v51 = vadd.f32 %v7575_v48, %v7574_v44  ;;  %v7577_v52 = vpop.f32.mrb[30].mxu1  ;;  %v7556_v54 = vpop.f32.mrb[31].mxu0 }
 0x585   :  { %v6468_v38 = vadd.f32 %v7554_v47, %v6427_v33  ;;  %v7557_v8 = vadd.f32 %v7556_v54, %v7555_v49  ;;  %v7578_v62 = vpop.f32.mrb[31].mxu1 }
 0x586   :  { %v7579_v55 = vadd.f32 %v7578_v62, %v7577_v52 }
 0x587   :  { %v6509_v53 = vadd.f32 %v7576_v51, %v6468_v38  ;;  %v6471_v0 = vadd.f32 %v7557_v8, %v6430_v39 }
 0x589   :  { %v6512_v40 = vadd.f32 %v7579_v55, %v6471_v0 }
 0x5a1   :  { %v7596_v57 = vpop.f32.mrb[32].mxu0 }
 0x5a2   :  { %v7618_v21 = vpop.f32.mrb[32].mxu1  ;;  %v7597_v58 = vpop.f32.mrb[33].mxu0 }
 0x5a3   :  { %v7598_v56 = vadd.f32 %v7597_v58, %v7596_v57  ;;  %v7619_v59 = vpop.f32.mrb[33].mxu1  ;;  %v7599_v50 = vpop.f32.mrb[34].mxu0 }
 0x5a4   :  { %v7620_v60 = vadd.f32 %v7619_v59, %v7618_v21  ;;  %v7621_v61 = vpop.f32.mrb[34].mxu1  ;;  %v7600_v1 = vpop.f32.mrb[35].mxu0 }
 0x5a5   :  { %v6550_v6 = vadd.f32 %v7598_v56, %v6509_v53  ;;  %v7601_v31 = vadd.f32 %v7600_v1, %v7599_v50  ;;  %v7622_v7 = vpop.f32.mrb[35].mxu1 }
 0x5a6   :  { %v7623_v10 = vadd.f32 %v7622_v7, %v7621_v61 }
 0x5a7   :  { %v6591_v11 = vadd.f32 %v7620_v60, %v6550_v6  ;;  %v6553_v35 = vadd.f32 %v7601_v31, %v6512_v40 }
 0x5a9   :  { %v6594_v12 = vadd.f32 %v7623_v10, %v6553_v35 }
 0x61f   :  { %v7640_v13 = vpop.f32.mrb[36].mxu0 }
 0x620   :  { %v7662_v63 = vpop.f32.mrb[36].mxu1  ;;  %v7641_v36 = vpop.f32.mrb[37].mxu0 }
 0x621   :  { %v7642_v14 = vadd.f32 %v7641_v36, %v7640_v13  ;;  %v7663_v37 = vpop.f32.mrb[37].mxu1  ;;  %v7643_v15 = vpop.f32.mrb[38].mxu0 }
 0x622   :  { %v7664_v41 = vadd.f32 %v7663_v37, %v7662_v63  ;;  %v7665_v30 = vpop.f32.mrb[38].mxu1  ;;  %v7644_v16 = vpop.f32.mrb[39].mxu0 }
 0x623   :  { %v6632_v17 = vadd.f32 %v7642_v14, %v6591_v11  ;;  %v7645_v18 = vadd.f32 %v7644_v16, %v7643_v15  ;;  %v7666_v4 = vpop.f32.mrb[39].mxu1 }
 0x624   :  { %v7667_v3 = vadd.f32 %v7666_v4, %v7665_v30 }
 0x625   :  { %v6673_v2 = vadd.f32 %v7664_v41, %v6632_v17  ;;  %v6635_v19 = vadd.f32 %v7645_v18, %v6594_v12 }
 0x627   :  { %6679 = vst [vmem:[%s8647_s9] sm:$0xff] %v6673_v2  ;;  %v6676_v20 = vadd.f32 %v7667_v3, %v6635_v19 }
 0x629   :  { %6680 = vst [vmem:[%s8647_s9 + $0x8] sm:$0xff] %v6676_v20 }
 0x62a   :  { %6685 = vsyncpa [#allocation3], 1 }
 0x62b   :  { %6686 = vsyncpa [#allocation5], 1 }
 0x62c   :  { %6687 = vsyncpa [#allocation8], 1 }
 0x62d   :  { %6688 = vsyncpa [#allocation11], 1 }
 0x62e   :  { %6689 = vsyncpa [#allocation14], 1 }

</bundles_post_ra>
